<compile_context>
chip_gen: v5e
topology: v5e:2x2
jax: 0.10.0
libtpu: 0.0.40
codegen_flags: <defaults>
</compile_context>

<pallas_src>
import jax
import jax.numpy as jnp
from jax.experimental import pallas as pl
from jax.experimental.pallas import tpu as pltpu

FILTER_MULTIPLIER = 2
INITIAL_FILTERS = 16
INPUT_CHANNELS = 2
NUM_LAYERS = 5
KERNEL_SIZE = 3
STRIDE = 2
PAD = 1
BN_EPS = 1e-5


def _layer_channels(i):
    in_ch = INPUT_CHANNELS if i == 0 else INITIAL_FILTERS * FILTER_MULTIPLIER ** (i - 1)
    out_ch = INITIAL_FILTERS * FILTER_MULTIPLIER ** i
    return in_ch, out_ch


def _pack_layer_params(W, b, gamma, beta, first_layer):
    """Pack one layer's conv weight into matmul-ready tap rows.

    Row k*C_in + c of the slab is W[:, c, k], so a patch matrix with columns
    ordered [k=0 channels..., k=1 ..., k=2 ...] multiplies it directly.

      first_layer -> f32 slab (K*C_in, C_out)                 (VPU path)
      otherwise   -> bf16 slab (2*K*C_in, C_out) = [W_hi; W_lo]  (MXU bf16x3)

    (bias, gamma, beta) ship separately as a (3, C_out) f32 array.
    """
    c_out, c_in, k = W.shape
    w_rows = jnp.transpose(W, (2, 1, 0)).reshape(k * c_in, c_out)  # f32
    aff = jnp.stack([b, gamma, beta], axis=0)                      # (3, c_out) f32
    if first_layer:
        return w_rows, aff
    w_hi = w_rows.astype(jnp.bfloat16)
    w_lo = (w_rows - w_hi.astype(jnp.float32)).astype(jnp.bfloat16)
    return jnp.concatenate([w_hi, w_lo], axis=0), aff


def _make_encoder_kernel(batch, seq_len, channels):
    """Build the fused 5-layer kernel for static (batch, seq_len, channels)."""
    dims = []
    L = seq_len
    for (c_in, c_out) in channels:
        assert L % 2 == 0, "stride-2 conv chain assumes even lengths"
        L_out = (L + 2 * PAD - KERNEL_SIZE) // STRIDE + 1
        dims.append((L, L_out, c_in, c_out))
        L = L_out
    num_layers = len(channels)

    def gather_patch(src_ref, L_in, L_out):
        """In-kernel im2col via sublane-strided ref reads (no sel-matmuls).

        src_ref rows per batch are [zero pad, x[0], ..., x[L_in-1]], so tap k of
        output position t is row (k + STRIDE*t) == original row STRIDE*t + k - PAD,
        with the k=0 left pad supplied by the zero row.  K=3, S=2, P=1, even L_in
        => the right pad element is never touched.
        """
        Lp = L_in + 1
        per_batch = []
        for b in range(batch):
            taps = [src_ref[pl.ds(b * Lp + k, L_out, stride=STRIDE), :]
                    for k in range(KERNEL_SIZE)]
            per_batch.append(jnp.concatenate(taps, axis=1))   # (L_out, K*c_in)
        return jnp.concatenate(per_batch, axis=0)             # (B*L_out, K*c_in)

    def kernel(*refs):
        x_ref = refs[0]
        w_refs = refs[1:1 + 2 * num_layers:2]
        aff_refs = refs[2:2 + 2 * num_layers:2]
        out_ref = refs[1 + 2 * num_layers]
        act_refs = refs[2 + 2 * num_layers:]     # VMEM scratch: inputs of layers 1..N-1

        src = x_ref
        for i, (L_in, L_out, c_in, c_out) in enumerate(dims):
            KC = KERNEL_SIZE * c_in
            patch = gather_patch(src, L_in, L_out)             # (B*L_out, KC) f32

            aff = aff_refs[i][...]                              # (3, c_out) f32
            bias, gamma, beta = aff[0:1, :], aff[1:2, :], aff[2:3, :]

            if i == 0:
                # Tiny first layer (KC=6, c_out=16): 6 broadcast FMAs on the VPU.
                # Keeps the MXU free and avoids a >90%-idle systolic pass.
                w = w_refs[i]
                y = patch[:, 0:1] * w[0:1, :]
                for j in range(1, KC):
                    y = y + patch[:, j:j + 1] * w[j:j + 1, :]
            else:
                # ONE f32-accurate conv matmul per layer, realised as the
                # standard bf16x3 split (hi*hi + lo*hi + hi*lo) with f32
                # accumulation; the three bf16 passes are independent and
                # pipeline back-to-back in the MXU.
                p_hi = patch.astype(jnp.bfloat16)
                p_lo = (patch - p_hi.astype(jnp.float32)).astype(jnp.bfloat16)
                w_hi = w_refs[i][0:KC, :]
                w_lo = w_refs[i][KC:2 * KC, :]
                y = (jnp.dot(p_hi, w_hi, preferred_element_type=jnp.float32)
                     + jnp.dot(p_lo, w_hi, preferred_element_type=jnp.float32)
                     + jnp.dot(p_hi, w_lo, preferred_element_type=jnp.float32))
            y = y + bias   # single broadcast over the stacked (B*L_out, c_out) block

            # ELU(alpha=1): exp(min(y,0)) - 1 == expm1(min(y,0)) to ~6e-8 abs.
            e = jnp.where(y > 0.0, y, jnp.exp(jnp.minimum(y, 0.0)) - 1.0)

            # Train-mode BatchNorm1d over the whole (B, L_out) batch, one pass.
            # (E[x^2]-E[x]^2 is safe at these O(1) magnitudes; use Welford if reused
            #  at larger scale.)
            inv_n = 1.0 / float(batch * L_out)
            mean = jnp.sum(e, axis=0, keepdims=True) * inv_n
            var = jnp.maximum(jnp.sum(e * e, axis=0, keepdims=True) * inv_n
                              - mean * mean, 0.0)
            scale = gamma * jax.lax.rsqrt(var + BN_EPS)
            shift = beta - mean * scale
            o = e * scale + shift                               # (B*L_out, c_out)

            if i == num_layers - 1:
                # Only HBM store: lane-dense (B*L_f, 256) block.
                out_ref[...] = o.astype(out_ref.dtype)
            else:
                # Stage next layer's input in VMEM scratch, with the per-batch
                # zero pad row written explicitly (scratch is uninitialized).
                dst = act_refs[i]
                Lp_n = L_out + 1
                zrow = jnp.zeros((1, c_out), jnp.float32)
                for b in range(batch):
                    base = b * Lp_n
                    dst[base:base + 1, :] = zrow
                    dst[base + 1:base + 1 + L_out, :] = o[b * L_out:(b + 1) * L_out, :]
                src = dst

    return kernel, dims


def encoder_forward(params, x_ncl):
    """Fused Pallas forward.  x_ncl: (B, C_in, L) PyTorch layout -> (B, C_f, L_f)."""
    B, C_in, L = x_ncl.shape
    channels = [(W.shape[1], W.shape[0]) for (W, _, _, _) in params]
    kernel, dims = _make_encoder_kernel(B, L, channels)
    L_f, C_f = dims[-1][1], dims[-1][3]

    # Boundary layout plumbing only: NCL -> channels-last, plus one zero row per
    # batch at the front (the k=0 left pad used by the in-kernel strided gather).
    x_cl = jnp.transpose(x_ncl, (0, 2, 1))                 # (B, L, C_in)
    x_pad = jnp.pad(x_cl, ((0, 0), (1, 0), (0, 0)))        # (B, L+1, C_in)
    x2d = x_pad.reshape(B * (L + 1), C_in)

    inputs = [x2d]
    for i, (W, b, g, bt) in enumerate(params):
        wslab, aff = _pack_layer_params(W, b, g, bt, first_layer=(i == 0))
        inputs += [wslab, aff]

    # VMEM scratch holding the (padded) inputs of layers 1..4; total < 20 KB.
    scratch = [pltpu.VMEM((B * (dims[i][1] + 1), dims[i][3]), jnp.float32)
               for i in range(len(params) - 1)]

    out2d = pl.pallas_call(
        kernel,
        out_shape=jax.ShapeDtypeStruct((B * L_f, C_f), jnp.float32),
        scratch_shapes=scratch,
    )(*inputs)

    return jnp.transpose(out2d.reshape(B, L_f, C_f), (0, 2, 1))


def init_encoder_params(key):
    params = []
    for i in range(NUM_LAYERS):
        c_in, c_out = _layer_channels(i)
        key, k1, k2, k3, k4 = jax.random.split(key, 5)
        W = 0.1 * jax.random.normal(k1, (c_out, c_in, KERNEL_SIZE), jnp.float32)
        b = 0.01 * jax.random.normal(k2, (c_out,), jnp.float32)
        gamma = 1.0 + 0.1 * jax.random.normal(k3, (c_out,), jnp.float32)
        beta = 0.1 * jax.random.normal(k4, (c_out,), jnp.float32)
        params.append((W, b, gamma, beta))
    return params


def encoder_reference(params, x_ncl):
    """Pure-JAX, full-f32, module-faithful train-mode forward (Conv1d->ELU->BN)."""
    x = x_ncl
    for (W, b, gamma, beta) in params:
        y = jax.lax.conv_general_dilated(
            x, W, window_strides=(STRIDE,), padding=((PAD, PAD),),
            dimension_numbers=('NCH', 'OIH', 'NCH'),
            preferred_element_type=jnp.float32,
            precision=jax.lax.Precision.HIGHEST)
        y = y + b[None, :, None]
        e = jnp.where(y > 0.0, y, jnp.expm1(jnp.minimum(y, 0.0)))
        mean = jnp.mean(e, axis=(0, 2), keepdims=True)
        var = jnp.mean((e - mean) ** 2, axis=(0, 2), keepdims=True)
        x = (gamma[None, :, None] * (e - mean) * jax.lax.rsqrt(var + BN_EPS)
             + beta[None, :, None])
    return x


if __name__ == "__main__":
    key = jax.random.PRNGKey(0)
    key_params, key_x = jax.random.split(key)
    params = init_encoder_params(key_params)

    # (B, C_in, L) = (2, 2, 64); 5 stride-2 layers: L 64->32->16->8->4->2, C 2->256.
    x = jax.random.normal(key_x, (2, INPUT_CHANNELS, 64), jnp.float32)

    fwd = jax.jit(encoder_forward)
    out = jax.block_until_ready(fwd(params, x))
    assert out.shape == (2, INITIAL_FILTERS * FILTER_MULTIPLIER ** (NUM_LAYERS - 1), 2), out.shape

    # f32-accurate kernel vs module-faithful f32 reference: tight tolerances.
    ref = jax.block_until_ready(encoder_reference(params, x))
    max_abs = float(jnp.max(jnp.abs(out - ref)))
    rel_l2 = float(jnp.linalg.norm(out - ref) / jnp.linalg.norm(ref))
    assert max_abs < 3e-3, max_abs
    assert rel_l2 < 2e-3, rel_l2

    print("KERNEL_OK")
</pallas_src>

<mosaic_0001>
module attributes {stable_mosaic.version = 11 : i64} {
  func.func @kernel(%arg0: memref<130x2xf32, #tpu.memory_space<vmem>>, %arg1: memref<6x16xf32, #tpu.memory_space<vmem>>, %arg2: memref<3x16xf32, #tpu.memory_space<vmem>>, %arg3: memref<96x32xbf16, #tpu.memory_space<vmem>>, %arg4: memref<3x32xf32, #tpu.memory_space<vmem>>, %arg5: memref<192x64xbf16, #tpu.memory_space<vmem>>, %arg6: memref<3x64xf32, #tpu.memory_space<vmem>>, %arg7: memref<384x128xbf16, #tpu.memory_space<vmem>>, %arg8: memref<3x128xf32, #tpu.memory_space<vmem>>, %arg9: memref<768x256xbf16, #tpu.memory_space<vmem>>, %arg10: memref<3x256xf32, #tpu.memory_space<vmem>>, %arg11: memref<4x256xf32, #tpu.memory_space<vmem>>, %arg12: memref<66x16xf32, #tpu.memory_space<vmem>>, %arg13: memref<34x32xf32, #tpu.memory_space<vmem>>, %arg14: memref<18x64xf32, #tpu.memory_space<vmem>>, %arg15: memref<10x128xf32, #tpu.memory_space<vmem>>) attributes {dimension_semantics = [], scalar_prefetch = 0 : i64, scratch_operands = 4 : i64, tpu.core_type = #tpu.core_type<tc>} {
    %c0 = arith.constant 0 : index
    %c0_0 = arith.constant 0 : index
    %0 = tpu.strided_load %arg0[%c0, %c0_0] {strides = array<i32: 2, 1>} : memref<130x2xf32, #tpu.memory_space<vmem>>, vector<32x2xf32>
    %c1 = arith.constant 1 : index
    %c0_1 = arith.constant 0 : index
    %1 = tpu.strided_load %arg0[%c1, %c0_1] {strides = array<i32: 2, 1>} : memref<130x2xf32, #tpu.memory_space<vmem>>, vector<32x2xf32>
    %c2 = arith.constant 2 : index
    %c0_2 = arith.constant 0 : index
    %2 = tpu.strided_load %arg0[%c2, %c0_2] {strides = array<i32: 2, 1>} : memref<130x2xf32, #tpu.memory_space<vmem>>, vector<32x2xf32>
    %3 = tpu.concatenate %0, %1, %2 in 1 : vector<32x2xf32>, vector<32x2xf32>, vector<32x2xf32> -> vector<32x6xf32>
    %c65 = arith.constant 65 : index
    %c0_3 = arith.constant 0 : index
    %4 = tpu.strided_load %arg0[%c65, %c0_3] {strides = array<i32: 2, 1>} : memref<130x2xf32, #tpu.memory_space<vmem>>, vector<32x2xf32>
    %c66 = arith.constant 66 : index
    %c0_4 = arith.constant 0 : index
    %5 = tpu.strided_load %arg0[%c66, %c0_4] {strides = array<i32: 2, 1>} : memref<130x2xf32, #tpu.memory_space<vmem>>, vector<32x2xf32>
    %c67 = arith.constant 67 : index
    %c0_5 = arith.constant 0 : index
    %6 = tpu.strided_load %arg0[%c67, %c0_5] {strides = array<i32: 2, 1>} : memref<130x2xf32, #tpu.memory_space<vmem>>, vector<32x2xf32>
    %7 = tpu.concatenate %4, %5, %6 in 1 : vector<32x2xf32>, vector<32x2xf32>, vector<32x2xf32> -> vector<32x6xf32>
    %8 = tpu.concatenate %3, %7 in 0 : vector<32x6xf32>, vector<32x6xf32> -> vector<64x6xf32>
    %c0_6 = arith.constant 0 : index
    %c0_7 = arith.constant 0 : index
    %9 = vector.load %arg2[%c0_6, %c0_7] : memref<3x16xf32, #tpu.memory_space<vmem>>, vector<3x16xf32>
    %10 = vector.extract_strided_slice %9 {offsets = [0, 0], sizes = [1, 16], strides = [1, 1]} : vector<3x16xf32> to vector<1x16xf32>
    %11 = vector.extract_strided_slice %9 {offsets = [1, 0], sizes = [1, 16], strides = [1, 1]} : vector<3x16xf32> to vector<1x16xf32>
    %12 = vector.extract_strided_slice %9 {offsets = [2, 0], sizes = [1, 16], strides = [1, 1]} : vector<3x16xf32> to vector<1x16xf32>
    %13 = vector.extract_strided_slice %8 {offsets = [0, 0], sizes = [64, 1], strides = [1, 1]} : vector<64x6xf32> to vector<64x1xf32>
    %c0_8 = arith.constant 0 : index
    %c0_9 = arith.constant 0 : index
    %14 = vector.load %arg1[%c0_8, %c0_9] : memref<6x16xf32, #tpu.memory_space<vmem>>, vector<1x16xf32>
    %15 = vector.broadcast %13 : vector<64x1xf32> to vector<64x16xf32>
    %16 = vector.broadcast %14 : vector<1x16xf32> to vector<64x16xf32>
    %17 = arith.mulf %15, %16 : vector<64x16xf32>
    %18 = vector.extract_strided_slice %8 {offsets = [0, 1], sizes = [64, 1], strides = [1, 1]} : vector<64x6xf32> to vector<64x1xf32>
    %c1_10 = arith.constant 1 : index
    %c0_11 = arith.constant 0 : index
    %19 = vector.load %arg1[%c1_10, %c0_11] : memref<6x16xf32, #tpu.memory_space<vmem>>, vector<1x16xf32>
    %20 = vector.broadcast %18 : vector<64x1xf32> to vector<64x16xf32>
    %21 = vector.broadcast %19 : vector<1x16xf32> to vector<64x16xf32>
    %22 = arith.mulf %20, %21 : vector<64x16xf32>
    %23 = arith.addf %17, %22 : vector<64x16xf32>
    %24 = vector.extract_strided_slice %8 {offsets = [0, 2], sizes = [64, 1], strides = [1, 1]} : vector<64x6xf32> to vector<64x1xf32>
    %c2_12 = arith.constant 2 : index
    %c0_13 = arith.constant 0 : index
    %25 = vector.load %arg1[%c2_12, %c0_13] : memref<6x16xf32, #tpu.memory_space<vmem>>, vector<1x16xf32>
    %26 = vector.broadcast %24 : vector<64x1xf32> to vector<64x16xf32>
    %27 = vector.broadcast %25 : vector<1x16xf32> to vector<64x16xf32>
    %28 = arith.mulf %26, %27 : vector<64x16xf32>
    %29 = arith.addf %23, %28 : vector<64x16xf32>
    %30 = vector.extract_strided_slice %8 {offsets = [0, 3], sizes = [64, 1], strides = [1, 1]} : vector<64x6xf32> to vector<64x1xf32>
    %c3 = arith.constant 3 : index
    %c0_14 = arith.constant 0 : index
    %31 = vector.load %arg1[%c3, %c0_14] : memref<6x16xf32, #tpu.memory_space<vmem>>, vector<1x16xf32>
    %32 = vector.broadcast %30 : vector<64x1xf32> to vector<64x16xf32>
    %33 = vector.broadcast %31 : vector<1x16xf32> to vector<64x16xf32>
    %34 = arith.mulf %32, %33 : vector<64x16xf32>
    %35 = arith.addf %29, %34 : vector<64x16xf32>
    %36 = vector.extract_strided_slice %8 {offsets = [0, 4], sizes = [64, 1], strides = [1, 1]} : vector<64x6xf32> to vector<64x1xf32>
    %c4 = arith.constant 4 : index
    %c0_15 = arith.constant 0 : index
    %37 = vector.load %arg1[%c4, %c0_15] : memref<6x16xf32, #tpu.memory_space<vmem>>, vector<1x16xf32>
    %38 = vector.broadcast %36 : vector<64x1xf32> to vector<64x16xf32>
    %39 = vector.broadcast %37 : vector<1x16xf32> to vector<64x16xf32>
    %40 = arith.mulf %38, %39 : vector<64x16xf32>
    %41 = arith.addf %35, %40 : vector<64x16xf32>
    %42 = vector.extract_strided_slice %8 {offsets = [0, 5], sizes = [64, 1], strides = [1, 1]} : vector<64x6xf32> to vector<64x1xf32>
    %c5 = arith.constant 5 : index
    %c0_16 = arith.constant 0 : index
    %43 = vector.load %arg1[%c5, %c0_16] : memref<6x16xf32, #tpu.memory_space<vmem>>, vector<1x16xf32>
    %44 = vector.broadcast %42 : vector<64x1xf32> to vector<64x16xf32>
    %45 = vector.broadcast %43 : vector<1x16xf32> to vector<64x16xf32>
    %46 = arith.mulf %44, %45 : vector<64x16xf32>
    %47 = arith.addf %41, %46 : vector<64x16xf32>
    %48 = vector.broadcast %10 : vector<1x16xf32> to vector<64x16xf32>
    %49 = arith.addf %47, %48 : vector<64x16xf32>
    %cst = arith.constant 0.000000e+00 : f32
    %50 = vector.broadcast %cst : f32 to vector<64x16xf32>
    %51 = arith.cmpf ogt, %49, %50 : vector<64x16xf32>
    %cst_17 = arith.constant 0.000000e+00 : f32
    %52 = vector.broadcast %cst_17 : f32 to vector<64x16xf32>
    %53 = arith.minimumf %49, %52 : vector<64x16xf32>
    %54 = math.exp %53 : vector<64x16xf32>
    %cst_18 = arith.constant 1.000000e+00 : f32
    %55 = vector.broadcast %cst_18 : f32 to vector<64x16xf32>
    %56 = arith.subf %54, %55 : vector<64x16xf32>
    %57 = arith.select %51, %49, %56 : vector<64x16xi1>, vector<64x16xf32>
    %cst_19 = arith.constant dense<0.000000e+00> : vector<16xf32>
    %58 = vector.multi_reduction <add>, %57, %cst_19 [0] : vector<64x16xf32> to vector<16xf32>
    %59 = vector.shape_cast %58 : vector<16xf32> to vector<1x16xf32>
    %cst_20 = arith.constant 1.562500e-02 : f32
    %60 = vector.broadcast %cst_20 : f32 to vector<1x16xf32>
    %61 = arith.mulf %59, %60 : vector<1x16xf32>
    %62 = arith.mulf %57, %57 : vector<64x16xf32>
    %cst_21 = arith.constant dense<0.000000e+00> : vector<16xf32>
    %63 = vector.multi_reduction <add>, %62, %cst_21 [0] : vector<64x16xf32> to vector<16xf32>
    %64 = vector.shape_cast %63 : vector<16xf32> to vector<1x16xf32>
    %cst_22 = arith.constant 1.562500e-02 : f32
    %65 = vector.broadcast %cst_22 : f32 to vector<1x16xf32>
    %66 = arith.mulf %64, %65 : vector<1x16xf32>
    %67 = arith.mulf %61, %61 : vector<1x16xf32>
    %68 = arith.subf %66, %67 : vector<1x16xf32>
    %cst_23 = arith.constant 0.000000e+00 : f32
    %69 = vector.broadcast %cst_23 : f32 to vector<1x16xf32>
    %70 = arith.maximumf %68, %69 : vector<1x16xf32>
    %cst_24 = arith.constant 9.99999974E-6 : f32
    %71 = vector.broadcast %cst_24 : f32 to vector<1x16xf32>
    %72 = arith.addf %70, %71 : vector<1x16xf32>
    %73 = math.rsqrt %72 : vector<1x16xf32>
    %74 = arith.mulf %11, %73 : vector<1x16xf32>
    %75 = arith.mulf %61, %74 : vector<1x16xf32>
    %76 = arith.subf %12, %75 : vector<1x16xf32>
    %77 = vector.broadcast %74 : vector<1x16xf32> to vector<64x16xf32>
    %78 = arith.mulf %57, %77 : vector<64x16xf32>
    %79 = vector.broadcast %76 : vector<1x16xf32> to vector<64x16xf32>
    %80 = arith.addf %78, %79 : vector<64x16xf32>
    %cst_25 = arith.constant 0.000000e+00 : f32
    %81 = vector.broadcast %cst_25 : f32 to vector<1x16xf32>
    %c0_26 = arith.constant 0 : index
    %c0_27 = arith.constant 0 : index
    %82 = vector.load %arg12[%c0_26, %c0_27] : memref<66x16xf32, #tpu.memory_space<vmem>>, vector<1x16xf32>
    tpu.vector_store %arg12[%c0_26, %c0_27], %81 {strides = array<i32>} : memref<66x16xf32, #tpu.memory_space<vmem>>, vector<1x16xf32>,
    %83 = vector.extract_strided_slice %80 {offsets = [0, 0], sizes = [32, 16], strides = [1, 1]} : vector<64x16xf32> to vector<32x16xf32>
    %c1_28 = arith.constant 1 : index
    %c0_29 = arith.constant 0 : index
    %84 = vector.load %arg12[%c1_28, %c0_29] : memref<66x16xf32, #tpu.memory_space<vmem>>, vector<32x16xf32>
    tpu.vector_store %arg12[%c1_28, %c0_29], %83 {strides = array<i32>} : memref<66x16xf32, #tpu.memory_space<vmem>>, vector<32x16xf32>,
    %c33 = arith.constant 33 : index
    %c0_30 = arith.constant 0 : index
    %85 = vector.load %arg12[%c33, %c0_30] : memref<66x16xf32, #tpu.memory_space<vmem>>, vector<1x16xf32>
    tpu.vector_store %arg12[%c33, %c0_30], %81 {strides = array<i32>} : memref<66x16xf32, #tpu.memory_space<vmem>>, vector<1x16xf32>,
    %86 = vector.extract_strided_slice %80 {offsets = [32, 0], sizes = [32, 16], strides = [1, 1]} : vector<64x16xf32> to vector<32x16xf32>
    %c34 = arith.constant 34 : index
    %c0_31 = arith.constant 0 : index
    %87 = vector.load %arg12[%c34, %c0_31] : memref<66x16xf32, #tpu.memory_space<vmem>>, vector<32x16xf32>
    tpu.vector_store %arg12[%c34, %c0_31], %86 {strides = array<i32>} : memref<66x16xf32, #tpu.memory_space<vmem>>, vector<32x16xf32>,
    %c0_32 = arith.constant 0 : index
    %c0_33 = arith.constant 0 : index
    %88 = tpu.strided_load %arg12[%c0_32, %c0_33] {strides = array<i32: 2, 1>} : memref<66x16xf32, #tpu.memory_space<vmem>>, vector<16x16xf32>
    %c1_34 = arith.constant 1 : index
    %c0_35 = arith.constant 0 : index
    %89 = tpu.strided_load %arg12[%c1_34, %c0_35] {strides = array<i32: 2, 1>} : memref<66x16xf32, #tpu.memory_space<vmem>>, vector<16x16xf32>
    %c2_36 = arith.constant 2 : index
    %c0_37 = arith.constant 0 : index
    %90 = tpu.strided_load %arg12[%c2_36, %c0_37] {strides = array<i32: 2, 1>} : memref<66x16xf32, #tpu.memory_space<vmem>>, vector<16x16xf32>
    %91 = tpu.concatenate %88, %89, %90 in 1 : vector<16x16xf32>, vector<16x16xf32>, vector<16x16xf32> -> vector<16x48xf32>
    %c33_38 = arith.constant 33 : index
    %c0_39 = arith.constant 0 : index
    %92 = tpu.strided_load %arg12[%c33_38, %c0_39] {strides = array<i32: 2, 1>} : memref<66x16xf32, #tpu.memory_space<vmem>>, vector<16x16xf32>
    %c34_40 = arith.constant 34 : index
    %c0_41 = arith.constant 0 : index
    %93 = tpu.strided_load %arg12[%c34_40, %c0_41] {strides = array<i32: 2, 1>} : memref<66x16xf32, #tpu.memory_space<vmem>>, vector<16x16xf32>
    %c35 = arith.constant 35 : index
    %c0_42 = arith.constant 0 : index
    %94 = tpu.strided_load %arg12[%c35, %c0_42] {strides = array<i32: 2, 1>} : memref<66x16xf32, #tpu.memory_space<vmem>>, vector<16x16xf32>
    %95 = tpu.concatenate %92, %93, %94 in 1 : vector<16x16xf32>, vector<16x16xf32>, vector<16x16xf32> -> vector<16x48xf32>
    %96 = tpu.concatenate %91, %95 in 0 : vector<16x48xf32>, vector<16x48xf32> -> vector<32x48xf32>
    %c0_43 = arith.constant 0 : index
    %c0_44 = arith.constant 0 : index
    %97 = vector.load %arg4[%c0_43, %c0_44] : memref<3x32xf32, #tpu.memory_space<vmem>>, vector<3x32xf32>
    %98 = vector.extract_strided_slice %97 {offsets = [0, 0], sizes = [1, 32], strides = [1, 1]} : vector<3x32xf32> to vector<1x32xf32>
    %99 = vector.extract_strided_slice %97 {offsets = [1, 0], sizes = [1, 32], strides = [1, 1]} : vector<3x32xf32> to vector<1x32xf32>
    %100 = vector.extract_strided_slice %97 {offsets = [2, 0], sizes = [1, 32], strides = [1, 1]} : vector<3x32xf32> to vector<1x32xf32>
    %101 = arith.truncf %96 : vector<32x48xf32> to vector<32x48xbf16>
    %102 = arith.extf %101 : vector<32x48xbf16> to vector<32x48xf32>
    %103 = arith.subf %96, %102 : vector<32x48xf32>
    %104 = arith.truncf %103 : vector<32x48xf32> to vector<32x48xbf16>
    %c0_45 = arith.constant 0 : index
    %c0_46 = arith.constant 0 : index
    %105 = vector.load %arg3[%c0_45, %c0_46] : memref<96x32xbf16, #tpu.memory_space<vmem>>, vector<48x32xbf16>
    %c48 = arith.constant 48 : index
    %c0_47 = arith.constant 0 : index
    %106 = vector.load %arg3[%c48, %c0_47] : memref<96x32xbf16, #tpu.memory_space<vmem>>, vector<48x32xbf16>
    %cst_48 = arith.constant dense<0.000000e+00> : vector<32x32xf32>
    %107 = tpu.matmul %101, %105, %cst_48 {dimension_numbers = #tpu.dot_dimension_numbers<[1], [0], [0], [1], [0, 0, 1, 1], [], []>} : vector<32x48xbf16>, vector<48x32xbf16>, vector<32x32xf32> -> vector<32x32xf32>
    %cst_49 = arith.constant dense<0.000000e+00> : vector<32x32xf32>
    %108 = tpu.matmul %104, %105, %cst_49 {dimension_numbers = #tpu.dot_dimension_numbers<[1], [0], [0], [1], [0, 0, 1, 1], [], []>} : vector<32x48xbf16>, vector<48x32xbf16>, vector<32x32xf32> -> vector<32x32xf32>
    %109 = arith.addf %107, %108 : vector<32x32xf32>
    %cst_50 = arith.constant dense<0.000000e+00> : vector<32x32xf32>
    %110 = tpu.matmul %101, %106, %cst_50 {dimension_numbers = #tpu.dot_dimension_numbers<[1], [0], [0], [1], [0, 0, 1, 1], [], []>} : vector<32x48xbf16>, vector<48x32xbf16>, vector<32x32xf32> -> vector<32x32xf32>
    %111 = arith.addf %109, %110 : vector<32x32xf32>
    %112 = vector.broadcast %98 : vector<1x32xf32> to vector<32x32xf32>
    %113 = arith.addf %111, %112 : vector<32x32xf32>
    %cst_51 = arith.constant 0.000000e+00 : f32
    %114 = vector.broadcast %cst_51 : f32 to vector<32x32xf32>
    %115 = arith.cmpf ogt, %113, %114 : vector<32x32xf32>
    %cst_52 = arith.constant 0.000000e+00 : f32
    %116 = vector.broadcast %cst_52 : f32 to vector<32x32xf32>
    %117 = arith.minimumf %113, %116 : vector<32x32xf32>
    %118 = math.exp %117 : vector<32x32xf32>
    %cst_53 = arith.constant 1.000000e+00 : f32
    %119 = vector.broadcast %cst_53 : f32 to vector<32x32xf32>
    %120 = arith.subf %118, %119 : vector<32x32xf32>
    %121 = arith.select %115, %113, %120 : vector<32x32xi1>, vector<32x32xf32>
    %cst_54 = arith.constant dense<0.000000e+00> : vector<32xf32>
    %122 = vector.multi_reduction <add>, %121, %cst_54 [0] : vector<32x32xf32> to vector<32xf32>
    %123 = vector.shape_cast %122 : vector<32xf32> to vector<1x32xf32>
    %cst_55 = arith.constant 3.125000e-02 : f32
    %124 = vector.broadcast %cst_55 : f32 to vector<1x32xf32>
    %125 = arith.mulf %123, %124 : vector<1x32xf32>
    %126 = arith.mulf %121, %121 : vector<32x32xf32>
    %cst_56 = arith.constant dense<0.000000e+00> : vector<32xf32>
    %127 = vector.multi_reduction <add>, %126, %cst_56 [0] : vector<32x32xf32> to vector<32xf32>
    %128 = vector.shape_cast %127 : vector<32xf32> to vector<1x32xf32>
    %cst_57 = arith.constant 3.125000e-02 : f32
    %129 = vector.broadcast %cst_57 : f32 to vector<1x32xf32>
    %130 = arith.mulf %128, %129 : vector<1x32xf32>
    %131 = arith.mulf %125, %125 : vector<1x32xf32>
    %132 = arith.subf %130, %131 : vector<1x32xf32>
    %cst_58 = arith.constant 0.000000e+00 : f32
    %133 = vector.broadcast %cst_58 : f32 to vector<1x32xf32>
    %134 = arith.maximumf %132, %133 : vector<1x32xf32>
    %cst_59 = arith.constant 9.99999974E-6 : f32
    %135 = vector.broadcast %cst_59 : f32 to vector<1x32xf32>
    %136 = arith.addf %134, %135 : vector<1x32xf32>
    %137 = math.rsqrt %136 : vector<1x32xf32>
    %138 = arith.mulf %99, %137 : vector<1x32xf32>
    %139 = arith.mulf %125, %138 : vector<1x32xf32>
    %140 = arith.subf %100, %139 : vector<1x32xf32>
    %141 = vector.broadcast %138 : vector<1x32xf32> to vector<32x32xf32>
    %142 = arith.mulf %121, %141 : vector<32x32xf32>
    %143 = vector.broadcast %140 : vector<1x32xf32> to vector<32x32xf32>
    %144 = arith.addf %142, %143 : vector<32x32xf32>
    %cst_60 = arith.constant 0.000000e+00 : f32
    %145 = vector.broadcast %cst_60 : f32 to vector<1x32xf32>
    %c0_61 = arith.constant 0 : index
    %c0_62 = arith.constant 0 : index
    %146 = vector.load %arg13[%c0_61, %c0_62] : memref<34x32xf32, #tpu.memory_space<vmem>>, vector<1x32xf32>
    tpu.vector_store %arg13[%c0_61, %c0_62], %145 {strides = array<i32>} : memref<34x32xf32, #tpu.memory_space<vmem>>, vector<1x32xf32>,
    %147 = vector.extract_strided_slice %144 {offsets = [0, 0], sizes = [16, 32], strides = [1, 1]} : vector<32x32xf32> to vector<16x32xf32>
    %c1_63 = arith.constant 1 : index
    %c0_64 = arith.constant 0 : index
    %148 = vector.load %arg13[%c1_63, %c0_64] : memref<34x32xf32, #tpu.memory_space<vmem>>, vector<16x32xf32>
    tpu.vector_store %arg13[%c1_63, %c0_64], %147 {strides = array<i32>} : memref<34x32xf32, #tpu.memory_space<vmem>>, vector<16x32xf32>,
    %c17 = arith.constant 17 : index
    %c0_65 = arith.constant 0 : index
    %149 = vector.load %arg13[%c17, %c0_65] : memref<34x32xf32, #tpu.memory_space<vmem>>, vector<1x32xf32>
    tpu.vector_store %arg13[%c17, %c0_65], %145 {strides = array<i32>} : memref<34x32xf32, #tpu.memory_space<vmem>>, vector<1x32xf32>,
    %150 = vector.extract_strided_slice %144 {offsets = [16, 0], sizes = [16, 32], strides = [1, 1]} : vector<32x32xf32> to vector<16x32xf32>
    %c18 = arith.constant 18 : index
    %c0_66 = arith.constant 0 : index
    %151 = vector.load %arg13[%c18, %c0_66] : memref<34x32xf32, #tpu.memory_space<vmem>>, vector<16x32xf32>
    tpu.vector_store %arg13[%c18, %c0_66], %150 {strides = array<i32>} : memref<34x32xf32, #tpu.memory_space<vmem>>, vector<16x32xf32>,
    %c0_67 = arith.constant 0 : index
    %c0_68 = arith.constant 0 : index
    %152 = tpu.strided_load %arg13[%c0_67, %c0_68] {strides = array<i32: 2, 1>} : memref<34x32xf32, #tpu.memory_space<vmem>>, vector<8x32xf32>
    %c1_69 = arith.constant 1 : index
    %c0_70 = arith.constant 0 : index
    %153 = tpu.strided_load %arg13[%c1_69, %c0_70] {strides = array<i32: 2, 1>} : memref<34x32xf32, #tpu.memory_space<vmem>>, vector<8x32xf32>
    %c2_71 = arith.constant 2 : index
    %c0_72 = arith.constant 0 : index
    %154 = tpu.strided_load %arg13[%c2_71, %c0_72] {strides = array<i32: 2, 1>} : memref<34x32xf32, #tpu.memory_space<vmem>>, vector<8x32xf32>
    %155 = tpu.concatenate %152, %153, %154 in 1 : vector<8x32xf32>, vector<8x32xf32>, vector<8x32xf32> -> vector<8x96xf32>
    %c17_73 = arith.constant 17 : index
    %c0_74 = arith.constant 0 : index
    %156 = tpu.strided_load %arg13[%c17_73, %c0_74] {strides = array<i32: 2, 1>} : memref<34x32xf32, #tpu.memory_space<vmem>>, vector<8x32xf32>
    %c18_75 = arith.constant 18 : index
    %c0_76 = arith.constant 0 : index
    %157 = tpu.strided_load %arg13[%c18_75, %c0_76] {strides = array<i32: 2, 1>} : memref<34x32xf32, #tpu.memory_space<vmem>>, vector<8x32xf32>
    %c19 = arith.constant 19 : index
    %c0_77 = arith.constant 0 : index
    %158 = tpu.strided_load %arg13[%c19, %c0_77] {strides = array<i32: 2, 1>} : memref<34x32xf32, #tpu.memory_space<vmem>>, vector<8x32xf32>
    %159 = tpu.concatenate %156, %157, %158 in 1 : vector<8x32xf32>, vector<8x32xf32>, vector<8x32xf32> -> vector<8x96xf32>
    %160 = tpu.concatenate %155, %159 in 0 : vector<8x96xf32>, vector<8x96xf32> -> vector<16x96xf32>
    %c0_78 = arith.constant 0 : index
    %c0_79 = arith.constant 0 : index
    %161 = vector.load %arg6[%c0_78, %c0_79] : memref<3x64xf32, #tpu.memory_space<vmem>>, vector<3x64xf32>
    %162 = vector.extract_strided_slice %161 {offsets = [0, 0], sizes = [1, 64], strides = [1, 1]} : vector<3x64xf32> to vector<1x64xf32>
    %163 = vector.extract_strided_slice %161 {offsets = [1, 0], sizes = [1, 64], strides = [1, 1]} : vector<3x64xf32> to vector<1x64xf32>
    %164 = vector.extract_strided_slice %161 {offsets = [2, 0], sizes = [1, 64], strides = [1, 1]} : vector<3x64xf32> to vector<1x64xf32>
    %165 = arith.truncf %160 : vector<16x96xf32> to vector<16x96xbf16>
    %166 = arith.extf %165 : vector<16x96xbf16> to vector<16x96xf32>
    %167 = arith.subf %160, %166 : vector<16x96xf32>
    %168 = arith.truncf %167 : vector<16x96xf32> to vector<16x96xbf16>
    %c0_80 = arith.constant 0 : index
    %c0_81 = arith.constant 0 : index
    %169 = vector.load %arg5[%c0_80, %c0_81] : memref<192x64xbf16, #tpu.memory_space<vmem>>, vector<96x64xbf16>
    %c96 = arith.constant 96 : index
    %c0_82 = arith.constant 0 : index
    %170 = vector.load %arg5[%c96, %c0_82] : memref<192x64xbf16, #tpu.memory_space<vmem>>, vector<96x64xbf16>
    %cst_83 = arith.constant dense<0.000000e+00> : vector<16x64xf32>
    %171 = tpu.matmul %165, %169, %cst_83 {dimension_numbers = #tpu.dot_dimension_numbers<[1], [0], [0], [1], [0, 0, 1, 1], [], []>} : vector<16x96xbf16>, vector<96x64xbf16>, vector<16x64xf32> -> vector<16x64xf32>
    %cst_84 = arith.constant dense<0.000000e+00> : vector<16x64xf32>
    %172 = tpu.matmul %168, %169, %cst_84 {dimension_numbers = #tpu.dot_dimension_numbers<[1], [0], [0], [1], [0, 0, 1, 1], [], []>} : vector<16x96xbf16>, vector<96x64xbf16>, vector<16x64xf32> -> vector<16x64xf32>
    %173 = arith.addf %171, %172 : vector<16x64xf32>
    %cst_85 = arith.constant dense<0.000000e+00> : vector<16x64xf32>
    %174 = tpu.matmul %165, %170, %cst_85 {dimension_numbers = #tpu.dot_dimension_numbers<[1], [0], [0], [1], [0, 0, 1, 1], [], []>} : vector<16x96xbf16>, vector<96x64xbf16>, vector<16x64xf32> -> vector<16x64xf32>
    %175 = arith.addf %173, %174 : vector<16x64xf32>
    %176 = vector.broadcast %162 : vector<1x64xf32> to vector<16x64xf32>
    %177 = arith.addf %175, %176 : vector<16x64xf32>
    %cst_86 = arith.constant 0.000000e+00 : f32
    %178 = vector.broadcast %cst_86 : f32 to vector<16x64xf32>
    %179 = arith.cmpf ogt, %177, %178 : vector<16x64xf32>
    %cst_87 = arith.constant 0.000000e+00 : f32
    %180 = vector.broadcast %cst_87 : f32 to vector<16x64xf32>
    %181 = arith.minimumf %177, %180 : vector<16x64xf32>
    %182 = math.exp %181 : vector<16x64xf32>
    %cst_88 = arith.constant 1.000000e+00 : f32
    %183 = vector.broadcast %cst_88 : f32 to vector<16x64xf32>
    %184 = arith.subf %182, %183 : vector<16x64xf32>
    %185 = arith.select %179, %177, %184 : vector<16x64xi1>, vector<16x64xf32>
    %cst_89 = arith.constant dense<0.000000e+00> : vector<64xf32>
    %186 = vector.multi_reduction <add>, %185, %cst_89 [0] : vector<16x64xf32> to vector<64xf32>
    %187 = vector.shape_cast %186 : vector<64xf32> to vector<1x64xf32>
    %cst_90 = arith.constant 6.250000e-02 : f32
    %188 = vector.broadcast %cst_90 : f32 to vector<1x64xf32>
    %189 = arith.mulf %187, %188 : vector<1x64xf32>
    %190 = arith.mulf %185, %185 : vector<16x64xf32>
    %cst_91 = arith.constant dense<0.000000e+00> : vector<64xf32>
    %191 = vector.multi_reduction <add>, %190, %cst_91 [0] : vector<16x64xf32> to vector<64xf32>
    %192 = vector.shape_cast %191 : vector<64xf32> to vector<1x64xf32>
    %cst_92 = arith.constant 6.250000e-02 : f32
    %193 = vector.broadcast %cst_92 : f32 to vector<1x64xf32>
    %194 = arith.mulf %192, %193 : vector<1x64xf32>
    %195 = arith.mulf %189, %189 : vector<1x64xf32>
    %196 = arith.subf %194, %195 : vector<1x64xf32>
    %cst_93 = arith.constant 0.000000e+00 : f32
    %197 = vector.broadcast %cst_93 : f32 to vector<1x64xf32>
    %198 = arith.maximumf %196, %197 : vector<1x64xf32>
    %cst_94 = arith.constant 9.99999974E-6 : f32
    %199 = vector.broadcast %cst_94 : f32 to vector<1x64xf32>
    %200 = arith.addf %198, %199 : vector<1x64xf32>
    %201 = math.rsqrt %200 : vector<1x64xf32>
    %202 = arith.mulf %163, %201 : vector<1x64xf32>
    %203 = arith.mulf %189, %202 : vector<1x64xf32>
    %204 = arith.subf %164, %203 : vector<1x64xf32>
    %205 = vector.broadcast %202 : vector<1x64xf32> to vector<16x64xf32>
    %206 = arith.mulf %185, %205 : vector<16x64xf32>
    %207 = vector.broadcast %204 : vector<1x64xf32> to vector<16x64xf32>
    %208 = arith.addf %206, %207 : vector<16x64xf32>
    %cst_95 = arith.constant 0.000000e+00 : f32
    %209 = vector.broadcast %cst_95 : f32 to vector<1x64xf32>
    %c0_96 = arith.constant 0 : index
    %c0_97 = arith.constant 0 : index
    %210 = vector.load %arg14[%c0_96, %c0_97] : memref<18x64xf32, #tpu.memory_space<vmem>>, vector<1x64xf32>
    tpu.vector_store %arg14[%c0_96, %c0_97], %209 {strides = array<i32>} : memref<18x64xf32, #tpu.memory_space<vmem>>, vector<1x64xf32>,
    %211 = vector.extract_strided_slice %208 {offsets = [0, 0], sizes = [8, 64], strides = [1, 1]} : vector<16x64xf32> to vector<8x64xf32>
    %c1_98 = arith.constant 1 : index
    %c0_99 = arith.constant 0 : index
    %212 = vector.load %arg14[%c1_98, %c0_99] : memref<18x64xf32, #tpu.memory_space<vmem>>, vector<8x64xf32>
    tpu.vector_store %arg14[%c1_98, %c0_99], %211 {strides = array<i32>} : memref<18x64xf32, #tpu.memory_space<vmem>>, vector<8x64xf32>,
    %c9 = arith.constant 9 : index
    %c0_100 = arith.constant 0 : index
    %213 = vector.load %arg14[%c9, %c0_100] : memref<18x64xf32, #tpu.memory_space<vmem>>, vector<1x64xf32>
    tpu.vector_store %arg14[%c9, %c0_100], %209 {strides = array<i32>} : memref<18x64xf32, #tpu.memory_space<vmem>>, vector<1x64xf32>,
    %214 = vector.extract_strided_slice %208 {offsets = [8, 0], sizes = [8, 64], strides = [1, 1]} : vector<16x64xf32> to vector<8x64xf32>
    %c10 = arith.constant 10 : index
    %c0_101 = arith.constant 0 : index
    %215 = vector.load %arg14[%c10, %c0_101] : memref<18x64xf32, #tpu.memory_space<vmem>>, vector<8x64xf32>
    tpu.vector_store %arg14[%c10, %c0_101], %214 {strides = array<i32>} : memref<18x64xf32, #tpu.memory_space<vmem>>, vector<8x64xf32>,
    %c0_102 = arith.constant 0 : index
    %c0_103 = arith.constant 0 : index
    %216 = tpu.strided_load %arg14[%c0_102, %c0_103] {strides = array<i32: 2, 1>} : memref<18x64xf32, #tpu.memory_space<vmem>>, vector<4x64xf32>
    %c1_104 = arith.constant 1 : index
    %c0_105 = arith.constant 0 : index
    %217 = tpu.strided_load %arg14[%c1_104, %c0_105] {strides = array<i32: 2, 1>} : memref<18x64xf32, #tpu.memory_space<vmem>>, vector<4x64xf32>
    %c2_106 = arith.constant 2 : index
    %c0_107 = arith.constant 0 : index
    %218 = tpu.strided_load %arg14[%c2_106, %c0_107] {strides = array<i32: 2, 1>} : memref<18x64xf32, #tpu.memory_space<vmem>>, vector<4x64xf32>
    %219 = tpu.concatenate %216, %217, %218 in 1 : vector<4x64xf32>, vector<4x64xf32>, vector<4x64xf32> -> vector<4x192xf32>
    %c9_108 = arith.constant 9 : index
    %c0_109 = arith.constant 0 : index
    %220 = tpu.strided_load %arg14[%c9_108, %c0_109] {strides = array<i32: 2, 1>} : memref<18x64xf32, #tpu.memory_space<vmem>>, vector<4x64xf32>
    %c10_110 = arith.constant 10 : index
    %c0_111 = arith.constant 0 : index
    %221 = tpu.strided_load %arg14[%c10_110, %c0_111] {strides = array<i32: 2, 1>} : memref<18x64xf32, #tpu.memory_space<vmem>>, vector<4x64xf32>
    %c11 = arith.constant 11 : index
    %c0_112 = arith.constant 0 : index
    %222 = tpu.strided_load %arg14[%c11, %c0_112] {strides = array<i32: 2, 1>} : memref<18x64xf32, #tpu.memory_space<vmem>>, vector<4x64xf32>
    %223 = tpu.concatenate %220, %221, %222 in 1 : vector<4x64xf32>, vector<4x64xf32>, vector<4x64xf32> -> vector<4x192xf32>
    %224 = tpu.concatenate %219, %223 in 0 : vector<4x192xf32>, vector<4x192xf32> -> vector<8x192xf32>
    %c0_113 = arith.constant 0 : index
    %c0_114 = arith.constant 0 : index
    %225 = vector.load %arg8[%c0_113, %c0_114] : memref<3x128xf32, #tpu.memory_space<vmem>>, vector<3x128xf32>
    %226 = vector.extract_strided_slice %225 {offsets = [0, 0], sizes = [1, 128], strides = [1, 1]} : vector<3x128xf32> to vector<1x128xf32>
    %227 = vector.extract_strided_slice %225 {offsets = [1, 0], sizes = [1, 128], strides = [1, 1]} : vector<3x128xf32> to vector<1x128xf32>
    %228 = vector.extract_strided_slice %225 {offsets = [2, 0], sizes = [1, 128], strides = [1, 1]} : vector<3x128xf32> to vector<1x128xf32>
    %229 = arith.truncf %224 : vector<8x192xf32> to vector<8x192xbf16>
    %230 = arith.extf %229 : vector<8x192xbf16> to vector<8x192xf32>
    %231 = arith.subf %224, %230 : vector<8x192xf32>
    %232 = arith.truncf %231 : vector<8x192xf32> to vector<8x192xbf16>
    %c0_115 = arith.constant 0 : index
    %c0_116 = arith.constant 0 : index
    %233 = vector.load %arg7[%c0_115, %c0_116] : memref<384x128xbf16, #tpu.memory_space<vmem>>, vector<192x128xbf16>
    %c192 = arith.constant 192 : index
    %c0_117 = arith.constant 0 : index
    %234 = vector.load %arg7[%c192, %c0_117] : memref<384x128xbf16, #tpu.memory_space<vmem>>, vector<192x128xbf16>
    %cst_118 = arith.constant dense<0.000000e+00> : vector<8x128xf32>
    %235 = tpu.matmul %229, %233, %cst_118 {dimension_numbers = #tpu.dot_dimension_numbers<[1], [0], [0], [1], [0, 0, 1, 1], [], []>} : vector<8x192xbf16>, vector<192x128xbf16>, vector<8x128xf32> -> vector<8x128xf32>
    %cst_119 = arith.constant dense<0.000000e+00> : vector<8x128xf32>
    %236 = tpu.matmul %232, %233, %cst_119 {dimension_numbers = #tpu.dot_dimension_numbers<[1], [0], [0], [1], [0, 0, 1, 1], [], []>} : vector<8x192xbf16>, vector<192x128xbf16>, vector<8x128xf32> -> vector<8x128xf32>
    %237 = arith.addf %235, %236 : vector<8x128xf32>
    %cst_120 = arith.constant dense<0.000000e+00> : vector<8x128xf32>
    %238 = tpu.matmul %229, %234, %cst_120 {dimension_numbers = #tpu.dot_dimension_numbers<[1], [0], [0], [1], [0, 0, 1, 1], [], []>} : vector<8x192xbf16>, vector<192x128xbf16>, vector<8x128xf32> -> vector<8x128xf32>
    %239 = arith.addf %237, %238 : vector<8x128xf32>
    %240 = vector.broadcast %226 : vector<1x128xf32> to vector<8x128xf32>
    %241 = arith.addf %239, %240 : vector<8x128xf32>
    %cst_121 = arith.constant 0.000000e+00 : f32
    %242 = vector.broadcast %cst_121 : f32 to vector<8x128xf32>
    %243 = arith.cmpf ogt, %241, %242 : vector<8x128xf32>
    %cst_122 = arith.constant 0.000000e+00 : f32
    %244 = vector.broadcast %cst_122 : f32 to vector<8x128xf32>
    %245 = arith.minimumf %241, %244 : vector<8x128xf32>
    %246 = math.exp %245 : vector<8x128xf32>
    %cst_123 = arith.constant 1.000000e+00 : f32
    %247 = vector.broadcast %cst_123 : f32 to vector<8x128xf32>
    %248 = arith.subf %246, %247 : vector<8x128xf32>
    %249 = arith.select %243, %241, %248 : vector<8x128xi1>, vector<8x128xf32>
    %cst_124 = arith.constant dense<0.000000e+00> : vector<128xf32>
    %250 = vector.multi_reduction <add>, %249, %cst_124 [0] : vector<8x128xf32> to vector<128xf32>
    %251 = vector.shape_cast %250 : vector<128xf32> to vector<1x128xf32>
    %cst_125 = arith.constant 1.250000e-01 : f32
    %252 = vector.broadcast %cst_125 : f32 to vector<1x128xf32>
    %253 = arith.mulf %251, %252 : vector<1x128xf32>
    %254 = arith.mulf %249, %249 : vector<8x128xf32>
    %cst_126 = arith.constant dense<0.000000e+00> : vector<128xf32>
    %255 = vector.multi_reduction <add>, %254, %cst_126 [0] : vector<8x128xf32> to vector<128xf32>
    %256 = vector.shape_cast %255 : vector<128xf32> to vector<1x128xf32>
    %cst_127 = arith.constant 1.250000e-01 : f32
    %257 = vector.broadcast %cst_127 : f32 to vector<1x128xf32>
    %258 = arith.mulf %256, %257 : vector<1x128xf32>
    %259 = arith.mulf %253, %253 : vector<1x128xf32>
    %260 = arith.subf %258, %259 : vector<1x128xf32>
    %cst_128 = arith.constant 0.000000e+00 : f32
    %261 = vector.broadcast %cst_128 : f32 to vector<1x128xf32>
    %262 = arith.maximumf %260, %261 : vector<1x128xf32>
    %cst_129 = arith.constant 9.99999974E-6 : f32
    %263 = vector.broadcast %cst_129 : f32 to vector<1x128xf32>
    %264 = arith.addf %262, %263 : vector<1x128xf32>
    %265 = math.rsqrt %264 : vector<1x128xf32>
    %266 = arith.mulf %227, %265 : vector<1x128xf32>
    %267 = arith.mulf %253, %266 : vector<1x128xf32>
    %268 = arith.subf %228, %267 : vector<1x128xf32>
    %269 = vector.broadcast %266 : vector<1x128xf32> to vector<8x128xf32>
    %270 = arith.mulf %249, %269 : vector<8x128xf32>
    %271 = vector.broadcast %268 : vector<1x128xf32> to vector<8x128xf32>
    %272 = arith.addf %270, %271 : vector<8x128xf32>
    %cst_130 = arith.constant 0.000000e+00 : f32
    %273 = vector.broadcast %cst_130 : f32 to vector<1x128xf32>
    %c0_131 = arith.constant 0 : index
    %c0_132 = arith.constant 0 : index
    %274 = vector.load %arg15[%c0_131, %c0_132] : memref<10x128xf32, #tpu.memory_space<vmem>>, vector<1x128xf32>
    tpu.vector_store %arg15[%c0_131, %c0_132], %273 {strides = array<i32>} : memref<10x128xf32, #tpu.memory_space<vmem>>, vector<1x128xf32>,
    %275 = vector.extract_strided_slice %272 {offsets = [0, 0], sizes = [4, 128], strides = [1, 1]} : vector<8x128xf32> to vector<4x128xf32>
    %c1_133 = arith.constant 1 : index
    %c0_134 = arith.constant 0 : index
    %276 = vector.load %arg15[%c1_133, %c0_134] : memref<10x128xf32, #tpu.memory_space<vmem>>, vector<4x128xf32>
    tpu.vector_store %arg15[%c1_133, %c0_134], %275 {strides = array<i32>} : memref<10x128xf32, #tpu.memory_space<vmem>>, vector<4x128xf32>,
    %c5_135 = arith.constant 5 : index
    %c0_136 = arith.constant 0 : index
    %277 = vector.load %arg15[%c5_135, %c0_136] : memref<10x128xf32, #tpu.memory_space<vmem>>, vector<1x128xf32>
    tpu.vector_store %arg15[%c5_135, %c0_136], %273 {strides = array<i32>} : memref<10x128xf32, #tpu.memory_space<vmem>>, vector<1x128xf32>,
    %278 = vector.extract_strided_slice %272 {offsets = [4, 0], sizes = [4, 128], strides = [1, 1]} : vector<8x128xf32> to vector<4x128xf32>
    %c6 = arith.constant 6 : index
    %c0_137 = arith.constant 0 : index
    %279 = vector.load %arg15[%c6, %c0_137] : memref<10x128xf32, #tpu.memory_space<vmem>>, vector<4x128xf32>
    tpu.vector_store %arg15[%c6, %c0_137], %278 {strides = array<i32>} : memref<10x128xf32, #tpu.memory_space<vmem>>, vector<4x128xf32>,
    %c0_138 = arith.constant 0 : index
    %c0_139 = arith.constant 0 : index
    %280 = tpu.strided_load %arg15[%c0_138, %c0_139] {strides = array<i32: 2, 1>} : memref<10x128xf32, #tpu.memory_space<vmem>>, vector<2x128xf32>
    %c1_140 = arith.constant 1 : index
    %c0_141 = arith.constant 0 : index
    %281 = tpu.strided_load %arg15[%c1_140, %c0_141] {strides = array<i32: 2, 1>} : memref<10x128xf32, #tpu.memory_space<vmem>>, vector<2x128xf32>
    %c2_142 = arith.constant 2 : index
    %c0_143 = arith.constant 0 : index
    %282 = tpu.strided_load %arg15[%c2_142, %c0_143] {strides = array<i32: 2, 1>} : memref<10x128xf32, #tpu.memory_space<vmem>>, vector<2x128xf32>
    %283 = tpu.concatenate %280, %281, %282 in 1 : vector<2x128xf32>, vector<2x128xf32>, vector<2x128xf32> -> vector<2x384xf32>
    %c5_144 = arith.constant 5 : index
    %c0_145 = arith.constant 0 : index
    %284 = tpu.strided_load %arg15[%c5_144, %c0_145] {strides = array<i32: 2, 1>} : memref<10x128xf32, #tpu.memory_space<vmem>>, vector<2x128xf32>
    %c6_146 = arith.constant 6 : index
    %c0_147 = arith.constant 0 : index
    %285 = tpu.strided_load %arg15[%c6_146, %c0_147] {strides = array<i32: 2, 1>} : memref<10x128xf32, #tpu.memory_space<vmem>>, vector<2x128xf32>
    %c7 = arith.constant 7 : index
    %c0_148 = arith.constant 0 : index
    %286 = tpu.strided_load %arg15[%c7, %c0_148] {strides = array<i32: 2, 1>} : memref<10x128xf32, #tpu.memory_space<vmem>>, vector<2x128xf32>
    %287 = tpu.concatenate %284, %285, %286 in 1 : vector<2x128xf32>, vector<2x128xf32>, vector<2x128xf32> -> vector<2x384xf32>
    %288 = tpu.concatenate %283, %287 in 0 : vector<2x384xf32>, vector<2x384xf32> -> vector<4x384xf32>
    %c0_149 = arith.constant 0 : index
    %c0_150 = arith.constant 0 : index
    %289 = vector.load %arg10[%c0_149, %c0_150] : memref<3x256xf32, #tpu.memory_space<vmem>>, vector<3x256xf32>
    %290 = vector.extract_strided_slice %289 {offsets = [0, 0], sizes = [1, 256], strides = [1, 1]} : vector<3x256xf32> to vector<1x256xf32>
    %291 = vector.extract_strided_slice %289 {offsets = [1, 0], sizes = [1, 256], strides = [1, 1]} : vector<3x256xf32> to vector<1x256xf32>
    %292 = vector.extract_strided_slice %289 {offsets = [2, 0], sizes = [1, 256], strides = [1, 1]} : vector<3x256xf32> to vector<1x256xf32>
    %293 = arith.truncf %288 : vector<4x384xf32> to vector<4x384xbf16>
    %294 = arith.extf %293 : vector<4x384xbf16> to vector<4x384xf32>
    %295 = arith.subf %288, %294 : vector<4x384xf32>
    %296 = arith.truncf %295 : vector<4x384xf32> to vector<4x384xbf16>
    %c0_151 = arith.constant 0 : index
    %c0_152 = arith.constant 0 : index
    %297 = vector.load %arg9[%c0_151, %c0_152] : memref<768x256xbf16, #tpu.memory_space<vmem>>, vector<384x256xbf16>
    %c384 = arith.constant 384 : index
    %c0_153 = arith.constant 0 : index
    %298 = vector.load %arg9[%c384, %c0_153] : memref<768x256xbf16, #tpu.memory_space<vmem>>, vector<384x256xbf16>
    %cst_154 = arith.constant dense<0.000000e+00> : vector<4x256xf32>
    %299 = tpu.matmul %293, %297, %cst_154 {dimension_numbers = #tpu.dot_dimension_numbers<[1], [0], [0], [1], [0, 0, 1, 1], [], []>} : vector<4x384xbf16>, vector<384x256xbf16>, vector<4x256xf32> -> vector<4x256xf32>
    %cst_155 = arith.constant dense<0.000000e+00> : vector<4x256xf32>
    %300 = tpu.matmul %296, %297, %cst_155 {dimension_numbers = #tpu.dot_dimension_numbers<[1], [0], [0], [1], [0, 0, 1, 1], [], []>} : vector<4x384xbf16>, vector<384x256xbf16>, vector<4x256xf32> -> vector<4x256xf32>
    %301 = arith.addf %299, %300 : vector<4x256xf32>
    %cst_156 = arith.constant dense<0.000000e+00> : vector<4x256xf32>
    %302 = tpu.matmul %293, %298, %cst_156 {dimension_numbers = #tpu.dot_dimension_numbers<[1], [0], [0], [1], [0, 0, 1, 1], [], []>} : vector<4x384xbf16>, vector<384x256xbf16>, vector<4x256xf32> -> vector<4x256xf32>
    %303 = arith.addf %301, %302 : vector<4x256xf32>
    %304 = vector.broadcast %290 : vector<1x256xf32> to vector<4x256xf32>
    %305 = arith.addf %303, %304 : vector<4x256xf32>
    %cst_157 = arith.constant 0.000000e+00 : f32
    %306 = vector.broadcast %cst_157 : f32 to vector<4x256xf32>
    %307 = arith.cmpf ogt, %305, %306 : vector<4x256xf32>
    %cst_158 = arith.constant 0.000000e+00 : f32
    %308 = vector.broadcast %cst_158 : f32 to vector<4x256xf32>
    %309 = arith.minimumf %305, %308 : vector<4x256xf32>
    %310 = math.exp %309 : vector<4x256xf32>
    %cst_159 = arith.constant 1.000000e+00 : f32
    %311 = vector.broadcast %cst_159 : f32 to vector<4x256xf32>
    %312 = arith.subf %310, %311 : vector<4x256xf32>
    %313 = arith.select %307, %305, %312 : vector<4x256xi1>, vector<4x256xf32>
    %cst_160 = arith.constant dense<0.000000e+00> : vector<256xf32>
    %314 = vector.multi_reduction <add>, %313, %cst_160 [0] : vector<4x256xf32> to vector<256xf32>
    %315 = vector.shape_cast %314 : vector<256xf32> to vector<1x256xf32>
    %cst_161 = arith.constant 2.500000e-01 : f32
    %316 = vector.broadcast %cst_161 : f32 to vector<1x256xf32>
    %317 = arith.mulf %315, %316 : vector<1x256xf32>
    %318 = arith.mulf %313, %313 : vector<4x256xf32>
    %cst_162 = arith.constant dense<0.000000e+00> : vector<256xf32>
    %319 = vector.multi_reduction <add>, %318, %cst_162 [0] : vector<4x256xf32> to vector<256xf32>
    %320 = vector.shape_cast %319 : vector<256xf32> to vector<1x256xf32>
    %cst_163 = arith.constant 2.500000e-01 : f32
    %321 = vector.broadcast %cst_163 : f32 to vector<1x256xf32>
    %322 = arith.mulf %320, %321 : vector<1x256xf32>
    %323 = arith.mulf %317, %317 : vector<1x256xf32>
    %324 = arith.subf %322, %323 : vector<1x256xf32>
    %cst_164 = arith.constant 0.000000e+00 : f32
    %325 = vector.broadcast %cst_164 : f32 to vector<1x256xf32>
    %326 = arith.maximumf %324, %325 : vector<1x256xf32>
    %cst_165 = arith.constant 9.99999974E-6 : f32
    %327 = vector.broadcast %cst_165 : f32 to vector<1x256xf32>
    %328 = arith.addf %326, %327 : vector<1x256xf32>
    %329 = math.rsqrt %328 : vector<1x256xf32>
    %330 = arith.mulf %291, %329 : vector<1x256xf32>
    %331 = arith.mulf %317, %330 : vector<1x256xf32>
    %332 = arith.subf %292, %331 : vector<1x256xf32>
    %333 = vector.broadcast %330 : vector<1x256xf32> to vector<4x256xf32>
    %334 = arith.mulf %313, %333 : vector<4x256xf32>
    %335 = vector.broadcast %332 : vector<1x256xf32> to vector<4x256xf32>
    %336 = arith.addf %334, %335 : vector<4x256xf32>
    %c0_166 = arith.constant 0 : index
    %c0_167 = arith.constant 0 : index
    %337 = vector.load %arg11[%c0_166, %c0_167] : memref<4x256xf32, #tpu.memory_space<vmem>>, vector<4x256xf32>
    tpu.vector_store %arg11[%c0_166, %c0_167], %336 {strides = array<i32>} : memref<4x256xf32, #tpu.memory_space<vmem>>, vector<4x256xf32>,
    return
  }
}

</mosaic_0001>

<bundles_post_ra>
// kernel: encoder_forward.1
= control target key start
LH: loop header
LB: loop body
LE: loop exit
PB: predicated region body
PF: predicated region fallthrough
CT: control target
= control target key end

     0   :  { %s3400_s21 = smov 2   ;;  %s3401_s22 = smov 4   ;;  %v3402_v16 = vmov 1   ;;  %v3403_v17 = vmov 0   ;;  %vm94_vm0 = vcmask 15360   ;;  %vm99_vm1 = vcmask 31744   ;;  %s4917_s0 = inlined_call_operand.vmem [shape: f32[130,2], index: 0, kind: input, shape index: {}]   ;;  %s4918_s1 = inlined_call_operand.vmem [shape: f32[6,16], index: 1, kind: input, shape index: {}]   ;;  %s4919_s2 = inlined_call_operand.vmem [shape: f32[3,16], index: 2, kind: input, shape index: {}]   ;;  %s4920_s3 = inlined_call_operand.vmem [shape: bf16[96,32], index: 3, kind: input, shape index: {}]   ;;  %s4921_s4 = inlined_call_operand.vmem [shape: f32[3,32], index: 4, kind: input, shape index: {}]   ;;  %s4922_s5 = inlined_call_operand.vmem [shape: bf16[192,64], index: 5, kind: input, shape index: {}]   ;;  %s4923_s6 = inlined_call_operand.vmem [shape: f32[3,64], index: 6, kind: input, shape index: {}]   ;;  %s4924_s7 = inlined_call_operand.vmem [shape: bf16[384,128], index: 7, kind: input, shape index: {}]   ;;  %s4925_s8 = inlined_call_operand.vmem [shape: f32[3,128], index: 8, kind: input, shape index: {}]   ;;  %s4926_s9 = inlined_call_operand.vmem [shape: bf16[768,256], index: 9, kind: input, shape index: {}]   ;;  %s4927_s10 = inlined_call_operand.vmem [shape: f32[3,256], index: 10, kind: input, shape index: {}]   ;;  %s4928_s11 = inlined_call_operand.vmem [shape: f32[4,256], index: 11, kind: output, shape index: {}]  }
   0x1   :  { %v2558_v0 = vld [vmem:[%s4917_s0 + $0x1] ss:$2 sm:$0xff]  ;;  %v2562_v1 = vld [vmem:[%s4917_s0 + $0x2] ss:$2 sm:$0xff]  ;;  %v2559_v3 = vld [vmem:[%s4917_s0 + $0x11] ss:$2 sm:$0xff]  ;;  %3311 = vset.pattern.permute.xlu0 %v3402_v16  ;;  %3309 = vset.pattern.permute.xlu1 %v3403_v17 }
   0x2   :  { %66 = vrot.lane.b32.xlu0 %v2558_v0, %s3400_s21  ;;  %82 = vrot.lane.b32.xlu1 %v2562_v1, %s3401_s22  ;;  %v2560_v2 = vld [vmem:[%s4917_s0 + $0x21] ss:$2 sm:$0xff]  ;;  %v2563_v4 = vld [vmem:[%s4917_s0 + $0x12] ss:$2 sm:$0xff]  ;;  %v3404_v30 = vmov 2   ;;  %v3405_v37 = vmov 4  }
   0x3   :  { %70 = vrot.lane.b32.xlu2 %v2560_v2, %s3400_s21  ;;  %v2564_v5 = vld [vmem:[%s4917_s0 + $0x22] ss:$2 sm:$0xff]  ;;  %v2561_v6 = vld [vmem:[%s4917_s0 + $0x31] ss:$2 sm:$0xff]  ;;  %v2565_v7 = vld [vmem:[%s4917_s0 + $0x32] ss:$2 sm:$0xff] }
   0x4   :  { %v2570_v8 = vld [vmem:[%s4917_s0 + $0x42] ss:$2 sm:$0xff]  ;;  %v2574_v9 = vld [vmem:[%s4917_s0 + $0x43] ss:$2 sm:$0xff]  ;;  %v2571_v10 = vld [vmem:[%s4917_s0 + $0x52] ss:$2 sm:$0xff]  ;;  %3310 = vset.pattern.permute.xlu2 %v3403_v17 }
   0x5   :  { %v2575_v11 = vld [vmem:[%s4917_s0 + $0x53] ss:$2 sm:$0xff]  ;;  %v2572_v12 = vld [vmem:[%s4917_s0 + $0x62] ss:$2 sm:$0xff]  ;;  %v2576_v13 = vld [vmem:[%s4917_s0 + $0x63] ss:$2 sm:$0xff] }
   0x6   :  { %v2573_v14 = vld [vmem:[%s4917_s0 + $0x72] ss:$2 sm:$0xff]  ;;  %v2577_v15 = vld [vmem:[%s4917_s0 + $0x73] ss:$2 sm:$0xff]  ;;  %v3406_v60 = vmov 3   ;;  %v3407_v61 = vmov 5  }
   0x7   :  { %v39_v19 = vld [vmem:[%s4917_s0] ss:$2 sm:$0xff]  ;;  %v2555_v24 = vld [vmem:[%s4917_s0 + $0x10] ss:$2 sm:$0xff]  ;;  %v2567_v39 = vld [vmem:[%s4917_s0 + $0x51] ss:$2 sm:$0xff] }
   0x8   :  { %v2556_v31 = vld [vmem:[%s4917_s0 + $0x20] ss:$2 sm:$0xff]  ;;  %v2557_v38 = vld [vmem:[%s4917_s0 + $0x30] ss:$2 sm:$0xff]  ;;  %v2568_v47 = vld [vmem:[%s4917_s0 + $0x61] ss:$2 sm:$0xff] }
   0x9   :  { %v2569_v52 = vld [vmem:[%s4917_s0 + $0x71] ss:$2 sm:$0xff]  ;;  %v2566_v55 = vld [vmem:[%s4917_s0 + $0x41] ss:$2 sm:$0xff]  ;;  %v3649_v1 = vld [vmem:[%s4918_s1 + $0x2] ss:$0 sm:$0xff] }
   0xa   :  { %68 = vrot.lane.b32.xlu0 %v2559_v3, %s3400_s21  ;;  %84 = vrot.lane.b32.xlu1 %v2563_v4, %s3401_s22  ;;  %v3644_v0 = vld [vmem:[%s4918_s1 + $0x1] ss:$0 sm:$0xff]  ;;  %v3654_v2 = vld [vmem:[%s4918_s1] ss:$0 sm:$0xff]  ;;  %vm526_vm5 = vcmask 130048   ;;  %vm617_vm11 = vcmask 122880  }
   0xb   :  { %86 = vrot.lane.b32.xlu2 %v2564_v5, %s3401_s22  ;;  %vm657_vm15 = vcmask 261120  }
  0x12   :  { %72 = vrot.lane.b32.xlu0 %v2561_v6, %s3400_s21  ;;  %88 = vrot.lane.b32.xlu1 %v2565_v7, %s3401_s22 }
  0x13   :  { %132 = vrot.lane.b32.xlu2 %v2570_v8, %s3400_s21 }
  0x1a   :  { %148 = vrot.lane.b32.xlu0 %v2574_v9, %s3401_s22  ;;  %134 = vrot.lane.b32.xlu1 %v2571_v10, %s3400_s21 }
  0x1b   :  { %150 = vrot.lane.b32.xlu2 %v2575_v11, %s3401_s22 }
  0x22   :  { %136 = vrot.lane.b32.xlu0 %v2572_v12, %s3400_s21  ;;  %152 = vrot.lane.b32.xlu1 %v2576_v13, %s3401_s22 }
  0x23   :  { %138 = vrot.lane.b32.xlu2 %v2573_v14, %s3400_s21 }
  0x2a   :  { %154 = vrot.lane.b32.xlu0 %v2577_v15, %s3401_s22 }
  0x5d   :  { %v71_v18 = vpop.permute.xlu2 %70 }
  0x5e   :  { %v97_v32 = vsel %vm94_vm0, %v2556_v31, %v71_v18 }
  0x65   :  { %v87_v25 = vpop.permute.xlu2 %86 }
  0x66   :  { %v3549_v36 = vsel %vm99_vm1, %v97_v32, %v87_v25 }
  0x6d   :  { %v133_v33 = vpop.permute.xlu2 %132 }
  0x6e   :  { %v160_v58 = vsel %vm94_vm0, %v2566_v55, %v133_v33 }
  0x74   :  { %v67_v20 = vpop.permute.xlu0 %66  ;;  %v83_v21 = vpop.permute.xlu1 %82 }
  0x75   :  { %v95_v22 = vsel %vm94_vm0, %v39_v19, %v67_v20  ;;  %v151_v44 = vpop.permute.xlu2 %150 }
  0x76   :  { %v3528_v23 = vsel %vm99_vm1, %v95_v22, %v83_v21 }
  0x77   :  { %221 = vperm.xlu0 %3311, %v3528_v23   ;;  %172 = vperm.xlu1 %3309, %v3528_v23  }
  0x7c   :  { %v69_v26 = vpop.permute.xlu0 %68  ;;  %v85_v27 = vpop.permute.xlu1 %84 }
  0x7d   :  { %v96_v28 = vsel %vm94_vm0, %v2555_v24, %v69_v26  ;;  %v139_v53 = vpop.permute.xlu2 %138 }
  0x7e   :  { %v3537_v29 = vsel %vm99_vm1, %v96_v28, %v85_v27  ;;  %v163_v54 = vsel %vm94_vm0, %v2569_v52, %v139_v53 }
  0x7f   :  { %177 = vperm.xlu2 %3310, %v3537_v29   ;;  %3314 = vset.pattern.permute.xlu0 %v3404_v30 }
  0x80   :  { %3312 = vset.pattern.permute.xlu1 %v3402_v16  ;;  %275 = vperm.xlu0 %3314, %v3537_v29  }
  0x81   :  { %225 = vperm.xlu1 %3312, %v3537_v29  }
  0x84   :  { %v73_v34 = vpop.permute.xlu0 %72  ;;  %v89_v35 = vpop.permute.xlu1 %88 }
  0x85   :  { %v98_v40 = vsel %vm94_vm0, %v2557_v38, %v73_v34 }
  0x86   :  { %v3567_v46 = vsel %vm99_vm1, %v98_v40, %v89_v35 }
  0x87   :  { %182 = vperm.xlu2 %3310, %v3549_v36  }
  0x88   :  { %3323 = vset.pattern.permute.xlu0 %v3405_v37 }
  0x89   :  { %229 = vperm.xlu1 %3312, %v3549_v36   ;;  %371 = vperm.xlu0 %3323, %v3528_v23  }
  0x8c   :  { %v149_v41 = vpop.permute.xlu0 %148  ;;  %v135_v42 = vpop.permute.xlu1 %134 }
  0x8d   :  { %v161_v43 = vsel %vm94_vm0, %v2567_v39, %v135_v42  ;;  %v3600_v59 = vsel %vm99_vm1, %v160_v58, %v149_v41 }
  0x8e   :  { %v3564_v45 = vsel %vm99_vm1, %v161_v43, %v151_v44 }
  0x8f   :  { %3313 = vset.pattern.permute.xlu2 %v3404_v30 }
  0x90   :  { %271 = vperm.xlu2 %3313, %v3528_v23  }
  0x91   :  { %3315 = vset.pattern.permute.xlu1 %v3403_v17  ;;  %3332 = vset.pattern.permute.xlu0 %v3402_v16 }
  0x92   :  { %187 = vperm.xlu1 %3315, %v3567_v46  }
  0x94   :  { %v137_v48 = vpop.permute.xlu0 %136  ;;  %v153_v49 = vpop.permute.xlu1 %152 }
  0x95   :  { %v162_v50 = vsel %vm94_vm0, %v2568_v47, %v137_v48  ;;  %vm737_vm0 = vcmask 392192  }
  0x96   :  { %v3579_v51 = vsel %vm99_vm1, %v162_v50, %v153_v49 }
  0x97   :  { %245 = vperm.xlu0 %3332, %v3579_v51  }
  0x98   :  { %3316 = vset.pattern.permute.xlu2 %v3402_v16 }
  0x99   :  { %233 = vperm.xlu2 %3316, %v3567_v46  }
  0x9a   :  { %3317 = vset.pattern.permute.xlu1 %v3404_v30 }
  0x9b   :  { %279 = vperm.xlu1 %3317, %v3549_v36  }
  0x9c   :  { %v155_v56 = vpop.permute.xlu0 %154 }
  0x9d   :  { %v3594_v57 = vsel %vm99_vm1, %v163_v54, %v155_v56  ;;  %v3710_v54 = vld [vmem:[%s4918_s1 + $0x4] ss:$0 sm:$0xff] }
  0x9f   :  { %3337 = vset.pattern.permute.xlu0 %v3403_v17 }
  0xa0   :  { %207 = vperm.xlu0 %3337, %v3594_v57  }
  0xa1   :  { %3318 = vset.pattern.permute.xlu2 %v3406_v60 }
  0xa2   :  { %321 = vperm.xlu2 %3318, %v3528_v23  }
  0xa3   :  { %3319 = vset.pattern.permute.xlu1 %v3403_v17 }
  0xa4   :  { %192 = vperm.xlu1 %3319, %v3600_v59  }
  0xa8   :  { %3338 = vset.pattern.permute.xlu0 %v3406_v60 }
  0xa9   :  { %325 = vperm.xlu0 %3338, %v3537_v29  }
  0xaa   :  { %3320 = vset.pattern.permute.xlu2 %v3402_v16 }
  0xab   :  { %237 = vperm.xlu2 %3320, %v3600_v59  }
  0xac   :  { %3321 = vset.pattern.permute.xlu1 %v3404_v30 }
  0xad   :  { %283 = vperm.xlu1 %3321, %v3567_v46  }
  0xb1   :  { %333 = vperm.xlu0 %3338, %v3567_v46  }
  0xb3   :  { %3322 = vset.pattern.permute.xlu2 %v3406_v60 }
  0xb4   :  { %329 = vperm.xlu2 %3322, %v3549_v36  }
  0xb5   :  { %3324 = vset.pattern.permute.xlu1 %v3405_v37 }
  0xb6   :  { %375 = vperm.xlu1 %3324, %v3537_v29  }
  0xb9   :  { %349 = vperm.xlu0 %3338, %v3594_v57  }
  0xbc   :  { %3325 = vset.pattern.permute.xlu2 %v3403_v17 }
  0xbd   :  { %197 = vperm.xlu2 %3325, %v3564_v45  }
  0xbe   :  { %3326 = vset.pattern.permute.xlu1 %v3402_v16 }
  0xbf   :  { %241 = vperm.xlu1 %3326, %v3564_v45  }
  0xc1   :  { %3347 = vset.pattern.permute.xlu0 %v3407_v61 }
  0xc2   :  { %433 = vperm.xlu0 %3347, %v3567_v46  }
  0xc5   :  { %3327 = vset.pattern.permute.xlu2 %v3404_v30 }
  0xc6   :  { %287 = vperm.xlu2 %3327, %v3600_v59  }
  0xc7   :  { %3328 = vset.pattern.permute.xlu1 %v3405_v37 }
  0xc8   :  { %379 = vperm.xlu1 %3328, %v3549_v36  }
  0xca   :  { %449 = vperm.xlu0 %3347, %v3594_v57  }
  0xce   :  { %3329 = vset.pattern.permute.xlu2 %v3407_v61 }
  0xcf   :  { %421 = vperm.xlu2 %3329, %v3528_v23  }
  0xd0   :  { %3330 = vset.pattern.permute.xlu1 %v3407_v61 }
  0xd1   :  { %425 = vperm.xlu1 %3330, %v3537_v29  }
  0xd7   :  { %3331 = vset.pattern.permute.xlu2 %v3403_v17 }
  0xd8   :  { %202 = vperm.xlu2 %3331, %v3579_v51  }
  0xd9   :  { %3333 = vset.pattern.permute.xlu1 %v3404_v30  ;;  %v178_v62 = vpop.permute.xlu2 %177 }
  0xda   :  { %291 = vperm.xlu1 %3333, %v3564_v45   ;;  %v212_v13 = vmul.f32 %v3654_v2, %v178_v62 }
  0xe0   :  { %3334 = vset.pattern.permute.xlu2 %v3406_v60 }
  0xe1   :  { %v183_v63 = vpop.permute.xlu2 %182  ;;  %337 = vperm.xlu2 %3334, %v3600_v59  }
  0xe2   :  { %3335 = vset.pattern.permute.xlu1 %v3405_v37  ;;  %v213_v18 = vmul.f32 %v3654_v2, %v183_v63 }
  0xe3   :  { %383 = vperm.xlu1 %3335, %v3567_v46  }
  0xe9   :  { %3336 = vset.pattern.permute.xlu2 %v3407_v61  ;;  %v222_v3 = vpop.permute.xlu0 %221  ;;  %v173_v4 = vpop.permute.xlu1 %172 }
  0xea   :  { %v253_v5 = vmul.f32 %v3644_v0, %v222_v3  ;;  %v211_v6 = vmul.f32 %v3654_v2, %v173_v4  ;;  %429 = vperm.xlu2 %3336, %v3549_v36   ;;  %v272_v7 = vpop.permute.xlu2 %271 }
  0xeb   :  { %v303_v8 = vmul.f32 %v3649_v1, %v272_v7  ;;  %3339 = vset.pattern.permute.xlu1 %v3402_v16  ;;  %v3672_v16 = vld [vmem:[%s4918_s1 + $0x3] ss:$0 sm:$0xff] }
  0xec   :  { %v261_v9 = vadd.f32 %v253_v5, %v211_v6  ;;  %249 = vperm.xlu1 %3339, %v3594_v57   ;;  %v3722_v6 = vld [vmem:[%s4918_s1 + $0x5] ss:$0 sm:$0xff]  ;;  %s3409_s1 = smov 16  }
  0xee   :  { %v311_v10 = vadd.f32 %v303_v8, %v261_v9 }
  0xf2   :  { %3340 = vset.pattern.permute.xlu2 %v3404_v30  ;;  %v276_v19 = vpop.permute.xlu0 %275 }
  0xf3   :  { %v226_v11 = vpop.permute.xlu1 %225  ;;  %295 = vperm.xlu2 %3340, %v3579_v51   ;;  %v234_v12 = vpop.permute.xlu2 %233  ;;  %v304_v52 = vmul.f32 %v3649_v1, %v276_v19 }
  0xf4   :  { %v254_v14 = vmul.f32 %v3644_v0, %v226_v11  ;;  %3341 = vset.pattern.permute.xlu1 %v3406_v60  ;;  %v256_v26 = vmul.f32 %v3644_v0, %v234_v12 }
  0xf5   :  { %341 = vperm.xlu1 %3341, %v3564_v45  }
  0xf6   :  { %v262_v15 = vadd.f32 %v254_v14, %v212_v13 }
  0xfb   :  { %v230_v17 = vpop.permute.xlu1 %229  ;;  %3342 = vset.pattern.permute.xlu2 %v3405_v37  ;;  %v372_v29 = vpop.permute.xlu0 %371 }
  0xfc   :  { %v255_v20 = vmul.f32 %v3644_v0, %v230_v17  ;;  %387 = vperm.xlu2 %3342, %v3600_v59   ;;  %v322_v21 = vpop.permute.xlu2 %321  ;;  %v403_v7 = vmul.f32 %v3710_v54, %v372_v29 }
  0xfd   :  { %v353_v22 = vmul.f32 %v3672_v16, %v322_v21  ;;  %3343 = vset.pattern.permute.xlu1 %v3404_v30 }
  0xfe   :  { %v263_v23 = vadd.f32 %v255_v20, %v213_v18  ;;  %299 = vperm.xlu1 %3343, %v3594_v57  }
  0xff   :  { %v361_v24 = vadd.f32 %v353_v22, %v311_v10  ;;  %v3729_v10 = vld [vmem:[%s4919_s2] sm:$0x7]  ;;  %s3410_s2 = smov 32  }
 0x100   :  { %v3733_v14 = vperm.slane %v3729_v10, 0 }
 0x101   :  { %v411_v12 = vadd.f32 %v403_v7, %v361_v24 }
 0x104   :  { %v188_v25 = vpop.permute.xlu1 %187  ;;  %3344 = vset.pattern.permute.xlu2 %v3406_v60 }
 0x105   :  { %v214_v27 = vmul.f32 %v3654_v2, %v188_v25  ;;  %345 = vperm.xlu2 %3344, %v3579_v51   ;;  %v238_v28 = vpop.permute.xlu2 %237 }
 0x106   :  { %3345 = vset.pattern.permute.xlu1 %v3405_v37  ;;  %v257_v39 = vmul.f32 %v3644_v0, %v238_v28 }
 0x107   :  { %v264_v31 = vadd.f32 %v256_v26, %v214_v27  ;;  %391 = vperm.xlu1 %3345, %v3564_v45  }
 0x109   :  { %v3688_v32 = vpop.permute.xlu0 %245 }
 0x10d   :  { %v280_v30 = vpop.permute.xlu1 %279  ;;  %3346 = vset.pattern.permute.xlu2 %v3407_v61 }
 0x10e   :  { %v305_v33 = vmul.f32 %v3649_v1, %v280_v30  ;;  %437 = vperm.xlu2 %3346, %v3600_v59   ;;  %v330_v34 = vpop.permute.xlu2 %329 }
 0x10f   :  { %v355_v35 = vmul.f32 %v3672_v16, %v330_v34  ;;  %395 = vperm.xlu1 %3345, %v3579_v51  }
 0x110   :  { %v313_v36 = vadd.f32 %v305_v33, %v263_v23 }
 0x112   :  { %v363_v38 = vadd.f32 %v355_v35, %v313_v36  ;;  %v3698_v42 = vpop.permute.xlu0 %207 }
 0x116   :  { %v193_v37 = vpop.permute.xlu1 %192  ;;  %441 = vperm.xlu2 %3346, %v3564_v45  }
 0x117   :  { %v215_v40 = vmul.f32 %v3654_v2, %v193_v37  ;;  %399 = vperm.xlu1 %3345, %v3594_v57   ;;  %v198_v41 = vpop.permute.xlu2 %197 }
 0x118   :  { %v216_v61 = vmul.f32 %v3654_v2, %v198_v41 }
 0x119   :  { %v265_v43 = vadd.f32 %v257_v39, %v215_v40 }
 0x11b   :  { %v326_v49 = vpop.permute.xlu0 %325 }
 0x11c   :  { %v354_v53 = vmul.f32 %v3672_v16, %v326_v49 }
 0x11e   :  { %445 = vperm.xlu2 %3346, %v3579_v51   ;;  %v312_v51 = vadd.f32 %v304_v52, %v262_v15 }
 0x11f   :  { %v284_v44 = vpop.permute.xlu1 %283 }
 0x120   :  { %v306_v46 = vmul.f32 %v3649_v1, %v284_v44  ;;  %v288_v47 = vpop.permute.xlu2 %287  ;;  %v362_v56 = vadd.f32 %v354_v53, %v312_v51 }
 0x121   :  { %v307_v48 = vmul.f32 %v3649_v1, %v288_v47 }
 0x122   :  { %v314_v45 = vadd.f32 %v306_v46, %v264_v31 }
 0x123   :  { %v3703_v50 = vadd.f32 %v307_v48, %v265_v43  ;;  %v334_v9 = vpop.permute.xlu0 %333 }
 0x124   :  { %v356_v35 = vmul.f32 %v3672_v16, %v334_v9 }
 0x126   :  { %v364_v39 = vadd.f32 %v356_v35, %v314_v45 }
 0x128   :  { %v376_v55 = vpop.permute.xlu1 %375 }
 0x129   :  { %v404_v57 = vmul.f32 %v3710_v54, %v376_v55  ;;  %v422_v58 = vpop.permute.xlu2 %421 }
 0x12a   :  { %v453_v8 = vmul.f32 %v3722_v6, %v422_v58 }
 0x12b   :  { %v412_v59 = vadd.f32 %v404_v57, %v362_v56  ;;  %v3740_v27 = vpop.permute.xlu0 %349 }
 0x12c   :  { %v461_v15 = vadd.f32 %v453_v8, %v411_v12 }
 0x12e   :  { %v470_v23 = vadd.f32 %v3733_v14, %v461_v15 }
 0x130   :  { %v486_v28 = vmin.f32 %v470_v23, 0.0  ;;  %vm478_vm3 = vcmp.gt.f32.partialorder %v470_v23, 0.0 }
 0x131   :  { %v242_v60 = vpop.permute.xlu1 %241 }
 0x132   :  { %v258_v62 = vmul.f32 %v3644_v0, %v242_v60  ;;  %v3715_v63 = vpop.permute.xlu2 %202  ;;  %v494_v34 = vmul.f32 1.442695, %v486_v28 }
 0x134   :  { %v3717_v3 = vadd.f32 %v258_v62, %v216_v61 }
 0x13a   :  { %v380_v4 = vpop.permute.xlu1 %379 }
 0x13b   :  { %v338_v5 = vpop.permute.xlu2 %337  ;;  %v405_v11 = vmul.f32 %v3710_v54, %v380_v4 }
 0x13c   :  { %v357_v62 = vmul.f32 %v3672_v16, %v338_v5 }
 0x13d   :  { %v413_v19 = vadd.f32 %v405_v11, %v363_v38  ;;  %v434_v38 = vpop.permute.xlu0 %433 }
 0x13e   :  { %v456_v44 = vmul.f32 %v3722_v6, %v434_v38  ;;  %v365_v5 = vadd.f32 %v357_v62, %v3703_v50 }
 0x143   :  { %v426_v13 = vpop.permute.xlu1 %425 }
 0x144   :  { %v454_v17 = vmul.f32 %v3722_v6, %v426_v13  ;;  %v430_v18 = vpop.permute.xlu2 %429 }
 0x145   :  { %v455_v20 = vmul.f32 %v3722_v6, %v430_v18 }
 0x146   :  { %v462_v21 = vadd.f32 %v454_v17, %v412_v59 }
 0x147   :  { %v463_v22 = vadd.f32 %v455_v20, %v413_v19 }
 0x148   :  { %v471_v25 = vadd.f32 %v3733_v14, %v462_v21 }
 0x149   :  { %v472_v24 = vadd.f32 %v3733_v14, %v463_v22 }
 0x14a   :  { %v487_v26 = vmin.f32 %v471_v25, 0.0  ;;  %vm479_vm2 = vcmp.gt.f32.partialorder %v471_v25, 0.0 }
 0x14b   :  { %v488_v33 = vmin.f32 %v472_v24, 0.0  ;;  %vm480_vm4 = vcmp.gt.f32.partialorder %v472_v24, 0.0 }
 0x14c   :  { %v3742_v29 = vpop.permute.xlu1 %291  ;;  %v496_v30 = vmul.f32 1.442695, %v487_v26 }
 0x14d   :  { %v3744_v31 = vpop.permute.xlu2 %295  ;;  %v498_v36 = vmul.f32 1.442695, %v488_v33 }
 0x14e   :  { %3354 = vpow2.f32 %v496_v30 }
 0x14f   :  { %3356 = vpow2.f32 %v494_v34 }
 0x150   :  { %3358 = vpow2.f32 %v498_v36 }
 0x154   :  { %v3355_v43 = vpop.eup %3354 }
 0x155   :  { %v384_v37 = vpop.permute.xlu1 %383  ;;  %v3357_v47 = vpop.eup %3356  ;;  %v2579_v49 = vadd.f32 -1.0, %v3355_v43 }
 0x156   :  { %v406_v40 = vmul.f32 %v3710_v54, %v384_v37  ;;  %v388_v41 = vpop.permute.xlu2 %387  ;;  %v3359_v52 = vpop.eup %3358  ;;  %v2578_v51 = vadd.f32 -1.0, %v3357_v47 }
 0x157   :  { %v3752_v45 = vsel %vm479_vm2, %v471_v25, %v2579_v49  ;;  %v2580_v57 = vadd.f32 -1.0, %v3359_v52  ;;  %v407_v9 = vmul.f32 %v3710_v54, %v388_v41  ;;  %v259_v52 = vmul.f32 %v3644_v0, %v3688_v32 }
 0x158   :  { %v414_v46 = vadd.f32 %v406_v40, %v364_v39  ;;  %v3754_v60 = vsel %vm478_vm3, %v470_v23, %v2578_v51  ;;  %v550_v61 = vmul.f32 %v3752_v45, %v3752_v45  ;;  %v528_v8 = vsel %vm526_vm5, %v3752_v45, 0.0 }
 0x159   :  { %v3759_v4 = vsel %vm480_vm4, %v472_v24, %v2580_v57  ;;  %v549_v7 = vmul.f32 %v3754_v60, %v3754_v60  ;;  %v527_v11 = vsel %vm526_vm5, %v3754_v60, 0.0  ;;  %v415_v25 = vadd.f32 %v407_v9, %v365_v5 }
 0x15a   :  { %v464_v48 = vadd.f32 %v456_v44, %v414_v46  ;;  %v558_v12 = vsel %vm526_vm5, %v550_v61, 0.0  ;;  %v551_v13 = vmul.f32 %v3759_v4, %v3759_v4  ;;  %v529_v15 = vadd.f32 %v528_v8, %v527_v11 }
 0x15b   :  { %v557_v19 = vsel %vm526_vm5, %v549_v7, 0.0  ;;  %v530_v20 = vsel %vm526_vm5, %v3759_v4, 0.0  ;;  %v308_v44 = vmul.f32 %v3649_v1, %v3742_v29  ;;  %v217_v51 = vmul.f32 %v3654_v2, %v3715_v63 }
 0x15c   :  { %v473_v53 = vadd.f32 %v3733_v14, %v464_v48  ;;  %v559_v22 = vadd.f32 %v558_v12, %v557_v19  ;;  %v560_v24 = vsel %vm526_vm5, %v551_v13, 0.0  ;;  %v531_v28 = vadd.f32 %v530_v20, %v529_v15 }
 0x15d   :  { %v316_v48 = vadd.f32 %v308_v44, %v3717_v3  ;;  %v309_v29 = vmul.f32 %v3649_v1, %v3744_v31  ;;  %v267_v63 = vadd.f32 %v259_v52, %v217_v51 }
 0x15e   :  { %v489_v55 = vmin.f32 %v473_v53, 0.0  ;;  %v3750_v56 = vpop.permute.xlu1 %249  ;;  %vm481_vm6 = vcmp.gt.f32.partialorder %v473_v53, 0.0  ;;  %v561_v35 = vadd.f32 %v560_v24, %v559_v22 }
 0x15f   :  { %v346_v58 = vpop.permute.xlu2 %345  ;;  %v317_v13 = vadd.f32 %v309_v29, %v267_v63  ;;  %v260_v31 = vmul.f32 %v3644_v0, %v3750_v56 }
 0x160   :  { %v500_v59 = vmul.f32 1.442695, %v489_v55  ;;  %v359_v8 = vmul.f32 %v3672_v16, %v346_v58 }
 0x162   :  { %3360 = vpow2.f32 %v500_v59  ;;  %v367_v20 = vadd.f32 %v359_v8, %v317_v13 }
 0x167   :  { %v342_v17 = vpop.permute.xlu1 %341 }
 0x168   :  { %v3361_v18 = vpop.eup %3360  ;;  %v438_v21 = vpop.permute.xlu2 %437  ;;  %v358_v46 = vmul.f32 %v3672_v16, %v342_v17  ;;  %v218_v17 = vmul.f32 %v3654_v2, %v3698_v42 }
 0x169   :  { %v2581_v23 = vadd.f32 -1.0, %v3361_v18  ;;  %v457_v26 = vmul.f32 %v3722_v6, %v438_v21  ;;  %v450_v42 = vpop.permute.xlu0 %449 }
 0x16a   :  { %v366_v55 = vadd.f32 %v358_v46, %v316_v48 }
 0x16b   :  { %v3777_v30 = vsel %vm481_vm6, %v473_v53, %v2581_v23  ;;  %v465_v50 = vadd.f32 %v457_v26, %v415_v25  ;;  %v268_v23 = vadd.f32 %v260_v31, %v218_v17 }
 0x16c   :  { %v532_v33 = vsel %vm526_vm5, %v3777_v30, 0.0  ;;  %v552_v34 = vmul.f32 %v3777_v30, %v3777_v30 }
 0x16d   :  { %v474_v36 = vadd.f32 %v3733_v14, %v465_v50  ;;  %v533_v38 = vadd.f32 %v532_v33, %v531_v28  ;;  %v360_v28 = vmul.f32 %v3672_v16, %v3740_v27 }
 0x16e   :  { %v562_v37 = vsel %vm526_vm5, %v552_v34, 0.0 }
 0x16f   :  { %v490_v39 = vmin.f32 %v474_v36, 0.0  ;;  %v563_v40 = vadd.f32 %v562_v37, %v561_v35  ;;  %vm482_vm7 = vcmp.gt.f32.partialorder %v474_v36, 0.0 }
 0x170   :  { %v300_v41 = vpop.permute.xlu1 %299  ;;  %v442_v47 = vpop.permute.xlu2 %441 }
 0x171   :  { %v502_v43 = vmul.f32 1.442695, %v490_v39  ;;  %v458_v3 = vmul.f32 %v3722_v6, %v442_v47  ;;  %v310_v21 = vmul.f32 %v3649_v1, %v300_v41 }
 0x173   :  { %3362 = vpow2.f32 %v502_v43  ;;  %v318_v0 = vadd.f32 %v310_v21, %v268_v23 }
 0x175   :  { %v368_v1 = vadd.f32 %v360_v28, %v318_v0  ;;  %v3408_v0 = vmov 0.0  }
 0x176   :  { %623 = vst.msk [vmem:[#allocation2 + $0x21] sm:$0x1] %vm617_vm11, %v3408_v0 }
 0x177   :  { %618 = vst.msk [vmem:[#allocation2] sm:$0x1] %vm617_vm11, %v3408_v0 }
 0x178   :  { %v446_v18 = vpop.permute.xlu2 %445  ;;  %1565 = vst [vmem:[#allocation5] sm:$0x1] %v3408_v0 }
 0x179   :  { %v3363_v49 = vpop.eup %3362  ;;  %v392_v53 = vpop.permute.xlu1 %391  ;;  %v459_v25 = vmul.f32 %v3722_v6, %v446_v18  ;;  %1567 = vst [vmem:[#allocation5 + $0x5] sm:$0x1] %v3408_v0 }
 0x17a   :  { %v2582_v57 = vadd.f32 -1.0, %v3363_v49  ;;  %v408_v59 = vmul.f32 %v3710_v54, %v392_v53 }
 0x17c   :  { %v3796_v61 = vsel %vm482_vm7, %v474_v36, %v2582_v57  ;;  %v416_v62 = vadd.f32 %v408_v59, %v366_v55  ;;  %v460_v36 = vmul.f32 %v3722_v6, %v450_v42 }
 0x17d   :  { %v534_v32 = vsel %vm526_vm5, %v3796_v61, 0.0  ;;  %v553_v7 = vmul.f32 %v3796_v61, %v3796_v61 }
 0x17e   :  { %v535_v9 = vadd.f32 %v534_v32, %v533_v38  ;;  %v466_v11 = vadd.f32 %v458_v3, %v416_v62 }
 0x17f   :  { %v564_v12 = vsel %vm526_vm5, %v553_v7, 0.0 }
 0x180   :  { %v565_v5 = vadd.f32 %v564_v12, %v563_v40  ;;  %v475_v15 = vadd.f32 %v3733_v14, %v466_v11 }
 0x181   :  { %v396_v19 = vpop.permute.xlu1 %395 }
 0x182   :  { %v491_v58 = vmin.f32 %v475_v15, 0.0  ;;  %v409_v22 = vmul.f32 %v3710_v54, %v396_v19  ;;  %vm483_vm8 = vcmp.gt.f32.partialorder %v475_v15, 0.0 }
 0x184   :  { %v504_v26 = vmul.f32 1.442695, %v491_v58  ;;  %v417_v24 = vadd.f32 %v409_v22, %v367_v20 }
 0x186   :  { %3364 = vpow2.f32 %v504_v26  ;;  %v467_v56 = vadd.f32 %v459_v25, %v417_v24 }
 0x188   :  { %v476_v2 = vadd.f32 %v3733_v14, %v467_v56 }
 0x189   :  { %v400_v50 = vpop.permute.xlu1 %399 }
 0x18a   :  { %v492_v33 = vmin.f32 %v476_v2, 0.0  ;;  %v410_v34 = vmul.f32 %v3710_v54, %v400_v50  ;;  %vm484_vm9 = vcmp.gt.f32.partialorder %v476_v2, 0.0 }
 0x18c   :  { %v3365_v35 = vpop.eup %3364  ;;  %v506_v38 = vmul.f32 1.442695, %v492_v33  ;;  %v418_v37 = vadd.f32 %v410_v34, %v368_v1 }
 0x18d   :  { %v2583_v39 = vadd.f32 -1.0, %v3365_v35 }
 0x18e   :  { %3366 = vpow2.f32 %v506_v38  ;;  %v468_v40 = vadd.f32 %v460_v36, %v418_v37 }
 0x18f   :  { %v3818_v41 = vsel %vm483_vm8, %v475_v15, %v2583_v39 }
 0x190   :  { %v536_v16 = vsel %vm526_vm5, %v3818_v41, 0.0  ;;  %v554_v27 = vmul.f32 %v3818_v41, %v3818_v41  ;;  %v477_v43 = vadd.f32 %v3733_v14, %v468_v40 }
 0x191   :  { %v537_v54 = vadd.f32 %v536_v16, %v535_v9 }
 0x192   :  { %v566_v44 = vsel %vm526_vm5, %v554_v27, 0.0  ;;  %v493_v6 = vmin.f32 %v477_v43, 0.0  ;;  %vm485_vm10 = vcmp.gt.f32.partialorder %v477_v43, 0.0 }
 0x193   :  { %v567_v46 = vadd.f32 %v566_v44, %v565_v5 }
 0x194   :  { %v3367_v47 = vpop.eup %3366  ;;  %v508_v48 = vmul.f32 1.442695, %v493_v6 }
 0x195   :  { %v2584_v49 = vadd.f32 -1.0, %v3367_v47 }
 0x196   :  { %3368 = vpow2.f32 %v508_v48 }
 0x197   :  { %v3826_v52 = vsel %vm484_vm9, %v476_v2, %v2584_v49  ;;  %vm951_vm9 = vcmask 523264  }
 0x198   :  { %v555_v53 = vmul.f32 %v3826_v52, %v3826_v52  ;;  %v538_v55 = vsel %vm526_vm5, %v3826_v52, 0.0 }
 0x199   :  { %v539_v59 = vadd.f32 %v538_v55, %v537_v54 }
 0x19a   :  { %v568_v57 = vsel %vm526_vm5, %v555_v53, 0.0 }
 0x19b   :  { %v569_v32 = vadd.f32 %v568_v57, %v567_v46 }
 0x19c   :  { %v3369_v51 = vpop.eup %3368 }
 0x19d   :  { %v2585_v14 = vadd.f32 -1.0, %v3369_v51 }
 0x19f   :  { %v525_v29 = vsel %vm485_vm10, %v477_v43, %v2585_v14  ;;  %vm1037_vm10 = vcmask 785408  }
 0x1a0   :  { %v540_v3 = vsel %vm526_vm5, %v525_v29, 0.0  ;;  %v556_v62 = vmul.f32 %v525_v29, %v525_v29 }
 0x1a1   :  { %v541_v7 = vadd.f32 %v540_v3, %v539_v59  ;;  %v3161_v59 = vld [vmem:[%s4920_s3 + $0x10] sm:$0xff]  ;;  %v3160_v3 = vld [vmem:[%s4920_s3 + $0x8] sm:$0xff] }
 0x1a2   :  { %v570_v63 = vsel %vm526_vm5, %v556_v62, 0.0  ;;  %784 = vmatpush.bf16.msra.mxu1 %v3161_v59  ;;  %749 = vmatpush.bf16.msra.mxu0 %v3161_v59  ;;  %v3163_v62 = vld [vmem:[%s4920_s3 + $0x20] sm:$0xff] }
 0x1a3   :  { %v542_v8 = vrot.slane %v541_v7, 4  ;;  %v571_v9 = vadd.f32 %v570_v63, %v569_v32  ;;  %v3159_v32 = vld [vmem:[%s4920_s3] sm:$0xff] }
 0x1a5   :  { %v543_v11 = vadd.f32 %v542_v8, %v541_v7  ;;  %v572_v12 = vrot.slane %v571_v9, 4  ;;  %v3162_v7 = vld [vmem:[%s4920_s3 + $0x18] sm:$0xff] }
 0x1a6   :  { %785 = vmatpush.bf16.msra.mxu1 %v3160_v3  ;;  %750 = vmatpush.bf16.msra.mxu0 %v3160_v3 }
 0x1a7   :  { %v544_v13 = vrot.slane %v543_v11, 2  ;;  %v573_v31 = vadd.f32 %v572_v12, %v571_v9 }
 0x1a9   :  { %v545_v5 = vadd.f32 %v544_v13, %v543_v11  ;;  %v574_v15 = vrot.slane %v573_v31, 2 }
 0x1aa   :  { %786 = vmatpush.bf16.msra.mxu1 %v3159_v32  ;;  %751 = vmatpush.bf16.msra.mxu0 %v3159_v32 }
 0x1ab   :  { %v546_v17 = vrot.slane %v545_v5, 1  ;;  %v575_v18 = vadd.f32 %v574_v15, %v573_v31 }
 0x1ad   :  { %v547_v19 = vadd.f32 %v546_v17, %v545_v5  ;;  %v576_v20 = vrot.slane %v575_v18, 1 }
 0x1af   :  { %v548_v21 = vmul.f32 0.015625, %v547_v19  ;;  %v577_v58 = vadd.f32 %v576_v20, %v575_v18 }
 0x1b1   :  { %v578_v22 = vmul.f32 0.015625, %v577_v58  ;;  %v579_v23 = vmul.f32 %v548_v21, %v548_v21 }
 0x1b3   :  { %v580_v25 = vsub.f32 %v578_v22, %v579_v23 }
 0x1b5   :  { %v581_v26 = vmax.f32 %v580_v25, 0.0 }
 0x1b7   :  { %v582_v24 = vadd.f32 1e-05, %v581_v26 }
 0x1b9   :  { %3370 = vrsqrt.f32 %v582_v24  ;;  %vm589_vm13 = vweird.f32 %v582_v24 }
 0x1bf   :  { %v3371_v56 = vpop.eup %3370 }
 0x1c0   :  { %v584_v28 = vmul.f32 %v3371_v56, %v582_v24  ;;  %vm590_vm12 = vweird.f32 %v3371_v56 }
 0x1c1   :  { %vm591_vm14 = vmor %vm589_vm13, %vm590_vm12  ;;  %vm1192_vm13 = vcmask 516096  }
 0x1c2   :  { %v585_v2 = vmul.f32 %v3371_v56, %v584_v28  ;;  %1195 = vst.msk [vmem:[#allocation4 + $0x9] sm:$0x1] %vm1192_vm13, %v3408_v0 }
 0x1c3   :  { %1193 = vst.msk [vmem:[#allocation4] sm:$0x1] %vm1192_vm13, %v3408_v0 }
 0x1c4   :  { %v586_v42 = vmul.f32 0.5, %v585_v2 }
 0x1c6   :  { %v587_v50 = vsub.f32 1.5, %v586_v42 }
 0x1c8   :  { %v588_v33 = vmul.f32 %v3371_v56, %v587_v50 }
 0x1ca   :  { %v592_v1 = vsel %vm591_vm14, %v3371_v56, %v588_v33 }
 0x1cb   :  { %v593_v34 = vmul.f32 %v592_v1, %v3729_v10 }
 0x1cd   :  { %v594_v35 = vmul.f32 %v593_v34, %v548_v21  ;;  %v599_v36 = vperm.slane %v593_v34, 1 }
 0x1cf   :  { %v596_v38 = vrot.slane %v594_v35, 7  ;;  %v604_v37 = vmul.f32 %v599_v36, %v3796_v61  ;;  %v605_v39 = vmul.f32 %v599_v36, %v3818_v41  ;;  %v602_v40 = vmul.f32 %v599_v36, %v3759_v4 }
 0x1d0   :  { %v603_v16 = vmul.f32 %v599_v36, %v3777_v30  ;;  %v607_v43 = vmul.f32 %v599_v36, %v525_v29  ;;  %v600_v44 = vmul.f32 %v599_v36, %v3754_v60  ;;  %v601_v6 = vmul.f32 %v599_v36, %v3752_v45  ;;  %v3164_v29 = vld [vmem:[%s4920_s3 + $0x28] sm:$0xff] }
 0x1d1   :  { %v598_v27 = vsub.f32 %v3729_v10, %v596_v38  ;;  %v606_v46 = vmul.f32 %v599_v36, %v3826_v52  ;;  %821 = vmatpush.bf16.msra.mxu2 %v3164_v29 }
 0x1d3   :  { %v608_v54 = vperm.slane %v598_v27, 2 }
 0x1d5   :  { %v616_v47 = vadd.f32 %v608_v54, %v607_v43  ;;  %v613_v48 = vadd.f32 %v608_v54, %v604_v37  ;;  %v614_v49 = vadd.f32 %v608_v54, %v605_v39  ;;  %v611_v61 = vadd.f32 %v608_v54, %v602_v40  ;;  %822 = vmatpush.bf16.msra.mxu2 %v3163_v62 }
 0x1d6   :  { %v612_v53 = vadd.f32 %v608_v54, %v603_v16  ;;  %v609_v41 = vadd.f32 %v608_v54, %v600_v44  ;;  %v610_v51 = vadd.f32 %v608_v54, %v601_v6  ;;  %v615_v4 = vadd.f32 %v608_v54, %v606_v46 }
 0x1d7   :  { %627 = vst.msk [vmem:[#allocation2 + $0x3a] sm:$0xff] %vm526_vm5, %v616_v47 }
 0x1d8   :  { %624 = vst.msk [vmem:[#allocation2 + $0x22] sm:$0xff] %vm526_vm5, %v613_v48 }
 0x1d9   :  { %625 = vst.msk [vmem:[#allocation2 + $0x2a] sm:$0xff] %vm526_vm5, %v614_v49  ;;  %823 = vmatpush.bf16.msra.mxu2 %v3162_v7  ;;  %v3895_v49 = vld [vmem:[%s4921_s4] sm:$0x7]  ;;  %s3411_s4 = smov 64  }
 0x1da   :  { %621 = vst.msk [vmem:[#allocation2 + $0x11] sm:$0xff] %vm526_vm5, %v611_v61 }
 0x1db   :  { %622 = vst.msk [vmem:[#allocation2 + $0x19] sm:$0xff] %vm526_vm5, %v612_v53 }
 0x1dc   :  { %619 = vst.msk [vmem:[#allocation2 + $0x1] sm:$0xff] %vm526_vm5, %v609_v41 }
 0x1dd   :  { %620 = vst.msk [vmem:[#allocation2 + $0x9] sm:$0xff] %vm526_vm5, %v610_v51 }
 0x1de   :  { %626 = vst.msk [vmem:[#allocation2 + $0x32] sm:$0xff] %vm526_vm5, %v615_v4  ;;  %v839_v4 = vperm.slane %v3895_v49, 0 }
 0x1e0   :  { %v665_v10 = vld [vmem:[#allocation2 + $0x22] ss:$2 sm:$0xff]  ;;  %v669_v14 = vld [vmem:[#allocation2 + $0x23] ss:$2 sm:$0xff] }
 0x1e1   :  { %674 = vrot.lane.b32.xlu0 %v665_v10, %s3409_s1  ;;  %v661_v56 = vld [vmem:[#allocation2 + $0x21] ss:$2 sm:$0xff] }
 0x1e2   :  { %v634_v45 = vld [vmem:[#allocation2 + $0x11] ss:$2 sm:$0xff]  ;;  %v638_v52 = vld [vmem:[#allocation2 + $0x12] ss:$2 sm:$0xff] }
 0x1e3   :  { %643 = vrot.lane.b32.xlu2 %v634_v45, %s3409_s1 }
 0x1e4   :  { %v632_v60 = vld [vmem:[#allocation2 + $0x1] ss:$2 sm:$0xff]  ;;  %v636_v55 = vld [vmem:[#allocation2 + $0x2] ss:$2 sm:$0xff] }
 0x1e5   :  { %641 = vrot.lane.b32.xlu1 %v632_v60, %s3409_s1  ;;  %v671_v30 = vld [vmem:[#allocation2 + $0x33] ss:$2 sm:$0xff]  ;;  %v667_v57 = vld [vmem:[#allocation2 + $0x32] ss:$2 sm:$0xff] }
 0x1e6   :  { %v630_v11 = vld [vmem:[#allocation2 + $0x10] ss:$2 sm:$0xff]  ;;  %v628_v15 = vld [vmem:[#allocation2] ss:$2 sm:$0xff]  ;;  %v663_v2 = vld [vmem:[#allocation2 + $0x31] ss:$2 sm:$0xff] }
 0x1e9   :  { %684 = vrot.lane.b32.xlu0 %v671_v30, %s3410_s2 }
 0x1eb   :  { %651 = vrot.lane.b32.xlu2 %v638_v52, %s3410_s2 }
 0x1ed   :  { %649 = vrot.lane.b32.xlu1 %v636_v55, %s3410_s2 }
 0x1f3   :  { %682 = vrot.lane.b32.xlu2 %v669_v14, %s3410_s2 }
 0x1f5   :  { %676 = vrot.lane.b32.xlu1 %v667_v57, %s3409_s1 }
 0x23d   :  { %v644_v63 = vpop.permute.xlu2 %643 }
 0x23e   :  { %v656_v12 = vsel %vm526_vm5, %v630_v11, %v644_v63 }
 0x245   :  { %v652_v8 = vpop.permute.xlu2 %651 }
 0x246   :  { %v659_v13 = vsel %vm657_vm15, %v656_v12, %v652_v8 }
 0x247   :  { %v694_v31 = vpack.c.bf16 %v659_v13, %v659_v13 }
 0x249   :  { %v698_v20 = vunpack.c.l.bf16 %v694_v31  ;;  %v768_v58 = vunpack.c.l.b16 %v694_v31 }
 0x24b   :  { %v702_v25 = vsub.f32 %v659_v13, %v698_v20 }
 0x24d   :  { %v683_v34 = vpop.permute.xlu2 %682 }
 0x253   :  { %v675_v5 = vpop.permute.xlu0 %674 }
 0x254   :  { %v688_v28 = vsel %vm526_vm5, %v661_v56, %v675_v5 }
 0x255   :  { %v690_v36 = vsel %vm657_vm15, %v688_v28, %v683_v34 }
 0x256   :  { %v695_v37 = vpack.c.bf16 %v690_v36, %v690_v36 }
 0x257   :  { %v642_v9 = vpop.permute.xlu1 %641 }
 0x258   :  { %v655_v17 = vsel %vm526_vm5, %v628_v15, %v642_v9  ;;  %v699_v40 = vunpack.c.l.bf16 %v695_v37  ;;  %v769_v43 = vunpack.c.l.b16 %v695_v37 }
 0x25a   :  { %v703_v54 = vsub.f32 %v690_v36, %v699_v40 }
 0x25b   :  { %v685_v33 = vpop.permute.xlu0 %684 }
 0x25f   :  { %v650_v18 = vpop.permute.xlu1 %649 }
 0x260   :  { %v658_v19 = vsel %vm657_vm15, %v655_v17, %v650_v18 }
 0x261   :  { %v693_v21 = vpack.c.bf16 %v658_v19, %v658_v19 }
 0x263   :  { %v697_v22 = vunpack.c.l.bf16 %v693_v21  ;;  %v767_v23 = vunpack.c.l.b16 %v693_v21 }
 0x265   :  { %v701_v26 = vsub.f32 %v658_v19, %v697_v22  ;;  %v771_v24 = vpack.c.b16 %v768_v58, %v767_v23 }
 0x267   :  { %v677_v42 = vpop.permute.xlu1 %676  ;;  %2600 = vmatmul.msk.bf16.vlgmr.msra.gmra.mxu1 %vm737_vm0, %v771_v24  ;;  %2614 = vmatmul.msk.bf16.vlgmr.msra.gmra.mxu2 %vm737_vm0, %v771_v24  ;;  %v705_v50 = vpack.c.bf16 %v702_v25, %v701_v26 }
 0x268   :  { %v689_v1 = vsel %vm526_vm5, %v663_v2, %v677_v42  ;;  %vm930_vm5 = vcmask 253952  }
 0x269   :  { %v691_v35 = vsel %vm657_vm15, %v689_v1, %v685_v33  ;;  %2598 = vmatmul.msk.bf16.vlgmr.msra.gmra.mxu0 %vm737_vm0, %v705_v50  ;;  %934 = vst.msk [vmem:[#allocation3 + $0x11] sm:$0x1] %vm930_vm5, %v3408_v0 }
 0x26a   :  { %v696_v38 = vpack.c.bf16 %v691_v35, %v691_v35  ;;  %931 = vst.msk [vmem:[#allocation3] sm:$0x1] %vm930_vm5, %v3408_v0 }
 0x26c   :  { %v700_v39 = vunpack.c.l.bf16 %v696_v38  ;;  %v770_v16 = vunpack.c.l.b16 %v696_v38 }
 0x26e   :  { %v704_v27 = vsub.f32 %v691_v35, %v700_v39  ;;  %v772_v44 = vpack.c.b16 %v770_v16, %v769_v43 }
 0x270   :  { %v706_v6 = vpack.c.bf16 %v704_v27, %v703_v54 }
 0x277   :  { %2601 = vmatmul.msk.bf16.gmra.mxu1 %vm737_vm0, %v772_v44  ;;  %2615 = vmatmul.msk.bf16.gmra.mxu2 %vm737_vm0, %v772_v44 }
 0x279   :  { %2599 = vmatmul.msk.bf16.gmra.mxu0 %vm737_vm0, %v706_v6 }
 0x2e4   :  { %v788_v46 = vpop.f32.mrf.mxu1 }
 0x2e6   :  { %v753_v47 = vpop.f32.mrf.mxu0 }
 0x2e7   :  { %v789_v53 = vadd.f32 %v788_v46, %v753_v47 }
 0x2ea   :  { %v825_v48 = vpop.f32.mrf.mxu2 }
 0x2eb   :  { %v835_v51 = vadd.f32 %v825_v48, %v789_v53 }
 0x2ec   :  { %v790_v61 = vpop.f32.mrf.mxu1 }
 0x2ed   :  { %v840_v60 = vadd.f32 %v839_v4, %v835_v51 }
 0x2ee   :  { %v755_v41 = vpop.f32.mrf.mxu0 }
 0x2ef   :  { %v791_v10 = vadd.f32 %v790_v61, %v755_v41  ;;  %v848_v57 = vmin.f32 %v840_v60, 0.0  ;;  %vm844_vm2 = vcmp.gt.f32.partialorder %v840_v60, 0.0 }
 0x2f1   :  { %v852_v32 = vmul.f32 1.442695, %v848_v57 }
 0x2f2   :  { %v827_v45 = vpop.f32.mrf.mxu2 }
 0x2f3   :  { %v836_v30 = vadd.f32 %v827_v45, %v791_v10 }
 0x2f4   :  { %v793_v55 = vpop.f32.mrf.mxu1 }
 0x2f5   :  { %v841_v52 = vadd.f32 %v839_v4, %v836_v30 }
 0x2f6   :  { %v758_v14 = vpop.f32.mrf.mxu0 }
 0x2f7   :  { %v849_v59 = vmin.f32 %v841_v52, 0.0  ;;  %v794_v3 = vadd.f32 %v793_v55, %v758_v14  ;;  %vm845_vm1 = vcmp.gt.f32.partialorder %v841_v52, 0.0 }
 0x2f9   :  { %v854_v29 = vmul.f32 1.442695, %v849_v59 }
 0x2fa   :  { %v830_v62 = vpop.f32.mrf.mxu2 }
 0x2fb   :  { %v837_v7 = vadd.f32 %v830_v62, %v794_v3  ;;  %3372 = vpow2.f32 %v854_v29 }
 0x2fc   :  { %3374 = vpow2.f32 %v852_v32  ;;  %v795_v11 = vpop.f32.mrf.mxu1 }
 0x2fd   :  { %v842_v63 = vadd.f32 %v839_v4, %v837_v7 }
 0x2fe   :  { %v760_v8 = vpop.f32.mrf.mxu0 }
 0x2ff   :  { %v850_v9 = vmin.f32 %v842_v63, 0.0  ;;  %v796_v13 = vadd.f32 %v795_v11, %v760_v8  ;;  %vm846_vm3 = vcmp.gt.f32.partialorder %v842_v63, 0.0 }
 0x301   :  { %v856_v12 = vmul.f32 1.442695, %v850_v9  ;;  %v3373_v5 = vpop.eup %3372 }
 0x302   :  { %v832_v31 = vpop.f32.mrf.mxu2  ;;  %v3375_v17 = vpop.eup %3374  ;;  %v2617_v19 = vadd.f32 -1.0, %v3373_v5 }
 0x303   :  { %3376 = vpow2.f32 %v856_v12  ;;  %v838_v15 = vadd.f32 %v832_v31, %v796_v13  ;;  %v2616_v21 = vadd.f32 -1.0, %v3375_v17 }
 0x304   :  { %v3898_v23 = vsel %vm845_vm1, %v841_v52, %v2617_v19  ;;  %vm1224_vm1 = vcmask 1043456  }
 0x305   :  { %v843_v18 = vadd.f32 %v839_v4, %v838_v15  ;;  %v864_v26 = vsel %vm844_vm2, %v840_v60, %v2616_v21  ;;  %v883_v56 = vmul.f32 %v3898_v23, %v3898_v23  ;;  %v869_v2 = vsel %vm657_vm15, %v3898_v23, 0.0 }
 0x306   :  { %v882_v28 = vmul.f32 %v864_v26, %v864_v26  ;;  %v868_v33 = vsel %vm657_vm15, %v864_v26, 0.0 }
 0x307   :  { %v851_v20 = vmin.f32 %v843_v18, 0.0  ;;  %v887_v1 = vsel %vm657_vm15, %v883_v56, 0.0  ;;  %v870_v35 = vadd.f32 %v869_v2, %v868_v33  ;;  %vm847_vm4 = vcmp.gt.f32.partialorder %v843_v18, 0.0  ;;  %v3176_v2 = vld [vmem:[%s4922_s5 + $0x58] sm:$0xff] }
 0x308   :  { %v886_v38 = vsel %vm657_vm15, %v882_v28, 0.0  ;;  %1115 = vmatpush.bf16.msrb.mxu1 %v3176_v2  ;;  %v3168_v33 = vld [vmem:[%s4922_s5 + $0x18] sm:$0xff] }
 0x309   :  { %v3377_v58 = vpop.eup %3376  ;;  %v858_v22 = vmul.f32 1.442695, %v851_v20  ;;  %v888_v39 = vadd.f32 %v887_v1, %v886_v38  ;;  %v3174_v1 = vld [vmem:[%s4922_s5 + $0x48] sm:$0xff]  ;;  %v3172_v38 = vld [vmem:[%s4922_s5 + $0x38] sm:$0xff] }
 0x30a   :  { %v2618_v25 = vadd.f32 -1.0, %v3377_v58 }
 0x30b   :  { %3378 = vpow2.f32 %v858_v22 }
 0x30c   :  { %v866_v24 = vsel %vm846_vm3, %v842_v63, %v2618_v25 }
 0x30d   :  { %v884_v42 = vmul.f32 %v866_v24, %v866_v24  ;;  %v871_v34 = vsel %vm657_vm15, %v866_v24, 0.0 }
 0x30e   :  { %v872_v40 = vadd.f32 %v871_v34, %v870_v35  ;;  %v3167_v34 = vld [vmem:[%s4922_s5 + $0x10] sm:$0xff]  ;;  %v3173_v35 = vld [vmem:[%s4922_s5 + $0x40] sm:$0xff] }
 0x30f   :  { %v889_v37 = vsel %vm657_vm15, %v884_v42, 0.0  ;;  %v3169_v42 = vld [vmem:[%s4922_s5 + $0x20] sm:$0xff] }
 0x310   :  { %v890_v54 = vadd.f32 %v889_v37, %v888_v39  ;;  %v3165_v37 = vld [vmem:[%s4922_s5] sm:$0xff]  ;;  %v3171_v39 = vld [vmem:[%s4922_s5 + $0x30] sm:$0xff] }
 0x311   :  { %v3379_v50 = vpop.eup %3378 }
 0x312   :  { %v2619_v36 = vadd.f32 -1.0, %v3379_v50  ;;  %v3175_v50 = vld [vmem:[%s4922_s5 + $0x50] sm:$0xff] }
 0x313   :  { %1116 = vmatpush.bf16.msrb.mxu1 %v3175_v50 }
 0x314   :  { %v867_v16 = vsel %vm847_vm4, %v843_v18, %v2619_v36  ;;  %v3166_v36 = vld [vmem:[%s4922_s5 + $0x8] sm:$0xff] }
 0x315   :  { %v873_v27 = vsel %vm657_vm15, %v867_v16, 0.0  ;;  %v885_v43 = vmul.f32 %v867_v16, %v867_v16 }
 0x316   :  { %v874_v44 = vadd.f32 %v873_v27, %v872_v40 }
 0x317   :  { %v891_v6 = vsel %vm657_vm15, %v885_v43, 0.0  ;;  %1117 = vmatpush.bf16.msrb.mxu1 %v3174_v1 }
 0x318   :  { %v875_v46 = vrot.slane %v874_v44, 4  ;;  %v892_v47 = vadd.f32 %v891_v6, %v890_v54 }
 0x31a   :  { %v876_v48 = vadd.f32 %v875_v46, %v874_v44  ;;  %v893_v61 = vrot.slane %v892_v47, 4 }
 0x31b   :  { %1118 = vmatpush.bf16.msrb.mxu1 %v3173_v35 }
 0x31c   :  { %v877_v53 = vrot.slane %v876_v48, 2  ;;  %v894_v41 = vadd.f32 %v893_v61, %v892_v47 }
 0x31e   :  { %v878_v51 = vadd.f32 %v877_v53, %v876_v48  ;;  %v895_v4 = vrot.slane %v894_v41, 2 }
 0x31f   :  { %1119 = vmatpush.bf16.msrb.mxu1 %v3172_v38 }
 0x320   :  { %v879_v10 = vrot.slane %v878_v51, 1  ;;  %v896_v45 = vadd.f32 %v895_v4, %v894_v41 }
 0x322   :  { %v880_v60 = vadd.f32 %v879_v10, %v878_v51  ;;  %v897_v30 = vrot.slane %v896_v45, 1 }
 0x323   :  { %1120 = vmatpush.bf16.msrb.mxu1 %v3171_v39 }
 0x324   :  { %v881_v52 = vmul.f32 0.03125, %v880_v60  ;;  %v898_v55 = vadd.f32 %v897_v30, %v896_v45 }
 0x326   :  { %v899_v14 = vmul.f32 0.03125, %v898_v55  ;;  %v900_v57 = vmul.f32 %v881_v52, %v881_v52 }
 0x328   :  { %v901_v59 = vsub.f32 %v899_v14, %v900_v57  ;;  %v3967_v14 = vld [vmem:[%s4923_s6] sm:$0x7] }
 0x32a   :  { %v902_v29 = vmax.f32 %v901_v59, 0.0 }
 0x32c   :  { %v903_v3 = vadd.f32 1e-05, %v902_v29 }
 0x32e   :  { %3380 = vrsqrt.f32 %v903_v3  ;;  %vm910_vm7 = vweird.f32 %v903_v3 }
 0x334   :  { %v3381_v62 = vpop.eup %3380 }
 0x335   :  { %v905_v32 = vmul.f32 %v3381_v62, %v903_v3  ;;  %vm911_vm6 = vweird.f32 %v3381_v62  ;;  %v1129_v3 = vperm.slane %v3967_v14, 0 }
 0x336   :  { %vm912_vm8 = vmor %vm910_vm7, %vm911_vm6  ;;  %vm1589_vm6 = vcmask 1041408  }
 0x337   :  { %v906_v7 = vmul.f32 %v3381_v62, %v905_v32 }
 0x339   :  { %v907_v63 = vmul.f32 0.5, %v906_v7 }
 0x33b   :  { %v908_v8 = vsub.f32 1.5, %v907_v63 }
 0x33d   :  { %v909_v9 = vmul.f32 %v3381_v62, %v908_v8 }
 0x33f   :  { %v913_v11 = vsel %vm912_vm8, %v3381_v62, %v909_v9 }
 0x340   :  { %v914_v12 = vmul.f32 %v913_v11, %v3895_v49 }
 0x342   :  { %v915_v13 = vmul.f32 %v914_v12, %v881_v52  ;;  %v920_v5 = vperm.slane %v914_v12, 1 }
 0x344   :  { %v917_v31 = vrot.slane %v915_v13, 7  ;;  %v921_v17 = vmul.f32 %v920_v5, %v864_v26  ;;  %v922_v18 = vmul.f32 %v920_v5, %v3898_v23  ;;  %v923_v19 = vmul.f32 %v920_v5, %v866_v24  ;;  %v3170_v24 = vld [vmem:[%s4922_s5 + $0x28] sm:$0xff] }
 0x345   :  { %v924_v21 = vmul.f32 %v920_v5, %v867_v16  ;;  %1065 = vmatpush.bf16.msrb.mxu0 %v3170_v24  ;;  %1043 = vmatpush.bf16.msra.mxu3 %v3170_v24 }
 0x346   :  { %v919_v15 = vsub.f32 %v3895_v49, %v917_v31 }
 0x348   :  { %v925_v20 = vperm.slane %v919_v15, 2 }
 0x349   :  { %1066 = vmatpush.bf16.msrb.mxu0 %v3169_v42  ;;  %1044 = vmatpush.bf16.msra.mxu3 %v3169_v42 }
 0x34a   :  { %v926_v58 = vadd.f32 %v925_v20, %v921_v17  ;;  %v927_v22 = vadd.f32 %v925_v20, %v922_v18  ;;  %v928_v25 = vadd.f32 %v925_v20, %v923_v19  ;;  %v929_v56 = vadd.f32 %v925_v20, %v924_v21 }
 0x34c   :  { %932 = vst.msk [vmem:[#allocation3 + $0x1] sm:$0xff] %vm657_vm15, %v926_v58 }
 0x34d   :  { %933 = vst.msk [vmem:[#allocation3 + $0x9] sm:$0xff] %vm657_vm15, %v927_v22  ;;  %1067 = vmatpush.bf16.msrb.mxu0 %v3168_v33  ;;  %1045 = vmatpush.bf16.msra.mxu3 %v3168_v33 }
 0x34e   :  { %935 = vst.msk [vmem:[#allocation3 + $0x12] sm:$0xff] %vm657_vm15, %v928_v25 }
 0x34f   :  { %936 = vst.msk [vmem:[#allocation3 + $0x1a] sm:$0xff] %vm657_vm15, %v929_v56 }
 0x351   :  { %1068 = vmatpush.bf16.msrb.mxu0 %v3167_v34  ;;  %1046 = vmatpush.bf16.msra.mxu3 %v3167_v34 }
 0x354   :  { %v941_v28 = vld [vmem:[#allocation3 + $0x2] ss:$2 sm:$0xff]  ;;  %v939_v49 = vld [vmem:[#allocation3 + $0x1] ss:$2 sm:$0xff] }
 0x355   :  { %947 = vrot.lane.b32.xlu0 %v941_v28, %s3411_s4  ;;  %943 = vrot.lane.b32.xlu1 %v939_v49, %s3410_s2  ;;  %v937_v27 = vld [vmem:[#allocation3] ss:$2 sm:$0xff] }
 0x356   :  { %v956_v23 = vld [vmem:[#allocation3 + $0x12] ss:$2 sm:$0xff]  ;;  %v958_v26 = vld [vmem:[#allocation3 + $0x13] ss:$2 sm:$0xff]  ;;  %1069 = vmatpush.bf16.msrb.mxu0 %v3166_v36  ;;  %1047 = vmatpush.bf16.msra.mxu3 %v3166_v36 }
 0x357   :  { %960 = vrot.lane.b32.xlu2 %v956_v23, %s3410_s2  ;;  %v954_v46 = vld [vmem:[#allocation3 + $0x11] ss:$2 sm:$0xff] }
 0x35a   :  { %1070 = vmatpush.bf16.msrb.mxu0 %v3165_v37  ;;  %1048 = vmatpush.bf16.msra.mxu3 %v3165_v37 }
 0x35d   :  { %964 = vrot.lane.b32.xlu1 %v958_v26, %s3411_s4 }
 0x3b1   :  { %v961_v44 = vpop.permute.xlu2 %960 }
 0x3b2   :  { %v967_v47 = vsel %vm657_vm15, %v954_v46, %v961_v44 }
 0x3c7   :  { %v948_v40 = vpop.permute.xlu0 %947  ;;  %v944_v16 = vpop.permute.xlu1 %943 }
 0x3c8   :  { %v950_v43 = vsel %vm657_vm15, %v937_v27, %v944_v16 }
 0x3c9   :  { %v952_v54 = vsel %vm951_vm9, %v950_v43, %v948_v40 }
 0x3ca   :  { %v970_v6 = vpack.c.bf16 %v952_v54, %v952_v54 }
 0x3cc   :  { %v972_v53 = vunpack.c.l.bf16 %v970_v6  ;;  %v1057_v51 = vunpack.c.l.b16 %v970_v6 }
 0x3ce   :  { %v974_v45 = vsub.f32 %v952_v54, %v972_v53 }
 0x3cf   :  { %v965_v48 = vpop.permute.xlu1 %964 }
 0x3d0   :  { %v968_v61 = vsel %vm951_vm9, %v967_v47, %v965_v48 }
 0x3d1   :  { %v971_v41 = vpack.c.bf16 %v968_v61, %v968_v61 }
 0x3d3   :  { %v973_v4 = vunpack.c.l.bf16 %v971_v41  ;;  %v1058_v10 = vunpack.c.l.b16 %v971_v41 }
 0x3d5   :  { %v975_v60 = vsub.f32 %v968_v61, %v973_v4  ;;  %v1059_v30 = vpack.c.b16 %v1058_v10, %v1057_v51 }
 0x3d7   :  { %2645 = vmatmul.msk.bf16.vlgmr.msrb.gmra.mxu0 %vm1037_vm10, %v1059_v30  ;;  %2670 = vmatmul.msk.bf16.vlgmr.msrb.gmra.mxu1 %vm1037_vm10, %v1059_v30  ;;  %v976_v52 = vpack.c.bf16 %v975_v60, %v974_v45 }
 0x3d9   :  { %2644 = vmatmul.msk.bf16.vlgmr.msra.gmra.mxu3 %vm1037_vm10, %v976_v52 }
 0x454   :  { %v1072_v55 = vpop.f32.mrf.mxu0  ;;  %v1122_v57 = vpop.f32.mrf.mxu1 }
 0x45c   :  { %v1050_v59 = vpop.f32.mrf.mxu3  ;;  %v1074_v63 = vpop.f32.mrf.mxu0 }
 0x45d   :  { %v1073_v29 = vadd.f32 %v1072_v55, %v1050_v59  ;;  %v1124_v12 = vpop.f32.mrf.mxu1 }
 0x45f   :  { %v1127_v62 = vadd.f32 %v1122_v57, %v1073_v29 }
 0x461   :  { %v1130_v32 = vadd.f32 %v1129_v3, %v1127_v62  ;;  %v3196_v62 = vld [vmem:[%s4924_s7 + $0x98] sm:$0xff] }
 0x462   :  { %1491 = vmatpush.bf16.msra.mxu1 %v3196_v62  ;;  %v2831_v62 = vld [vmem:[%s4926_s9 + $0x70] sm:$0xf] }
 0x463   :  { %v1134_v7 = vmin.f32 %v1130_v32, 0.0  ;;  %vm1132_vm11 = vcmp.gt.f32.partialorder %v1130_v32, 0.0 }
 0x464   :  { %v1052_v8 = vpop.f32.mrf.mxu3 }
 0x465   :  { %v1136_v9 = vmul.f32 1.442695, %v1134_v7  ;;  %v1075_v11 = vadd.f32 %v1074_v63, %v1052_v8  ;;  %v3195_v7 = vld [vmem:[%s4924_s7 + $0x90] sm:$0xff] }
 0x466   :  { %v3183_v63 = vld [vmem:[%s4924_s7 + $0x30] sm:$0xff]  ;;  %1492 = vmatpush.bf16.msra.mxu1 %v3195_v7 }
 0x467   :  { %3382 = vpow2.f32 %v1136_v9  ;;  %v1128_v13 = vadd.f32 %v1124_v12, %v1075_v11  ;;  %v4003_v8 = vld [vmem:[%s4924_s7 + $0x50] sm:$0xff]  ;;  %v3194_v9 = vld [vmem:[%s4924_s7 + $0x88] sm:$0xff] }
 0x468   :  { %v3182_v11 = vld [vmem:[%s4924_s7 + $0x28] sm:$0xff] }
 0x469   :  { %v1131_v31 = vadd.f32 %v1129_v3, %v1128_v13  ;;  %v4015_v12 = vld [vmem:[%s4924_s7 + $0x48] sm:$0xff]  ;;  %v3193_v13 = vld [vmem:[%s4924_s7 + $0x80] sm:$0xff] }
 0x46a   :  { %1493 = vmatpush.bf16.msra.mxu1 %v3194_v9  ;;  %v3248_v9 = vld [vmem:[%s4926_s9 + $0x174] sm:$0xf0] }
 0x46b   :  { %v1135_v5 = vmin.f32 %v1131_v31, 0.0  ;;  %vm1133_vm12 = vcmp.gt.f32.partialorder %v1131_v31, 0.0 }
 0x46d   :  { %v3383_v15 = vpop.eup %3382  ;;  %v1138_v17 = vmul.f32 1.442695, %v1135_v5  ;;  %v4027_v5 = vld [vmem:[%s4924_s7 + $0x40] sm:$0xff] }
 0x46e   :  { %v2671_v18 = vadd.f32 -1.0, %v3383_v15  ;;  %1494 = vmatpush.bf16.msra.mxu1 %v3193_v13  ;;  %v3192_v15 = vld [vmem:[%s4924_s7 + $0x78] sm:$0xff] }
 0x46f   :  { %3384 = vpow2.f32 %v1138_v17  ;;  %v3180_v17 = vld [vmem:[%s4924_s7 + $0x18] sm:$0xff] }
 0x470   :  { %v1142_v19 = vsel %vm1132_vm11, %v1130_v32, %v2671_v18  ;;  %v3991_v32 = vld [vmem:[%s4924_s7 + $0x58] sm:$0xff]  ;;  %v3191_v18 = vld [vmem:[%s4924_s7 + $0x70] sm:$0xff] }
 0x471   :  { %v1154_v58 = vmul.f32 %v1142_v19, %v1142_v19  ;;  %v1144_v25 = vsel %vm951_vm9, %v1142_v19, 0.0  ;;  %1375 = vmatpush.bf16.msrb.mxu3 %v3991_v32 }
 0x472   :  { %1495 = vmatpush.bf16.msra.mxu1 %v3192_v15 }
 0x473   :  { %v1156_v23 = vsel %vm951_vm9, %v1154_v58, 0.0  ;;  %v3189_v58 = vld [vmem:[%s4924_s7 + $0x60] sm:$0xff] }
 0x475   :  { %v3385_v20 = vpop.eup %3384  ;;  %1376 = vmatpush.bf16.msrb.mxu3 %v4003_v8 }
 0x476   :  { %v2672_v21 = vadd.f32 -1.0, %v3385_v20  ;;  %1496 = vmatpush.bf16.msra.mxu1 %v3191_v18  ;;  %v3190_v20 = vld [vmem:[%s4924_s7 + $0x68] sm:$0xff]  ;;  %v2823_v18 = vld [vmem:[%s4926_s9 + $0x60] sm:$0xf] }
 0x478   :  { %v1143_v22 = vsel %vm1133_vm12, %v1131_v31, %v2672_v21  ;;  %v3181_v31 = vld [vmem:[%s4924_s7 + $0x20] sm:$0xff]  ;;  %v3178_v21 = vld [vmem:[%s4924_s7 + $0x8] sm:$0xff] }
 0x479   :  { %v1145_v56 = vsel %vm951_vm9, %v1143_v22, 0.0  ;;  %v1155_v28 = vmul.f32 %v1143_v22, %v1143_v22  ;;  %1377 = vmatpush.bf16.msrb.mxu3 %v4015_v12 }
 0x47a   :  { %v1146_v49 = vadd.f32 %v1145_v56, %v1144_v25  ;;  %1497 = vmatpush.bf16.msra.mxu1 %v3190_v20  ;;  %v3200_v25 = vld [vmem:[%s4924_s7 + $0xb8] sm:$0xff]  ;;  %v3199_v56 = vld [vmem:[%s4924_s7 + $0xb0] sm:$0xff]  ;;  %v2887_v20 = vld [vmem:[%s4926_s9 + $0xe0] sm:$0xf] }
 0x47b   :  { %v1157_v26 = vsel %vm951_vm9, %v1155_v28, 0.0  ;;  %v3198_v28 = vld [vmem:[%s4924_s7 + $0xa8] sm:$0xff] }
 0x47c   :  { %v1147_v24 = vrot.slane %v1146_v49, 4  ;;  %v1158_v2 = vadd.f32 %v1157_v26, %v1156_v23 }
 0x47d   :  { %1378 = vmatpush.bf16.msrb.mxu3 %v4027_v5 }
 0x47e   :  { %v1148_v42 = vadd.f32 %v1147_v24, %v1146_v49  ;;  %v1159_v50 = vrot.slane %v1158_v2, 4  ;;  %1498 = vmatpush.bf16.msra.mxu1 %v3189_v58  ;;  %v3197_v49 = vld [vmem:[%s4924_s7 + $0xa0] sm:$0xff]  ;;  %v3230_v58 = vld [vmem:[%s4926_s9 + $0xe4] sm:$0xf0] }
 0x480   :  { %v1149_v33 = vrot.slane %v1148_v42, 2  ;;  %v1160_v1 = vadd.f32 %v1159_v50, %v1158_v2 }
 0x482   :  { %v1150_v34 = vadd.f32 %v1149_v33, %v1148_v42  ;;  %v1161_v35 = vrot.slane %v1160_v1, 2 }
 0x484   :  { %v1151_v36 = vrot.slane %v1150_v34, 1  ;;  %v1162_v38 = vadd.f32 %v1161_v35, %v1160_v1 }
 0x486   :  { %v1152_v37 = vadd.f32 %v1151_v36, %v1150_v34  ;;  %v1163_v39 = vrot.slane %v1162_v38, 1 }
 0x488   :  { %v1153_v40 = vmul.f32 0.0625, %v1152_v37  ;;  %v1164_v16 = vadd.f32 %v1163_v39, %v1162_v38 }
 0x48a   :  { %v1165_v27 = vmul.f32 0.0625, %v1164_v16  ;;  %v1166_v43 = vmul.f32 %v1153_v40, %v1153_v40 }
 0x48c   :  { %v1167_v54 = vsub.f32 %v1165_v27, %v1166_v43 }
 0x48e   :  { %v1168_v44 = vmax.f32 %v1167_v54, 0.0 }
 0x490   :  { %v1169_v6 = vadd.f32 1e-05, %v1168_v44 }
 0x492   :  { %3386 = vrsqrt.f32 %v1169_v6  ;;  %vm1176_vm15 = vweird.f32 %v1169_v6 }
 0x498   :  { %v3387_v46 = vpop.eup %3386 }
 0x499   :  { %v1171_v47 = vmul.f32 %v3387_v46, %v1169_v6  ;;  %vm1177_vm14 = vweird.f32 %v3387_v46 }
 0x49a   :  { %vm1178_vm0 = vmor %vm1176_vm15, %vm1177_vm14 }
 0x49b   :  { %v1172_v48 = vmul.f32 %v3387_v46, %v1171_v47 }
 0x49d   :  { %v1173_v61 = vmul.f32 0.5, %v1172_v48 }
 0x49f   :  { %v1174_v53 = vsub.f32 1.5, %v1173_v61 }
 0x4a1   :  { %v1175_v41 = vmul.f32 %v3387_v46, %v1174_v53 }
 0x4a3   :  { %v1179_v51 = vsel %vm1178_vm0, %v3387_v46, %v1175_v41 }
 0x4a4   :  { %v1180_v4 = vmul.f32 %v1179_v51, %v3967_v14 }
 0x4a6   :  { %v1181_v10 = vmul.f32 %v1180_v4, %v1153_v40  ;;  %v1186_v60 = vperm.slane %v1180_v4, 1 }
 0x4a8   :  { %v1183_v45 = vrot.slane %v1181_v10, 7  ;;  %v1187_v52 = vmul.f32 %v1186_v60, %v1142_v19  ;;  %v1188_v55 = vmul.f32 %v1186_v60, %v1143_v22  ;;  %v3179_v19 = vld [vmem:[%s4924_s7 + $0x10] sm:$0xff]  ;;  %v3177_v22 = vld [vmem:[%s4924_s7] sm:$0xff] }
 0x4aa   :  { %v1185_v30 = vsub.f32 %v3967_v14, %v1183_v45  ;;  %v3184_v14 = vld [vmem:[%s4924_s7 + $0x38] sm:$0xff] }
 0x4ab   :  { %1358 = vmatpush.bf16.msrb.mxu2 %v3184_v14  ;;  %1393 = vmatpush.bf16.msra.mxu3 %v3184_v14  ;;  %v3216_v14 = vld [vmem:[%s4926_s9 + $0x74] sm:$0xf0] }
 0x4ac   :  { %v1189_v0 = vperm.slane %v1185_v30, 2  ;;  %v4092_v7 = vor.u32 %v3216_v14, %v2831_v62  ;;  %v3207_v62 = vld [vmem:[%s4926_s9 + $0x34] sm:$0xf]  ;;  %v2801_v14 = vld [vmem:[%s4926_s9 + $0x38] sm:$0xf0] }
 0x4ae   :  { %v1190_v57 = vadd.f32 %v1189_v0, %v1187_v52  ;;  %v1191_v59 = vadd.f32 %v1189_v0, %v1188_v55  ;;  %v4080_v55 = vld [vmem:[%s4925_s8] sm:$0x7]  ;;  %1941 = vmatpush.bf16.msra.mxu0 %v4092_v7 }
 0x4af   :  { %1359 = vmatpush.bf16.msrb.mxu2 %v3183_v63  ;;  %1394 = vmatpush.bf16.msra.mxu3 %v3183_v63  ;;  %v3232_v63 = vld [vmem:[%s4926_s9 + $0xf4] sm:$0xf0] }
 0x4b0   :  { %1194 = vst.msk [vmem:[#allocation4 + $0x1] sm:$0xff] %vm951_vm9, %v1190_v57 }
 0x4b1   :  { %1196 = vst.msk [vmem:[#allocation4 + $0xa] sm:$0xff] %vm951_vm9, %v1191_v59  ;;  %v1518_v59 = vperm.slane %v4080_v55, 0 }
 0x4b3   :  { %1360 = vmatpush.bf16.msrb.mxu2 %v3182_v11  ;;  %1395 = vmatpush.bf16.msra.mxu3 %v3182_v11 }
 0x4b7   :  { %v1199_v29 = vld [vmem:[#allocation4 + $0x1] ss:$2 sm:$0xf]  ;;  %1361 = vmatpush.bf16.msrb.mxu2 %v3181_v31  ;;  %1396 = vmatpush.bf16.msra.mxu3 %v3181_v31  ;;  %v1197_v1 = vld [vmem:[#allocation4] ss:$2 sm:$0xf] }
 0x4b8   :  { %v1210_v3 = vld [vmem:[#allocation4 + $0xa] ss:$2 sm:$0xf]  ;;  %1203 = vrot.lane.b32.xlu0 %v1199_v29, %s3411_s4  ;;  %v1212_v26 = vld [vmem:[#allocation4 + $0xb] ss:$2 sm:$0xf] }
 0x4b9   :  { %1214 = vrot.lane.b32.xlu2 %v1210_v3, %s3411_s4  ;;  %v1208_v24 = vld [vmem:[#allocation4 + $0x9] ss:$2 sm:$0xf]  ;;  %v1221_v42 = vrot.slane %v1212_v26, 4  ;;  %v3215_v31 = vld [vmem:[%s4926_s9 + $0x74] sm:$0xf] }
 0x4ba   :  { %v1201_v34 = vld [vmem:[#allocation4 + $0x2] ss:$2 sm:$0xf]  ;;  %v2825_v26 = vld [vmem:[%s4926_s9 + $0x68] sm:$0xf0] }
 0x4bb   :  { %1362 = vmatpush.bf16.msrb.mxu2 %v3180_v17  ;;  %1397 = vmatpush.bf16.msra.mxu3 %v3180_v17  ;;  %v1226_v36 = vsel %vm1224_vm1, %v1201_v34, %v1221_v42  ;;  %v2879_v34 = vld [vmem:[%s4926_s9 + $0xd0] sm:$0xf] }
 0x4bf   :  { %1363 = vmatpush.bf16.msrb.mxu2 %v3179_v19  ;;  %1398 = vmatpush.bf16.msra.mxu3 %v3179_v19  ;;  %v3214_v19 = vld [vmem:[%s4926_s9 + $0x64] sm:$0xf0] }
 0x4c3   :  { %1364 = vmatpush.bf16.msrb.mxu2 %v3178_v21  ;;  %1399 = vmatpush.bf16.msra.mxu3 %v3178_v21  ;;  %v4130_v21 = vor.u32 %v3214_v19, %v2823_v18  ;;  %v2855_v18 = vld [vmem:[%s4926_s9 + $0xa0] sm:$0xf]  ;;  %v3222_v19 = vld [vmem:[%s4926_s9 + $0xa4] sm:$0xf0] }
 0x4c5   :  { %1942 = vmatpush.bf16.msra.mxu0 %v4130_v21 }
 0x4c7   :  { %1365 = vmatpush.bf16.msrb.mxu2 %v3177_v22  ;;  %1400 = vmatpush.bf16.msra.mxu3 %v3177_v22  ;;  %v2951_v22 = vld [vmem:[%s4926_s9 + $0x160] sm:$0xf] }
 0x4cb   :  { %1508 = vmatpush.bf16.msra.mxu2 %v3200_v25  ;;  %v3246_v25 = vld [vmem:[%s4926_s9 + $0x164] sm:$0xf0] }
 0x4cf   :  { %1509 = vmatpush.bf16.msra.mxu2 %v3199_v56 }
 0x4d3   :  { %1510 = vmatpush.bf16.msra.mxu2 %v3198_v28  ;;  %v4142_v28 = vor.u32 %v3230_v58, %v2887_v20  ;;  %v2919_v20 = vld [vmem:[%s4926_s9 + $0x120] sm:$0xf] }
 0x4d7   :  { %1511 = vmatpush.bf16.msra.mxu2 %v3197_v49  ;;  %v4144_v49 = vor.u32 %v3246_v25, %v2951_v22  ;;  %v4291_v25 = vor.u32 %v3222_v19, %v2855_v18  ;;  %v2777_v18 = vld [vmem:[%s4926_s9 + $0x8] sm:$0xf0]  ;;  %v3231_v19 = vld [vmem:[%s4926_s9 + $0xf4] sm:$0xf] }
 0x513   :  { %v1215_v23 = vpop.permute.xlu2 %1214 }
 0x514   :  { %v1217_v2 = vsel %vm951_vm9, %v1208_v24, %v1215_v23  ;;  %v3213_v23 = vld [vmem:[%s4926_s9 + $0x64] sm:$0xf] }
 0x515   :  { %v1220_v50 = vrot.slane %v1217_v2, 4  ;;  %v4153_v2 = vor.u32 %v3213_v23, %v2825_v26  ;;  %v3205_v23 = vld [vmem:[%s4926_s9 + $0x24] sm:$0xf] }
 0x52a   :  { %v1204_v33 = vpop.permute.xlu0 %1203 }
 0x52b   :  { %v1206_v35 = vsel %vm951_vm9, %v1197_v1, %v1204_v33  ;;  %v3212_v33 = vld [vmem:[%s4926_s9 + $0x54] sm:$0xf0] }
 0x52c   :  { %v1225_v38 = vsel %vm1224_vm1, %v1206_v35, %v1220_v50  ;;  %v2815_v50 = vld [vmem:[%s4926_s9 + $0x50] sm:$0xf]  ;;  %v3228_v35 = vld [vmem:[%s4926_s9 + $0xd4] sm:$0xf0] }
 0x52d   :  { %v1228_v37 = vpack.c.bf16 %v1226_v36, %v1225_v38  ;;  %v4164_v1 = vor.u32 %v3212_v33, %v2815_v50 }
 0x52f   :  { %v1230_v39 = vunpack.c.h.bf16 %v1228_v37  ;;  %v1385_v40 = vunpack.c.l.b16 %v1228_v37  ;;  %v1229_v16 = vunpack.c.l.bf16 %v1228_v37  ;;  %v1386_v46 = vunpack.c.h.b16 %v1228_v37  ;;  %v3244_v37 = vld [vmem:[%s4926_s9 + $0x154] sm:$0xf0]  ;;  %1943 = vmatpush.bf16.msra.mxu0 %v4164_v1 }
 0x531   :  { %v1232_v27 = vsub.f32 %v1226_v36, %v1230_v39  ;;  %v1387_v43 = vpack.c.b16 %v1385_v40, %v1385_v40  ;;  %v1231_v54 = vsub.f32 %v1225_v38, %v1229_v16  ;;  %v1388_v47 = vpack.c.b16 %v1386_v46, %v1386_v46  ;;  %v2943_v36 = vld [vmem:[%s4926_s9 + $0x150] sm:$0xf]  ;;  %v3211_v39 = vld [vmem:[%s4926_s9 + $0x54] sm:$0xf]  ;;  %v2817_v40 = vld [vmem:[%s4926_s9 + $0x58] sm:$0xf0] }
 0x532   :  { %v4175_v38 = vor.u32 %v3228_v35, %v2879_v34  ;;  %v4187_v16 = vor.u32 %v3244_v37, %v2943_v36  ;;  %v3226_v46 = vld [vmem:[%s4926_s9 + $0xc4] sm:$0xf0]  ;;  %v2783_v34 = vld [vmem:[%s4926_s9 + $0x10] sm:$0xf]  ;;  %v3204_v35 = vld [vmem:[%s4926_s9 + $0x14] sm:$0xf0] }
 0x533   :  { %1499 = vmatmul.bf16.vlgmr.msra.gmra.mxu1 %v1387_v43  ;;  %v1233_v44 = vpack.c.bf16 %v1231_v54, %v1231_v54  ;;  %v1234_v6 = vpack.c.bf16 %v1232_v27, %v1232_v27  ;;  %v4189_v27 = vor.u32 %v3211_v39, %v2817_v40  ;;  %v3210_v54 = vld [vmem:[%s4926_s9 + $0x44] sm:$0xf0]  ;;  %v4315_v36 = vor.u32 %v3204_v35, %v2783_v34  ;;  %v2847_v37 = vld [vmem:[%s4926_s9 + $0x90] sm:$0xf]  ;;  %v3220_v39 = vld [vmem:[%s4926_s9 + $0x94] sm:$0xf0] }
 0x534   :  { %v2911_v40 = vld [vmem:[%s4926_s9 + $0x110] sm:$0xf]  ;;  %v3229_v34 = vld [vmem:[%s4926_s9 + $0xe4] sm:$0xf]  ;;  %v2889_v35 = vld [vmem:[%s4926_s9 + $0xe8] sm:$0xf0] }
 0x535   :  { %1366 = vmatmul.bf16.vlgmr.msrb.gmra.mxu2 %v1233_v44  ;;  %2721 = vmatmul.msk.bf16.vlgmr.msrb.gmra.mxu3 %vm951_vm9, %v1234_v6  ;;  %v2871_v44 = vld [vmem:[%s4926_s9 + $0xc0] sm:$0xf] }
 0x536   :  { %1410 = vmatpush.bf16.msrb.mxu3 %v3991_v32  ;;  %v2895_v32 = vld [vmem:[%s4926_s9 + $0xf0] sm:$0xf] }
 0x53a   :  { %1411 = vmatpush.bf16.msrb.mxu3 %v4003_v8  ;;  %v2959_v8 = vld [vmem:[%s4926_s9 + $0x170] sm:$0xf] }
 0x53b   :  { %v4105_v13 = vor.u32 %v3248_v9, %v2959_v8  ;;  %v4265_v8 = vor.u32 %v3207_v62, %v2801_v14 }
 0x53e   :  { %1412 = vmatpush.bf16.msrb.mxu3 %v4015_v12  ;;  %v4103_v12 = vor.u32 %v3232_v63, %v2895_v32 }
 0x540   :  { %1954 = vmatpush.bf16.msrb.mxu2 %v4103_v12 }
 0x542   :  { %1413 = vmatpush.bf16.msrb.mxu3 %v4027_v5  ;;  %v2833_v5 = vld [vmem:[%s4926_s9 + $0x78] sm:$0xf0] }
 0x543   :  { %v4114_v15 = vor.u32 %v3215_v31, %v2833_v5  ;;  %v2791_v31 = vld [vmem:[%s4926_s9 + $0x20] sm:$0xf]  ;;  %v3206_v5 = vld [vmem:[%s4926_s9 + $0x24] sm:$0xf0] }
 0x544   :  { %1955 = vmatpush.bf16.msrb.mxu2 %v4142_v28 }
 0x545   :  { %1401 = vmatmul.bf16.vlgmr.msra.gmra.mxu3 %v1387_v43  ;;  %2771 = vmatmul.msk.bf16.vlgmr.msra.gmra.mxu2 %vm951_vm9, %v1388_v47  ;;  %v2807_v43 = vld [vmem:[%s4926_s9 + $0x40] sm:$0xf] }
 0x546   :  { %1967 = vmatpush.bf16.msra.mxu3 %v4105_v13  ;;  %1980 = vmatpush.bf16.msrb.mxu1 %v4114_v15  ;;  %v4203_v6 = vor.u32 %v3210_v54, %v2807_v43 }
 0x548   :  { %1956 = vmatpush.bf16.msrb.mxu2 %v4175_v38  ;;  %1944 = vmatpush.bf16.msra.mxu0 %v4203_v6 }
 0x54a   :  { %1968 = vmatpush.bf16.msra.mxu3 %v4144_v49  ;;  %1981 = vmatpush.bf16.msrb.mxu1 %v4153_v2 }
 0x54e   :  { %1969 = vmatpush.bf16.msra.mxu3 %v4187_v16  ;;  %1982 = vmatpush.bf16.msrb.mxu1 %v4189_v27 }
 0x555   :  { %2722 = vmatmul.msk.bf16.vlgmr.msrb.gmra.mxu3 %vm951_vm9, %v1388_v47  ;;  %v2935_v47 = vld [vmem:[%s4926_s9 + $0x140] sm:$0xf] }
 0x5b0   :  { %v1500_v48 = vpop.f32.mrf.mxu1 }
 0x5b8   :  { %v1367_v61 = vpop.f32.mrf.mxu2  ;;  %v1380_v53 = vpop.f32.mrf.mxu3 }
 0x5b9   :  { %v1502_v41 = vpop.f32.mrf.mxu1  ;;  %v1381_v52 = vadd.f32 %v1380_v53, %v1367_v61  ;;  %v4214_v61 = vor.u32 %v3226_v46, %v2871_v44  ;;  %v4327_v44 = vor.u32 %v3220_v39, %v2847_v37  ;;  %v3236_v46 = vld [vmem:[%s4926_s9 + $0x114] sm:$0xf0]  ;;  %v3245_v37 = vld [vmem:[%s4926_s9 + $0x164] sm:$0xf] }
 0x5ba   :  { %v3209_v41 = vld [vmem:[%s4926_s9 + $0x44] sm:$0xf] }
 0x5bb   :  { %1957 = vmatpush.bf16.msrb.mxu2 %v4214_v61 }
 0x5c0   :  { %v1369_v51 = vpop.f32.mrf.mxu2  ;;  %v1382_v4 = vpop.f32.mrf.mxu3 }
 0x5c1   :  { %v2809_v51 = vld [vmem:[%s4926_s9 + $0x48] sm:$0xf0] }
 0x5c2   :  { %v4225_v4 = vor.u32 %v3209_v41, %v2809_v51  ;;  %v2785_v41 = vld [vmem:[%s4926_s9 + $0x18] sm:$0xf0] }
 0x5c4   :  { %1983 = vmatpush.bf16.msrb.mxu1 %v4225_v4 }
 0x5c8   :  { %v1402_v10 = vpop.f32.mrf.mxu3  ;;  %v1513_v45 = vpop.f32.mrf.mxu2  ;;  %1984 = vmatpush.bf16.msrb.mxu1 %v4265_v8 }
 0x5c9   :  { %v1403_v0 = vadd.f32 %v1402_v10, %v1381_v52  ;;  %v1514_v29 = vadd.f32 %v1513_v45, %v1500_v48  ;;  %v3242_v48 = vld [vmem:[%s4926_s9 + $0x144] sm:$0xf0]  ;;  %v2799_v45 = vld [vmem:[%s4926_s9 + $0x30] sm:$0xf] }
 0x5ca   :  { %v4216_v53 = vor.u32 %v3242_v48, %v2935_v47  ;;  %v3203_v47 = vld [vmem:[%s4926_s9 + $0x14] sm:$0xf]  ;;  %v4336_v48 = vor.u32 %v3236_v46, %v2911_v40 }
 0x5cc   :  { %1970 = vmatpush.bf16.msra.mxu3 %v4216_v53 }
 0x5d0   :  { %v1404_v60 = vpop.f32.mrf.mxu3  ;;  %v1515_v30 = vpop.f32.mrf.mxu2 }
 0x5d1   :  { %v3208_v60 = vld [vmem:[%s4926_s9 + $0x34] sm:$0xf0]  ;;  %v2863_v30 = vld [vmem:[%s4926_s9 + $0xb0] sm:$0xf] }
 0x5d8   :  { %v1415_v57 = vpop.f32.mrf.mxu3 }
 0x5d9   :  { %v1416_v3 = vadd.f32 %v1415_v57, %v1403_v0  ;;  %v4240_v0 = vor.u32 %v3208_v60, %v2799_v45  ;;  %v3224_v57 = vld [vmem:[%s4926_s9 + $0xb4] sm:$0xf0]  ;;  %v4342_v45 = vor.u32 %v3203_v47, %v2785_v41  ;;  %v2775_v60 = vld [vmem:[%s4926_s9] sm:$0xf]  ;;  %v3227_v41 = vld [vmem:[%s4926_s9 + $0xd4] sm:$0xf] }
 0x5db   :  { %v1517_v11 = vadd.f32 %v1514_v29, %v1416_v3  ;;  %v4248_v29 = vor.u32 %v3224_v57, %v2863_v30  ;;  %v3240_v3 = vld [vmem:[%s4926_s9 + $0x134] sm:$0xf0]  ;;  %1945 = vmatpush.bf16.msra.mxu0 %v4240_v0  ;;  %v3202_v30 = vld [vmem:[%s4926_s9 + $0x4] sm:$0xf0]  ;;  %v2839_v57 = vld [vmem:[%s4926_s9 + $0x80] sm:$0xf] }
 0x5dd   :  { %v4116_v17 = vadd.f32 %v1518_v59, %v1517_v11  ;;  %v2927_v59 = vld [vmem:[%s4926_s9 + $0x130] sm:$0xf]  ;;  %1958 = vmatpush.bf16.msrb.mxu2 %v4248_v29 }
 0x5de   :  { %v4263_v63 = vor.u32 %v3240_v3, %v2927_v59  ;;  %v3218_v59 = vld [vmem:[%s4926_s9 + $0x84] sm:$0xf0]  ;;  %v2903_v3 = vld [vmem:[%s4926_s9 + $0x100] sm:$0xf] }
 0x5df   :  { %v1521_v56 = vmin.f32 %v4116_v17, 0.0  ;;  %vm1520_vm2 = vcmp.gt.f32.partialorder %v4116_v17, 0.0 }
 0x5e0   :  { %v1417_v24 = vpop.f32.mrf.mxu3  ;;  %1971 = vmatpush.bf16.msra.mxu3 %v4263_v63 }
 0x5e1   :  { %v1522_v42 = vmul.f32 1.442695, %v1521_v56  ;;  %v3238_v56 = vld [vmem:[%s4926_s9 + $0x124] sm:$0xf0]  ;;  %v2793_v24 = vld [vmem:[%s4926_s9 + $0x28] sm:$0xf0]  ;;  %1959 = vmatpush.bf16.msrb.mxu2 %v4291_v25 }
 0x5e2   :  { %v4300_v26 = vor.u32 %v3238_v56, %v2919_v20  ;;  %v4306_v33 = vor.u32 %v3205_v23, %v2793_v24  ;;  %v2897_v20 = vld [vmem:[%s4926_s9 + $0xf8] sm:$0xf0]  ;;  %v3247_v24 = vld [vmem:[%s4926_s9 + $0x174] sm:$0xf] }
 0x5e3   :  { %3388 = vpow2.f32 %v1522_v42  ;;  %v4388_v23 = vor.u32 %v3231_v19, %v2897_v20 }
 0x5e4   :  { %1972 = vmatpush.bf16.msra.mxu3 %v4300_v26  ;;  %1985 = vmatpush.bf16.msrb.mxu1 %v4306_v33 }
 0x5e5   :  { %1960 = vmatpush.bf16.msrb.mxu2 %v4327_v44 }
 0x5e8   :  { %1973 = vmatpush.bf16.msra.mxu3 %v4336_v48  ;;  %1986 = vmatpush.bf16.msrb.mxu1 %v4342_v45 }
 0x5e9   :  { %v3389_v10 = vpop.eup %3388 }
 0x5ea   :  { %v2772_v52 = vadd.f32 -1.0, %v3389_v10 }
 0x5ec   :  { %v4260_v32 = vsel %vm1520_vm2, %v4116_v17, %v2772_v52  ;;  %v4279_v17 = vor.u32 %v3206_v5, %v2791_v31  ;;  %v4351_v52 = vor.u32 %v3202_v30, %v2775_v60  ;;  %v3201_v31 = vld [vmem:[%s4926_s9 + $0x4] sm:$0xf] }
 0x5ed   :  { %v1526_v9 = vrot.slane %v4260_v32, 4  ;;  %v1533_v11 = vmul.f32 %v4260_v32, %v4260_v32  ;;  %v4386_v56 = vor.u32 %v3201_v31, %v2777_v18  ;;  %v2865_v31 = vld [vmem:[%s4926_s9 + $0xb8] sm:$0xf0]  ;;  %v3239_v18 = vld [vmem:[%s4926_s9 + $0x134] sm:$0xf] }
 0x5ee   :  { %1946 = vmatpush.bf16.msra.mxu0 %v4279_v17 }
 0x5ef   :  { %v1527_v58 = vadd.f32 %v1526_v9, %v4260_v32  ;;  %v1534_v22 = vrot.slane %v1533_v11, 4  ;;  %v4363_v9 = vor.u32 %v3218_v59, %v2839_v57  ;;  %1987 = vmatpush.bf16.msrb.mxu1 %v4386_v56  ;;  %v3225_v59 = vld [vmem:[%s4926_s9 + $0xc4] sm:$0xf] }
 0x5f1   :  { %v1528_v42 = vrot.slane %v1527_v58, 2  ;;  %v1535_v50 = vadd.f32 %v1534_v22, %v1533_v11  ;;  %v3234_v11 = vld [vmem:[%s4926_s9 + $0x104] sm:$0xf0]  ;;  %1961 = vmatpush.bf16.msrb.mxu2 %v4363_v9 }
 0x5f2   :  { %1947 = vmatpush.bf16.msra.mxu0 %v4315_v36  ;;  %v4372_v5 = vor.u32 %v3234_v11, %v2903_v3  ;;  %v2873_v3 = vld [vmem:[%s4926_s9 + $0xc8] sm:$0xf0]  ;;  %v3223_v11 = vld [vmem:[%s4926_s9 + $0xb4] sm:$0xf] }
 0x5f3   :  { %v1529_v43 = vadd.f32 %v1528_v42, %v1527_v58  ;;  %v1536_v54 = vrot.slane %v1535_v50, 2  ;;  %v2961_v42 = vld [vmem:[%s4926_s9 + $0x178] sm:$0xf0]  ;;  %2043 = vmatpush.bf16.msra.mxu1 %v4103_v12  ;;  %v4475_v19 = vor.u32 %v3223_v11, %v2865_v31 }
 0x5f4   :  { %1974 = vmatpush.bf16.msra.mxu3 %v4372_v5  ;;  %v2945_v12 = vld [vmem:[%s4926_s9 + $0x158] sm:$0xf0] }
 0x5f5   :  { %v1530_v51 = vrot.slane %v1529_v43, 1  ;;  %v1537_v10 = vadd.f32 %v1536_v54, %v1535_v50  ;;  %v4397_v50 = vor.u32 %v3247_v24, %v2961_v42  ;;  %v2953_v54 = vld [vmem:[%s4926_s9 + $0x168] sm:$0xf0]  ;;  %v3237_v42 = vld [vmem:[%s4926_s9 + $0x124] sm:$0xf] }
 0x5f6   :  { %1948 = vmatpush.bf16.msra.mxu0 %v4351_v52  ;;  %v4419_v46 = vor.u32 %v3245_v37, %v2953_v54  ;;  %v3235_v54 = vld [vmem:[%s4926_s9 + $0x114] sm:$0xf] }
 0x5f7   :  { %v1531_v62 = vadd.f32 %v1530_v51, %v1529_v43  ;;  %v1538_v14 = vrot.slane %v1537_v10, 1  ;;  %v4412_v43 = vor.u32 %v3229_v34, %v2889_v35  ;;  %2006 = vmatpush.bf16.msra.mxu2 %v4397_v50  ;;  %v2881_v51 = vld [vmem:[%s4926_s9 + $0xd8] sm:$0xf0]  ;;  %2044 = vmatpush.bf16.msra.mxu1 %v4142_v28  ;;  %v2937_v28 = vld [vmem:[%s4926_s9 + $0x148] sm:$0xf0] }
 0x5f8   :  { %2030 = vmatpush.bf16.msrb.mxu3 %v4092_v7  ;;  %v4432_v7 = vor.u32 %v3227_v41, %v2881_v51 }
 0x5f9   :  { %v4383_v58 = vmul.f32 0.125, %v1531_v62  ;;  %v1539_v22 = vadd.f32 %v1538_v14, %v1537_v10  ;;  %v3243_v10 = vld [vmem:[%s4926_s9 + $0x154] sm:$0xf]  ;;  %v3241_v62 = vld [vmem:[%s4926_s9 + $0x144] sm:$0xf] }
 0x5fa   :  { %1993 = vmatpush.bf16.msrb.mxu0 %v4388_v23  ;;  %v4439_v30 = vor.u32 %v3243_v10, %v2945_v12  ;;  %v4459_v14 = vor.u32 %v3241_v62, %v2937_v28  ;;  %v3217_v10 = vld [vmem:[%s4926_s9 + $0x84] sm:$0xf] }
 0x5fb   :  { %v1540_v39 = vmul.f32 0.125, %v1539_v22  ;;  %v1541_v40 = vmul.f32 %v4383_v58, %v4383_v58  ;;  %2007 = vmatpush.bf16.msra.mxu2 %v4419_v46  ;;  %2045 = vmatpush.bf16.msra.mxu1 %v4175_v38  ;;  %v3221_v38 = vld [vmem:[%s4926_s9 + $0xa4] sm:$0xf]  ;;  %v2857_v22 = vld [vmem:[%s4926_s9 + $0xa8] sm:$0xf0] }
 0x5fc   :  { %2031 = vmatpush.bf16.msrb.mxu3 %v4130_v21  ;;  %v4452_v21 = vor.u32 %v3225_v59, %v2873_v3  ;;  %v4495_v35 = vor.u32 %v3221_v38, %v2857_v22  ;;  %v3233_v12 = vld [vmem:[%s4926_s9 + $0x104] sm:$0xf] }
 0x5fd   :  { %v1542_v47 = vsub.f32 %v1540_v39, %v1541_v40  ;;  %v2849_v40 = vld [vmem:[%s4926_s9 + $0x98] sm:$0xf0] }
 0x5fe   :  { %1994 = vmatpush.bf16.msrb.mxu0 %v4412_v43 }
 0x5ff   :  { %v1543_v60 = vmax.f32 %v1542_v47, 0.0  ;;  %2008 = vmatpush.bf16.msra.mxu2 %v4439_v30  ;;  %2046 = vmatpush.bf16.msra.mxu1 %v4214_v61  ;;  %v3219_v61 = vld [vmem:[%s4926_s9 + $0x94] sm:$0xf] }
 0x600   :  { %2032 = vmatpush.bf16.msrb.mxu3 %v4164_v1  ;;  %v2929_v1 = vld [vmem:[%s4926_s9 + $0x138] sm:$0xf0]  ;;  %v4515_v41 = vor.u32 %v3219_v61, %v2849_v40 }
 0x601   :  { %v1544_v57 = vadd.f32 1e-05, %v1543_v60  ;;  %v4479_v20 = vor.u32 %v3239_v18, %v2929_v1  ;;  %v2841_v60 = vld [vmem:[%s4926_s9 + $0x88] sm:$0xf0] }
 0x602   :  { %1995 = vmatpush.bf16.msrb.mxu0 %v4432_v7  ;;  %v4535_v3 = vor.u32 %v3217_v10, %v2841_v60 }
 0x603   :  { %3390 = vrsqrt.f32 %v1544_v57  ;;  %2009 = vmatpush.bf16.msra.mxu2 %v4459_v14  ;;  %2047 = vmatpush.bf16.msra.mxu1 %v4248_v29  ;;  %vm1551_vm4 = vweird.f32 %v1544_v57 }
 0x604   :  { %2033 = vmatpush.bf16.msrb.mxu3 %v4203_v6  ;;  %v2921_v6 = vld [vmem:[%s4926_s9 + $0x128] sm:$0xf0] }
 0x605   :  { %v4499_v39 = vor.u32 %v3237_v42, %v2921_v6 }
 0x606   :  { %1996 = vmatpush.bf16.msrb.mxu0 %v4452_v21 }
 0x607   :  { %2010 = vmatpush.bf16.msra.mxu2 %v4479_v20  ;;  %2048 = vmatpush.bf16.msra.mxu1 %v4291_v25 }
 0x608   :  { %2034 = vmatpush.bf16.msrb.mxu3 %v4240_v0  ;;  %v2913_v0 = vld [vmem:[%s4926_s9 + $0x118] sm:$0xf0] }
 0x609   :  { %v3391_v24 = vpop.eup %3390  ;;  %v4519_v29 = vor.u32 %v3235_v54, %v2913_v0 }
 0x60a   :  { %v1546_v34 = vmul.f32 %v3391_v24, %v1544_v57  ;;  %1997 = vmatpush.bf16.msrb.mxu0 %v4475_v19  ;;  %vm1552_vm3 = vweird.f32 %v3391_v24 }
 0x60b   :  { %2011 = vmatpush.bf16.msra.mxu2 %v4499_v39  ;;  %vm1553_vm5 = vmor %vm1551_vm4, %vm1552_vm3  ;;  %2049 = vmatpush.bf16.msra.mxu1 %v4327_v44 }
 0x60c   :  { %v1547_v37 = vmul.f32 %v3391_v24, %v1546_v34  ;;  %2035 = vmatpush.bf16.msrb.mxu3 %v4279_v17  ;;  %v2905_v17 = vld [vmem:[%s4926_s9 + $0x108] sm:$0xf0] }
 0x60d   :  { %v4539_v25 = vor.u32 %v3233_v12, %v2905_v17 }
 0x60e   :  { %v1548_v47 = vmul.f32 0.5, %v1547_v37  ;;  %1998 = vmatpush.bf16.msrb.mxu0 %v4495_v35 }
 0x60f   :  { %2012 = vmatpush.bf16.msra.mxu2 %v4519_v29  ;;  %2050 = vmatpush.bf16.msra.mxu1 %v4363_v9 }
 0x610   :  { %v1549_v51 = vsub.f32 1.5, %v1548_v47  ;;  %2036 = vmatpush.bf16.msrb.mxu3 %v4315_v36 }
 0x612   :  { %v1550_v59 = vmul.f32 %v3391_v24, %v1549_v51  ;;  %1999 = vmatpush.bf16.msrb.mxu0 %v4515_v41 }
 0x613   :  { %2013 = vmatpush.bf16.msra.mxu2 %v4539_v25 }
 0x614   :  { %v1554_v62 = vsel %vm1553_vm5, %v3391_v24, %v1550_v59  ;;  %2037 = vmatpush.bf16.msrb.mxu3 %v4351_v52 }
 0x615   :  { %v1555_v28 = vmul.f32 %v1554_v62, %v4080_v55  ;;  %v3260_v62 = vld [vmem:[%s4926_s9 + $0x1d4] sm:$0xf0] }
 0x616   :  { %2000 = vmatpush.bf16.msrb.mxu0 %v4535_v3 }
 0x617   :  { %v1556_v11 = vmul.f32 %v1555_v28, %v4383_v58  ;;  %v1561_v31 = vperm.slane %v1555_v28, 1  ;;  %v3276_v28 = vld [vmem:[%s4926_s9 + $0x254] sm:$0xf0] }
 0x619   :  { %v1558_v57 = vrot.slane %v1556_v11, 7  ;;  %v1562_v18 = vmul.f32 %v1561_v31, %v4260_v32  ;;  %v3135_v11 = vld [vmem:[%s4926_s9 + $0x2d0] sm:$0xf]  ;;  %v3259_v31 = vld [vmem:[%s4926_s9 + $0x1d4] sm:$0xf] }
 0x61b   :  { %v1560_v36 = vsub.f32 %v4080_v55, %v1558_v57  ;;  %v3292_v57 = vld [vmem:[%s4926_s9 + $0x2d4] sm:$0xf0] }
 0x61d   :  { %v1563_v1 = vperm.slane %v1560_v36, 2  ;;  %v3009_v36 = vld [vmem:[%s4926_s9 + $0x1d8] sm:$0xf0] }
 0x61f   :  { %v1564_v38 = vadd.f32 %v1563_v1, %v1562_v18 }
 0x621   :  { %1566 = vst [vmem:[#allocation5 + $0x1] sm:$0xf] %v1564_v38 }
 0x622   :  { %1568 = vst [vmem:[#allocation5 + $0x2] sm:$0xf0] %v1564_v38  ;;  %v3136_v38 = vor.u32 %v3292_v57, %v3135_v11  ;;  %v3282_v11 = vld [vmem:[%s4926_s9 + $0x284] sm:$0xf0]  ;;  %v3249_v57 = vld [vmem:[%s4926_s9 + $0x184] sm:$0xf] }
 0x628   :  { %v1569_v22 = vld [vmem:[#allocation5] ss:$2 sm:$0x3]  ;;  %v1571_v6 = vld [vmem:[#allocation5 + $0x1] ss:$2 sm:$0x3] }
 0x629   :  { %v1575_v44 = vld [vmem:[#allocation5 + $0x5] ss:$2 sm:$0x3]  ;;  %v1577_v58 = vld [vmem:[#allocation5 + $0x6] ss:$2 sm:$0x3] }
 0x62a   :  { %v1583_v24 = vrot.slane %v1575_v44, 6  ;;  %v1584_v42 = vrot.slane %v1577_v58, 6  ;;  %v1579_v52 = vld [vmem:[#allocation5 + $0x7] ss:$2 sm:$0x3] }
 0x62b   :  { %v1585_v61 = vrot.slane %v1579_v52, 6  ;;  %v1573_v40 = vld [vmem:[#allocation5 + $0x2] ss:$2 sm:$0x3]  ;;  %v2999_v44 = vld [vmem:[%s4926_s9 + $0x1c0] sm:$0xf] }
 0x62c   :  { %v1590_v34 = vsel %vm1589_vm6, %v1569_v22, %v1583_v24  ;;  %v1591_v37 = vsel %vm1589_vm6, %v1571_v6, %v1584_v42  ;;  %v3258_v58 = vld [vmem:[%s4926_s9 + $0x1c4] sm:$0xf0]  ;;  %v3063_v22 = vld [vmem:[%s4926_s9 + $0x240] sm:$0xf]  ;;  %v3012_v24 = vor.u32 %v3259_v31, %v3009_v36  ;;  %v2969_v31 = vld [vmem:[%s4926_s9 + $0x188] sm:$0xf0] }
 0x62d   :  { %v1594_v9 = vpack.c.bf16 %v1591_v37, %v1590_v34  ;;  %v1592_v55 = vsel %vm1589_vm6, %v1573_v40, %v1585_v61  ;;  %v3274_v42 = vld [vmem:[%s4926_s9 + $0x244] sm:$0xf0]  ;;  %v3127_v6 = vld [vmem:[%s4926_s9 + $0x2c0] sm:$0xf]  ;;  %v3000_v61 = vor.u32 %v3258_v58, %v2999_v44  ;;  %v3279_v36 = vld [vmem:[%s4926_s9 + $0x274] sm:$0xf] }
 0x62e   :  { %v4550_v0 = vpack.c.bf16 %v1592_v55, %v1592_v55  ;;  %v3290_v52 = vld [vmem:[%s4926_s9 + $0x2c4] sm:$0xf0]  ;;  %v3153_v44 = vld [vmem:[%s4926_s9 + $0x2f8] sm:$0xf0] }
 0x62f   :  { %v1596_v54 = vunpack.c.l.bf16 %v1594_v9  ;;  %v1597_v32 = vunpack.c.h.bf16 %v1594_v9  ;;  %v3128_v40 = vor.u32 %v3290_v52, %v3127_v6  ;;  %v3277_v52 = vld [vmem:[%s4926_s9 + $0x264] sm:$0xf] }
 0x630   :  { %v1598_v10 = vunpack.c.l.bf16 %v4550_v0 }
 0x631   :  { %v1599_v47 = vsub.f32 %v1590_v34, %v1596_v54  ;;  %v1600_v51 = vsub.f32 %v1591_v37, %v1597_v32  ;;  %v3257_v34 = vld [vmem:[%s4926_s9 + $0x1c4] sm:$0xf]  ;;  %v3001_v37 = vld [vmem:[%s4926_s9 + $0x1c8] sm:$0xf0]  ;;  %v3256_v54 = vld [vmem:[%s4926_s9 + $0x1b4] sm:$0xf0] }
 0x632   :  { %v1601_v17 = vsub.f32 %v1592_v55, %v1598_v10  ;;  %v2991_v55 = vld [vmem:[%s4926_s9 + $0x1b0] sm:$0xf]  ;;  %v3288_v10 = vld [vmem:[%s4926_s9 + $0x2b4] sm:$0xf0] }
 0x633   :  { %v1602_v60 = vpack.c.bf16 %v1599_v47, %v1599_v47  ;;  %v1603_v12 = vpack.c.bf16 %v1600_v51, %v1600_v51  ;;  %v3055_v32 = vld [vmem:[%s4926_s9 + $0x230] sm:$0xf]  ;;  %v3272_v47 = vld [vmem:[%s4926_s9 + $0x234] sm:$0xf0] }
 0x634   :  { %v1604_v59 = vpack.c.bf16 %v1601_v17, %v1601_v17  ;;  %v3119_v51 = vld [vmem:[%s4926_s9 + $0x2b0] sm:$0xf]  ;;  %v2992_v17 = vor.u32 %v3256_v54, %v2991_v55  ;;  %v3275_v55 = vld [vmem:[%s4926_s9 + $0x254] sm:$0xf]  ;;  %v3073_v54 = vld [vmem:[%s4926_s9 + $0x258] sm:$0xf0] }
 0x635   :  { %1949 = vmatmul.bf16.vlgmr.msra.gmra.mxu0 %v1602_v60  ;;  %1962 = vmatmul.bf16.vlgmr.msrb.gmra.mxu2 %v1603_v12 }
 0x636   :  { %1988 = vmatmul.bf16.vlgmr.msrb.gmra.mxu1 %v1602_v60  ;;  %2056 = vmatpush.bf16.msra.mxu0 %v4105_v13  ;;  %v2022_v13 = vunpack.c.h.b16 %v1594_v9  ;;  %v3255_v60 = vld [vmem:[%s4926_s9 + $0x1b4] sm:$0xf] }
 0x637   :  { %1975 = vmatmul.bf16.vlgmr.msra.gmra.mxu3 %v1604_v59  ;;  %2069 = vmatpush.bf16.msrb.mxu2 %v4114_v15  ;;  %v2021_v15 = vunpack.c.l.b16 %v1594_v9  ;;  %v3064_v9 = vor.u32 %v3274_v42, %v3063_v22 }
 0x638   :  { %2082 = vmatpush.bf16.msra.mxu3 %v4388_v23  ;;  %2095 = vmatpush.bf16.msrb.mxu1 %v4397_v50  ;;  %v2023_v23 = vunpack.c.l.b16 %v4550_v0  ;;  %v3004_v0 = vor.u32 %v3257_v34, %v3001_v37  ;;  %v3081_v34 = vld [vmem:[%s4926_s9 + $0x268] sm:$0xf0]  ;;  %v3293_v37 = vld [vmem:[%s4926_s9 + $0x2e4] sm:$0xf] }
 0x63a   :  { %2057 = vmatpush.bf16.msra.mxu0 %v4144_v49  ;;  %v4569_v49 = vpack.c.b16 %v2022_v13, %v2022_v13  ;;  %v3120_v13 = vor.u32 %v3288_v10, %v3119_v51  ;;  %v3273_v10 = vld [vmem:[%s4926_s9 + $0x244] sm:$0xf] }
 0x63b   :  { %2070 = vmatpush.bf16.msrb.mxu2 %v4153_v2  ;;  %v4571_v2 = vpack.c.b16 %v2021_v15, %v2021_v15  ;;  %v2983_v15 = vld [vmem:[%s4926_s9 + $0x1a0] sm:$0xf] }
 0x63c   :  { %2083 = vmatpush.bf16.msra.mxu3 %v4412_v43  ;;  %2096 = vmatpush.bf16.msrb.mxu1 %v4419_v46  ;;  %v3262_v46 = vld [vmem:[%s4926_s9 + $0x1e4] sm:$0xf0] }
 0x63e   :  { %2058 = vmatpush.bf16.msra.mxu0 %v4187_v16  ;;  %v3023_v16 = vld [vmem:[%s4926_s9 + $0x1f0] sm:$0xf] }
 0x63f   :  { %2071 = vmatpush.bf16.msrb.mxu2 %v4189_v27  ;;  %v3264_v27 = vld [vmem:[%s4926_s9 + $0x1f4] sm:$0xf0] }
 0x640   :  { %2084 = vmatpush.bf16.msra.mxu3 %v4432_v7  ;;  %2097 = vmatpush.bf16.msrb.mxu1 %v4439_v30  ;;  %v3079_v7 = vld [vmem:[%s4926_s9 + $0x260] sm:$0xf] }
 0x642   :  { %2059 = vmatpush.bf16.msra.mxu0 %v4216_v53  ;;  %v3087_v53 = vld [vmem:[%s4926_s9 + $0x270] sm:$0xf] }
 0x643   :  { %2072 = vmatpush.bf16.msrb.mxu2 %v4225_v4  ;;  %v3280_v4 = vld [vmem:[%s4926_s9 + $0x274] sm:$0xf0] }
 0x644   :  { %2085 = vmatpush.bf16.msra.mxu3 %v4452_v21  ;;  %2098 = vmatpush.bf16.msrb.mxu1 %v4459_v14  ;;  %v3088_v50 = vor.u32 %v3280_v4, %v3087_v53  ;;  %v3278_v21 = vld [vmem:[%s4926_s9 + $0x264] sm:$0xf0]  ;;  %v3143_v14 = vld [vmem:[%s4926_s9 + $0x2e0] sm:$0xf] }
 0x645   :  { %2001 = vmatmul.bf16.vlgmr.msrb.gmra.mxu0 %v1603_v12  ;;  %2014 = vmatmul.bf16.vlgmr.msra.gmra.mxu2 %v1604_v59  ;;  %v2993_v12 = vld [vmem:[%s4926_s9 + $0x1b8] sm:$0xf0]  ;;  %v3056_v59 = vor.u32 %v3272_v47, %v3055_v32  ;;  %v3270_v4 = vld [vmem:[%s4926_s9 + $0x224] sm:$0xf0]  ;;  %v3291_v32 = vld [vmem:[%s4926_s9 + $0x2d4] sm:$0xf]  ;;  %v3076_v47 = vor.u32 %v3275_v55, %v3073_v54 }
 0x646   :  { %2051 = vmatmul.bf16.vlgmr.msra.gmra.mxu1 %v4569_v49  ;;  %2060 = vmatpush.bf16.msra.mxu0 %v4263_v63  ;;  %v3151_v63 = vld [vmem:[%s4926_s9 + $0x2f0] sm:$0xf]  ;;  %v2996_v53 = vor.u32 %v3255_v60, %v2993_v12  ;;  %v3065_v60 = vld [vmem:[%s4926_s9 + $0x248] sm:$0xf0]  ;;  %v3289_v12 = vld [vmem:[%s4926_s9 + $0x2c4] sm:$0xf] }
 0x647   :  { %2038 = vmatmul.bf16.vlgmr.msrb.gmra.mxu3 %v4571_v2  ;;  %2073 = vmatpush.bf16.msrb.mxu2 %v4265_v8  ;;  %v3296_v8 = vld [vmem:[%s4926_s9 + $0x2f4] sm:$0xf0] }
 0x648   :  { %2086 = vmatpush.bf16.msra.mxu3 %v4475_v19  ;;  %2099 = vmatpush.bf16.msrb.mxu1 %v4479_v20  ;;  %v3152_v43 = vor.u32 %v3296_v8, %v3151_v63  ;;  %v3294_v19 = vld [vmem:[%s4926_s9 + $0x2e4] sm:$0xf0]  ;;  %v3017_v20 = vld [vmem:[%s4926_s9 + $0x1e8] sm:$0xf0]  ;;  %v3111_v63 = vld [vmem:[%s4926_s9 + $0x2a0] sm:$0xf] }
 0x649   :  { %v3286_v8 = vld [vmem:[%s4926_s9 + $0x2a4] sm:$0xf0] }
 0x64a   :  { %2061 = vmatpush.bf16.msra.mxu0 %v4300_v26  ;;  %v3024_v26 = vor.u32 %v3264_v27, %v3023_v16  ;;  %v3254_v16 = vld [vmem:[%s4926_s9 + $0x1a4] sm:$0xf0]  ;;  %v3047_v27 = vld [vmem:[%s4926_s9 + $0x220] sm:$0xf] }
 0x64b   :  { %2074 = vmatpush.bf16.msrb.mxu2 %v4306_v33  ;;  %v3263_v33 = vld [vmem:[%s4926_s9 + $0x1f4] sm:$0xf] }
 0x64c   :  { %2087 = vmatpush.bf16.msra.mxu3 %v4495_v35  ;;  %2100 = vmatpush.bf16.msrb.mxu1 %v4499_v39  ;;  %v4640_v35 = vpack.c.b16 %v2023_v23, %v2023_v23  ;;  %v3048_v23 = vor.u32 %v3270_v4, %v3047_v27  ;;  %v3121_v27 = vld [vmem:[%s4926_s9 + $0x2b8] sm:$0xf0] }
 0x64e   :  { %2062 = vmatpush.bf16.msra.mxu0 %v4336_v48  ;;  %v3025_v48 = vld [vmem:[%s4926_s9 + $0x1f8] sm:$0xf0] }
 0x64f   :  { %2075 = vmatpush.bf16.msrb.mxu2 %v4342_v45  ;;  %v3015_v45 = vld [vmem:[%s4926_s9 + $0x1e0] sm:$0xf]  ;;  %v3028_v30 = vor.u32 %v3263_v33, %v3025_v48  ;;  %v2985_v33 = vld [vmem:[%s4926_s9 + $0x1a8] sm:$0xf0]  ;;  %v2984_v48 = vor.u32 %v3254_v16, %v2983_v15  ;;  %v3057_v15 = vld [vmem:[%s4926_s9 + $0x238] sm:$0xf0] }
 0x650   :  { %2088 = vmatpush.bf16.msra.mxu3 %v4515_v41  ;;  %2101 = vmatpush.bf16.msrb.mxu1 %v4519_v29  ;;  %v3016_v39 = vor.u32 %v3262_v46, %v3015_v45  ;;  %v3080_v41 = vor.u32 %v3278_v21, %v3079_v7  ;;  %v3007_v29 = vld [vmem:[%s4926_s9 + $0x1d0] sm:$0xf]  ;;  %v3252_v45 = vld [vmem:[%s4926_s9 + $0x194] sm:$0xf0]  ;;  %v3287_v16 = vld [vmem:[%s4926_s9 + $0x2b4] sm:$0xf] }
 0x651   :  { %v3008_v18 = vor.u32 %v3260_v62, %v3007_v29  ;;  %v3039_v46 = vld [vmem:[%s4926_s9 + $0x210] sm:$0xf]  ;;  %v3250_v29 = vld [vmem:[%s4926_s9 + $0x184] sm:$0xf0]  ;;  %v3031_v62 = vld [vmem:[%s4926_s9 + $0x200] sm:$0xf]  ;;  %v3124_v4 = vor.u32 %v3287_v16, %v3121_v27 }
 0x652   :  { %2063 = vmatpush.bf16.msra.mxu0 %v4372_v5  ;;  %v3261_v5 = vld [vmem:[%s4926_s9 + $0x1e4] sm:$0xf]  ;;  %v3103_v21 = vld [vmem:[%s4926_s9 + $0x290] sm:$0xf] }
 0x653   :  { %2076 = vmatpush.bf16.msrb.mxu2 %v4386_v56  ;;  %v3144_v56 = vor.u32 %v3294_v19, %v3143_v14  ;;  %v3284_v14 = vld [vmem:[%s4926_s9 + $0x294] sm:$0xf0]  ;;  %v3251_v19 = vld [vmem:[%s4926_s9 + $0x194] sm:$0xf] }
 0x654   :  { %2089 = vmatpush.bf16.msra.mxu3 %v4535_v3  ;;  %2102 = vmatpush.bf16.msrb.mxu1 %v4539_v25  ;;  %v3071_v3 = vld [vmem:[%s4926_s9 + $0x250] sm:$0xf]  ;;  %v3020_v25 = vor.u32 %v3261_v5, %v3017_v20  ;;  %v2977_v5 = vld [vmem:[%s4926_s9 + $0x198] sm:$0xf0] }
 0x655   :  { %2064 = vmatmul.bf16.vlgmr.msra.gmra.mxu0 %v4640_v35  ;;  %v3072_v1 = vor.u32 %v3276_v28, %v3071_v3  ;;  %v3266_v3 = vld [vmem:[%s4926_s9 + $0x204] sm:$0xf0]  ;;  %v3095_v28 = vld [vmem:[%s4926_s9 + $0x280] sm:$0xf] }
 0x656   :  { %2348 = vmatpush.bf16.msrb.mxu0 %v3024_v26  ;;  %2077 = vmatmul.bf16.vlgmr.msrb.gmra.mxu2 %v4571_v2  ;;  %v3253_v26 = vld [vmem:[%s4926_s9 + $0x1a4] sm:$0xf]  ;;  %v3032_v58 = vor.u32 %v3266_v3, %v3031_v62  ;;  %v3096_v22 = vor.u32 %v3282_v11, %v3095_v28 }
 0x657   :  { %2361 = vmatpush.bf16.msra.mxu2 %v3088_v50  ;;  %2090 = vmatmul.bf16.vlgmr.msra.gmra.mxu3 %v4569_v49  ;;  %v3112_v50 = vor.u32 %v3286_v8, %v3111_v63  ;;  %v2988_v7 = vor.u32 %v3253_v26, %v2985_v33  ;;  %v3269_v63 = vld [vmem:[%s4926_s9 + $0x224] sm:$0xf]  ;;  %v3049_v8 = vld [vmem:[%s4926_s9 + $0x228] sm:$0xf0] }
 0x658   :  { %2374 = vmatpush.bf16.msrb.mxu3 %v3152_v43  ;;  %2387 = vmatpush.bf16.msra.mxu1 %v3028_v30  ;;  %v2975_v43 = vld [vmem:[%s4926_s9 + $0x190] sm:$0xf]  ;;  %v3268_v30 = vld [vmem:[%s4926_s9 + $0x214] sm:$0xf0]  ;;  %v3285_v26 = vld [vmem:[%s4926_s9 + $0x2a4] sm:$0xf] }
 0x659   :  { %2103 = vmatmul.bf16.vlgmr.msrb.gmra.mxu1 %v4640_v35  ;;  %v2976_v20 = vor.u32 %v3252_v45, %v2975_v43  ;;  %v3113_v33 = vld [vmem:[%s4926_s9 + $0x2a8] sm:$0xf0]  ;;  %v3041_v43 = vld [vmem:[%s4926_s9 + $0x218] sm:$0xf0]  ;;  %v3283_v45 = vld [vmem:[%s4926_s9 + $0x294] sm:$0xf] }
 0x65a   :  { %2349 = vmatpush.bf16.msrb.mxu0 %v3016_v39  ;;  %v2967_v39 = vld [vmem:[%s4926_s9 + $0x180] sm:$0xf] }
 0x65b   :  { %2362 = vmatpush.bf16.msra.mxu2 %v3080_v41  ;;  %v3040_v41 = vor.u32 %v3268_v30, %v3039_v46  ;;  %v3105_v46 = vld [vmem:[%s4926_s9 + $0x298] sm:$0xf0] }
 0x65c   :  { %2375 = vmatpush.bf16.msrb.mxu3 %v3144_v56  ;;  %2388 = vmatpush.bf16.msra.mxu1 %v3020_v25  ;;  %v3104_v56 = vor.u32 %v3284_v14, %v3103_v21  ;;  %v2980_v25 = vor.u32 %v3251_v19, %v2977_v5  ;;  %v3108_v30 = vor.u32 %v3283_v45, %v3105_v46  ;;  %v3265_v21 = vld [vmem:[%s4926_s9 + $0x204] sm:$0xf]  ;;  %v3033_v14 = vld [vmem:[%s4926_s9 + $0x208] sm:$0xf0] }
 0x65d   :  { %v3281_v19 = vld [vmem:[%s4926_s9 + $0x284] sm:$0xf]  ;;  %v3097_v5 = vld [vmem:[%s4926_s9 + $0x288] sm:$0xf0] }
 0x65e   :  { %2350 = vmatpush.bf16.msrb.mxu0 %v3008_v18  ;;  %v3089_v18 = vld [vmem:[%s4926_s9 + $0x278] sm:$0xf0] }
 0x65f   :  { %2363 = vmatpush.bf16.msra.mxu2 %v3072_v1  ;;  %v2968_v1 = vor.u32 %v3250_v29, %v2967_v39  ;;  %v3092_v42 = vor.u32 %v3279_v36, %v3089_v18  ;;  %v3100_v39 = vor.u32 %v3281_v19, %v3097_v5 }
 0x660   :  { %2376 = vmatpush.bf16.msrb.mxu3 %v3136_v38  ;;  %2389 = vmatpush.bf16.msra.mxu1 %v3012_v24  ;;  %v3295_v38 = vld [vmem:[%s4926_s9 + $0x2f4] sm:$0xf]  ;;  %v2972_v24 = vor.u32 %v3249_v57, %v2969_v31 }
 0x661   :  { %v3156_v6 = vor.u32 %v3295_v38, %v3153_v44 }
 0x662   :  { %2351 = vmatpush.bf16.msrb.mxu0 %v3000_v61  ;;  %v3145_v61 = vld [vmem:[%s4926_s9 + $0x2e8] sm:$0xf0] }
 0x663   :  { %2364 = vmatpush.bf16.msra.mxu2 %v3064_v9  ;;  %v3084_v9 = vor.u32 %v3277_v52, %v3081_v34 }
 0x664   :  { %2377 = vmatpush.bf16.msrb.mxu3 %v3128_v40  ;;  %2390 = vmatpush.bf16.msra.mxu1 %v3004_v0  ;;  %v3148_v40 = vor.u32 %v3293_v37, %v3145_v61  ;;  %v3137_v0 = vld [vmem:[%s4926_s9 + $0x2d8] sm:$0xf0] }
 0x665   :  { %v3140_v51 = vor.u32 %v3291_v32, %v3137_v0 }
 0x666   :  { %2352 = vmatpush.bf16.msrb.mxu0 %v2992_v17  ;;  %v3068_v17 = vor.u32 %v3273_v10, %v3065_v60 }
 0x667   :  { %2365 = vmatpush.bf16.msra.mxu2 %v3056_v59 }
 0x668   :  { %2378 = vmatpush.bf16.msrb.mxu3 %v3120_v13  ;;  %2391 = vmatpush.bf16.msra.mxu1 %v2996_v53  ;;  %v3271_v13 = vld [vmem:[%s4926_s9 + $0x234] sm:$0xf] }
 0x669   :  { %v3060_v53 = vor.u32 %v3271_v13, %v3057_v15 }
 0x66a   :  { %2353 = vmatpush.bf16.msrb.mxu0 %v2984_v48  ;;  %v3052_v48 = vor.u32 %v3269_v63, %v3049_v8 }
 0x66b   :  { %2366 = vmatpush.bf16.msra.mxu2 %v3048_v23  ;;  %v3116_v23 = vor.u32 %v3285_v26, %v3113_v33 }
 0x66c   :  { %2379 = vmatpush.bf16.msrb.mxu3 %v3112_v50  ;;  %2392 = vmatpush.bf16.msra.mxu1 %v2988_v7  ;;  %v3267_v50 = vld [vmem:[%s4926_s9 + $0x214] sm:$0xf] }
 0x66d   :  { %v3044_v7 = vor.u32 %v3267_v50, %v3041_v43 }
 0x66e   :  { %2354 = vmatpush.bf16.msrb.mxu0 %v2976_v20  ;;  %v3036_v20 = vor.u32 %v3265_v21, %v3033_v14 }
 0x66f   :  { %2367 = vmatpush.bf16.msra.mxu2 %v3040_v41 }
 0x670   :  { %2380 = vmatpush.bf16.msrb.mxu3 %v3104_v56  ;;  %2393 = vmatpush.bf16.msra.mxu1 %v2980_v25 }
 0x672   :  { %2355 = vmatpush.bf16.msrb.mxu0 %v2968_v1 }
 0x673   :  { %2368 = vmatpush.bf16.msra.mxu2 %v3032_v58 }
 0x674   :  { %2381 = vmatpush.bf16.msrb.mxu3 %v3096_v22  ;;  %2394 = vmatpush.bf16.msra.mxu1 %v2972_v24 }
 0x675   :  { %2356 = vmatmul.bf16.vlgmr.msrb.gmra.mxu0 %v4571_v2 }
 0x676   :  { %2400 = vmatpush.bf16.msra.mxu0 %v3092_v42  ;;  %2369 = vmatmul.bf16.vlgmr.msra.gmra.mxu2 %v4569_v49 }
 0x677   :  { %2413 = vmatpush.bf16.msrb.mxu2 %v3156_v6  ;;  %2382 = vmatmul.bf16.vlgmr.msrb.gmra.mxu3 %v4640_v35 }
 0x678   :  { %2395 = vmatmul.bf16.vlgmr.msra.gmra.mxu1 %v4571_v2  ;;  %v3129_v2 = vld [vmem:[%s4926_s9 + $0x2c8] sm:$0xf0] }
 0x679   :  { %v3132_v59 = vor.u32 %v3289_v12, %v3129_v2  ;;  %v4895_v12 = vld [vmem:[%s4927_s10] sm:$0x77] }
 0x67a   :  { %2401 = vmatpush.bf16.msra.mxu0 %v3084_v9  ;;  %v2429_v2 = vperm.slane %v4895_v12, 0  ;;  %v2430_v5 = vperm.slane %v4895_v12, 4 }
 0x67b   :  { %2414 = vmatpush.bf16.msrb.mxu2 %v3148_v40 }
 0x67c   :  { %v2433_v27 = vperm.slane %v2429_v2, 0 }
 0x67e   :  { %2402 = vmatpush.bf16.msra.mxu0 %v3076_v47 }
 0x67f   :  { %2415 = vmatpush.bf16.msrb.mxu2 %v3140_v51 }
 0x682   :  { %2403 = vmatpush.bf16.msra.mxu0 %v3068_v17 }
 0x683   :  { %2416 = vmatpush.bf16.msrb.mxu2 %v3132_v59 }
 0x686   :  { %2404 = vmatpush.bf16.msra.mxu0 %v3060_v53 }
 0x687   :  { %2417 = vmatpush.bf16.msrb.mxu2 %v3124_v4 }
 0x68a   :  { %2405 = vmatpush.bf16.msra.mxu0 %v3052_v48 }
 0x68b   :  { %2418 = vmatpush.bf16.msrb.mxu2 %v3116_v23 }
 0x68e   :  { %2406 = vmatpush.bf16.msra.mxu0 %v3044_v7 }
 0x68f   :  { %2419 = vmatpush.bf16.msrb.mxu2 %v3108_v30 }
 0x692   :  { %2407 = vmatpush.bf16.msra.mxu0 %v3036_v20 }
 0x693   :  { %2420 = vmatpush.bf16.msrb.mxu2 %v3100_v39 }
 0x695   :  { %2408 = vmatmul.bf16.vlgmr.msra.gmra.mxu0 %v4569_v49 }
 0x696   :  { %2421 = vmatmul.bf16.vlgmr.msrb.gmra.mxu2 %v4640_v35 }
 0x6b2   :  { %v1950_v41 = vpop.f32.mrf.mxu0 }
 0x6b3   :  { %v1989_v56 = vpop.f32.mrf.mxu1 }
 0x6b8   :  { %v1963_v29 = vpop.f32.mrf.mxu2 }
 0x6b9   :  { %v1964_v62 = vadd.f32 %v1963_v29, %v1950_v41 }
 0x6ba   :  { %v1976_v3 = vpop.f32.mrf.mxu3  ;;  %v1952_v25 = vpop.f32.mrf.mxu0 }
 0x6bb   :  { %v1977_v28 = vadd.f32 %v1976_v3, %v1964_v62  ;;  %v1991_v11 = vpop.f32.mrf.mxu1  ;;  %v2434_v62 = vperm.slane %v2430_v5, 0 }
 0x6c0   :  { %v1965_v57 = vpop.f32.mrf.mxu2 }
 0x6c2   :  { %v1978_v31 = vpop.f32.mrf.mxu3  ;;  %v2002_v36 = vpop.f32.mrf.mxu0 }
 0x6c3   :  { %v2003_v18 = vadd.f32 %v2002_v36, %v1989_v56  ;;  %v2052_v1 = vpop.f32.mrf.mxu1 }
 0x6c8   :  { %v2015_v38 = vpop.f32.mrf.mxu2 }
 0x6c9   :  { %v2016_v44 = vadd.f32 %v2015_v38, %v2003_v18 }
 0x6ca   :  { %v2039_v58 = vpop.f32.mrf.mxu3  ;;  %v2004_v22 = vpop.f32.mrf.mxu0 }
 0x6cb   :  { %v2040_v49 = vadd.f32 %v2039_v58, %v1977_v28  ;;  %v2054_v24 = vpop.f32.mrf.mxu1 }
 0x6cd   :  { %v2053_v35 = vadd.f32 %v2052_v1, %v2040_v49 }
 0x6d0   :  { %v2017_v42 = vpop.f32.mrf.mxu2 }
 0x6d2   :  { %v2041_v6 = vpop.f32.mrf.mxu3  ;;  %v2065_v52 = vpop.f32.mrf.mxu0 }
 0x6d3   :  { %v2066_v34 = vadd.f32 %v2065_v52, %v2053_v35 }
 0x6d6   :  { %v2104_v37 = vpop.f32.mrf.mxu1 }
 0x6d9   :  { %v2078_v61 = vpop.f32.mrf.mxu2 }
 0x6da   :  { %v2091_v9 = vpop.f32.mrf.mxu3  ;;  %v2079_v40 = vadd.f32 %v2078_v61, %v2016_v44  ;;  %v2067_v55 = vpop.f32.mrf.mxu0 }
 0x6dc   :  { %v2092_v54 = vadd.f32 %v2091_v9, %v2079_v40 }
 0x6de   :  { %v2106_v32 = vpop.f32.mrf.mxu1  ;;  %v2105_v0 = vadd.f32 %v2104_v37, %v2092_v54 }
 0x6e1   :  { %v2080_v47 = vpop.f32.mrf.mxu2 }
 0x6e2   :  { %v2093_v51 = vpop.f32.mrf.mxu3 }
 0x6f2   :  { %v2357_v10 = vpop.f32.mrf.mxu0 }
 0x6f5   :  { %v2396_v60 = vpop.f32.mrf.mxu1 }
 0x6f9   :  { %v2370_v17 = vpop.f32.mrf.mxu2 }
 0x6fa   :  { %v2383_v59 = vpop.f32.mrf.mxu3  ;;  %v2371_v13 = vadd.f32 %v2370_v17, %v2357_v10  ;;  %v2359_v15 = vpop.f32.mrf.mxu0 }
 0x6fc   :  { %v2384_v16 = vadd.f32 %v2383_v59, %v2371_v13 }
 0x6fd   :  { %v2398_v53 = vpop.f32.mrf.mxu1 }
 0x6fe   :  { %v2426_v4 = vadd.f32 %v2384_v16, %v2066_v34 }
 0x700   :  { %v2435_v63 = vadd.f32 %v2433_v27, %v2426_v4 }
 0x701   :  { %v2372_v8 = vpop.f32.mrf.mxu2 }
 0x702   :  { %v2385_v26 = vpop.f32.mrf.mxu3  ;;  %v2439_v33 = vmin.f32 %v2435_v63, 0.0  ;;  %vm2437_vm7 = vcmp.gt.f32.partialorder %v2435_v63, 0.0 }
 0x704   :  { %v2441_v48 = vmul.f32 1.442695, %v2439_v33 }
 0x706   :  { %3392 = vpow2.f32 %v2441_v48 }
 0x70c   :  { %v3393_v23 = vpop.eup %3392 }
 0x70d   :  { %v3157_v50 = vadd.f32 -1.0, %v3393_v23 }
 0x70f   :  { %v4898_v43 = vsel %vm2437_vm7, %v2435_v63, %v3157_v50 }
 0x710   :  { %v2449_v45 = vsel %vm1224_vm1, %v4898_v43, 0.0  ;;  %v2465_v46 = vmul.f32 %v4898_v43, %v4898_v43 }
 0x711   :  { %v2450_v30 = vrot.slane %v2449_v45, 4 }
 0x712   :  { %v2409_v7 = vpop.f32.mrf.mxu0  ;;  %v2467_v21 = vsel %vm1224_vm1, %v2465_v46, 0.0 }
 0x713   :  { %v2451_v14 = vadd.f32 %v2450_v30, %v2449_v45  ;;  %v2468_v19 = vrot.slane %v2467_v21, 4  ;;  %v2410_v41 = vadd.f32 %v2409_v7, %v2396_v60 }
 0x715   :  { %v2452_v20 = vrot.slane %v2451_v14, 2  ;;  %v2469_v39 = vadd.f32 %v2468_v19, %v2467_v21 }
 0x717   :  { %v2453_v25 = vadd.f32 %v2452_v20, %v2451_v14  ;;  %v2470_v28 = vrot.slane %v2469_v39, 2 }
 0x719   :  { %v2422_v56 = vpop.f32.mrf.mxu2  ;;  %v2454_v31 = vrot.slane %v2453_v25, 1  ;;  %v2471_v36 = vadd.f32 %v2470_v28, %v2469_v39 }
 0x71a   :  { %v2423_v29 = vadd.f32 %v2422_v56, %v2410_v41  ;;  %v2411_v3 = vpop.f32.mrf.mxu0 }
 0x71b   :  { %v2455_v44 = vadd.f32 %v2454_v31, %v2453_v25  ;;  %v2472_v58 = vrot.slane %v2471_v36, 1 }
 0x71c   :  { %v2427_v11 = vadd.f32 %v2423_v29, %v2105_v0 }
 0x71d   :  { %v2463_v22 = vmul.f32 0.25, %v2455_v44  ;;  %v2473_v49 = vadd.f32 %v2472_v58, %v2471_v36 }
 0x71e   :  { %v2436_v57 = vadd.f32 %v2434_v62, %v2427_v11 }
 0x71f   :  { %v2481_v35 = vmul.f32 0.25, %v2473_v49  ;;  %v2483_v42 = vmul.f32 %v2463_v22, %v2463_v22 }
 0x720   :  { %v2440_v18 = vmin.f32 %v2436_v57, 0.0  ;;  %vm2438_vm8 = vcmp.gt.f32.partialorder %v2436_v57, 0.0 }
 0x721   :  { %v2424_v1 = vpop.f32.mrf.mxu2  ;;  %v2485_v61 = vsub.f32 %v2481_v35, %v2483_v42 }
 0x722   :  { %v2443_v38 = vmul.f32 1.442695, %v2440_v18 }
 0x723   :  { %v2487_v32 = vmax.f32 %v2485_v61, 0.0 }
 0x724   :  { %3394 = vpow2.f32 %v2443_v38 }
 0x725   :  { %v2489_v60 = vadd.f32 1e-05, %v2487_v32 }
 0x727   :  { %3396 = vrsqrt.f32 %v2489_v60  ;;  %vm2497_vm13 = vweird.f32 %v2489_v60 }
 0x72a   :  { %v3395_v24 = vpop.eup %3394 }
 0x72b   :  { %v3158_v6 = vadd.f32 -1.0, %v3395_v24 }
 0x72d   :  { %v2448_v52 = vsel %vm2438_vm8, %v2436_v57, %v3158_v6  ;;  %v3397_v63 = vpop.eup %3396 }
 0x72e   :  { %v2456_v34 = vsel %vm1224_vm1, %v2448_v52, 0.0  ;;  %v2466_v37 = vmul.f32 %v2448_v52, %v2448_v52  ;;  %v2492_v33 = vmul.f32 %v3397_v63, %v2489_v60  ;;  %vm2498_vm10 = vweird.f32 %v3397_v63 }
 0x72f   :  { %v2457_v9 = vrot.slane %v2456_v34, 4  ;;  %vm2499_vm14 = vmor %vm2497_vm13, %vm2498_vm10 }
 0x730   :  { %v2474_v40 = vsel %vm1224_vm1, %v2466_v37, 0.0  ;;  %v2493_v48 = vmul.f32 %v3397_v63, %v2492_v33 }
 0x731   :  { %v2458_v55 = vadd.f32 %v2457_v9, %v2456_v34  ;;  %v2475_v54 = vrot.slane %v2474_v40, 4 }
 0x732   :  { %v2494_v50 = vmul.f32 0.5, %v2493_v48 }
 0x733   :  { %v2459_v0 = vrot.slane %v2458_v55, 2  ;;  %v2476_v47 = vadd.f32 %v2475_v54, %v2474_v40 }
 0x734   :  { %v2495_v7 = vsub.f32 1.5, %v2494_v50 }
 0x735   :  { %v2460_v51 = vadd.f32 %v2459_v0, %v2458_v55  ;;  %v2477_v10 = vrot.slane %v2476_v47, 2 }
 0x736   :  { %v2496_v14 = vmul.f32 %v3397_v63, %v2495_v7 }
 0x737   :  { %v2461_v2 = vrot.slane %v2460_v51, 1  ;;  %v2478_v17 = vadd.f32 %v2477_v10, %v2476_v47 }
 0x738   :  { %v2500_v39 = vsel %vm2499_vm14, %v3397_v63, %v2496_v14 }
 0x739   :  { %v2462_v59 = vadd.f32 %v2461_v2, %v2460_v51  ;;  %v2479_v13 = vrot.slane %v2478_v17, 1 }
 0x73b   :  { %v2464_v15 = vmul.f32 0.25, %v2462_v59  ;;  %v2480_v16 = vadd.f32 %v2479_v13, %v2478_v17 }
 0x73d   :  { %v2482_v27 = vmul.f32 0.25, %v2480_v16  ;;  %v2484_v53 = vmul.f32 %v2464_v15, %v2464_v15 }
 0x73f   :  { %v2486_v4 = vsub.f32 %v2482_v27, %v2484_v53 }
 0x741   :  { %v2488_v8 = vmax.f32 %v2486_v4, 0.0 }
 0x743   :  { %v2490_v26 = vadd.f32 1e-05, %v2488_v8 }
 0x745   :  { %3398 = vrsqrt.f32 %v2490_v26  ;;  %vm2507_vm11 = vweird.f32 %v2490_v26 }
 0x74b   :  { %v3399_v23 = vpop.eup %3398 }
 0x74c   :  { %v2502_v45 = vmul.f32 %v3399_v23, %v2490_v26  ;;  %vm2508_vm9 = vweird.f32 %v3399_v23 }
 0x74d   :  { %vm2509_vm12 = vmor %vm2507_vm11, %vm2508_vm9 }
 0x74e   :  { %v2503_v46 = vmul.f32 %v3399_v23, %v2502_v45 }
 0x750   :  { %v2504_v30 = vmul.f32 0.5, %v2503_v46 }
 0x752   :  { %v2505_v21 = vsub.f32 1.5, %v2504_v30 }
 0x754   :  { %v2506_v19 = vmul.f32 %v3399_v23, %v2505_v21 }
 0x756   :  { %v2510_v5 = vsel %vm2509_vm12, %v3399_v23, %v2506_v19 }
 0x757   :  { %v2513_v20 = vrot.slane %v2510_v5, 4 }
 0x759   :  { %v2514_v41 = vsel %vm1224_vm1, %v2500_v39, %v2513_v20 }
 0x75a   :  { %v2515_v56 = vrot.slane %v2514_v41, 7 }
 0x75c   :  { %v2517_v29 = vmul.f32 %v2515_v56, %v4895_v12 }
 0x75e   :  { %v2519_v62 = vperm.slane %v2517_v29, 1  ;;  %v2520_v3 = vperm.slane %v2517_v29, 5 }
 0x760   :  { %v2523_v25 = vmul.f32 %v2519_v62, %v2463_v22  ;;  %v2524_v28 = vmul.f32 %v2520_v3, %v2464_v15  ;;  %v2532_v11 = vperm.slane %v2519_v62, 1  ;;  %v2533_v57 = vperm.slane %v2520_v3, 1 }
 0x762   :  { %v2527_v31 = vrot.slane %v2524_v28, 4  ;;  %v2534_v36 = vmul.f32 %v2532_v11, %v4898_v43  ;;  %v2535_v18 = vmul.f32 %v2533_v57, %v2448_v52 }
 0x764   :  { %v2528_v1 = vsel %vm1224_vm1, %v2523_v25, %v2527_v31 }
 0x765   :  { %v2529_v38 = vrot.slane %v2528_v1, 6 }
 0x767   :  { %v2531_v44 = vsub.f32 %v4895_v12, %v2529_v38 }
 0x769   :  { %v2537_v58 = vperm.slane %v2531_v44, 2  ;;  %v2538_v49 = vperm.slane %v2531_v44, 6 }
 0x76b   :  { %v2541_v24 = vperm.slane %v2537_v58, 2  ;;  %v2542_v35 = vperm.slane %v2538_v49, 2 }
 0x76d   :  { %v2543_v42 = vadd.f32 %v2541_v24, %v2534_v36  ;;  %v2544_v6 = vadd.f32 %v2542_v35, %v2535_v18 }
 0x76f   :  { %v2547_v34 = vrot.slane %v2544_v6, 4 }
 0x771   :  { %v2548_v22 = vsel %vm1224_vm1, %v2543_v42, %v2547_v34 }
 0x772   :  { %2550 = vst [vmem:[%s4928_s11] sm:$0xff] %v2548_v22 }

</bundles_post_ra>
